<compile_context>
chip_gen: v7x
topology: tpu7x:2x2x1
jax: 0.10.0
libtpu: 0.0.40
codegen_flags: <defaults>
</compile_context>

<pallas_src>
import jax
import jax.numpy as jnp
from jax.experimental import pallas as pl
from jax.experimental.pallas import tpu as pltpu

EMBEDDING_SIZE = 64
TOKEN_LENGTH = 64
FLAT = TOKEN_LENGTH * EMBEDDING_SIZE  # 4096
HIDDEN = 256

# Max batch-tile rows. 2 (in+out) * 2 (double-buffer) * 512*4096*4B = 32 MiB
# of activation buffers + ~4.3 MiB resident bf16 weights ~= 36 MiB < 64 MiB.
TM_MAX = 512


def _mlp_kernel(x_ref, w1_ref, b1_ref, w2_ref, b2_ref, w3_ref, b3_ref,
                w4_ref, b4_ref, o_ref):
    # One batch tile of the fused 4-layer MLP: 4 MXU matmuls (bf16 operands,
    # f32 accumulation) + f32 bias adds and ReLUs on the VPU.
    x = x_ref[...].astype(jnp.bfloat16)

    h = jnp.dot(x, w1_ref[...], preferred_element_type=jnp.float32) + b1_ref[...]
    h = jnp.maximum(h, 0.0)

    h = jnp.dot(h.astype(jnp.bfloat16), w2_ref[...],
                preferred_element_type=jnp.float32) + b2_ref[...]
    h = jnp.maximum(h, 0.0)

    h = jnp.dot(h.astype(jnp.bfloat16), w3_ref[...],
                preferred_element_type=jnp.float32) + b3_ref[...]
    h = jnp.maximum(h, 0.0)

    y = jnp.dot(h.astype(jnp.bfloat16), w4_ref[...],
                preferred_element_type=jnp.float32) + b4_ref[...]
    o_ref[...] = y.astype(o_ref.dtype)


def autoencoder_forward(x, params):
    """x: (B, C, W, H) float32 with C*W*H == 4096. Returns the same shape."""
    b, c, w, h = x.shape
    assert c * w * h == FLAT, "channels*width*height must equal 4096"

    x_flat = x.reshape(b, FLAT)

    # Sublane alignment only (at most 7 extra rows); tile-level padding of the
    # last partial batch tile is handled by the grid, not a padded HBM copy.
    b_pad = ((b + 7) // 8) * 8
    if b_pad != b:
        x_flat = jnp.pad(x_flat, ((0, b_pad - b), (0, 0)))

    tm = min(TM_MAX, b_pad)
    grid = (pl.cdiv(b_pad, tm),)

    (w1, b1), (w2, b2), (w3, b3), (w4, b4) = params
    # bf16 matmul operands; biases stay f32 for the f32 accumulator path.
    w1, w2, w3, w4 = (wt.astype(jnp.bfloat16) for wt in (w1, w2, w3, w4))
    b1, b2, b3, b4 = (bs.astype(jnp.float32) for bs in (b1, b2, b3, b4))

    const = lambda i: (0, 0)  # weights/biases: single block, resident in VMEM

    out_flat = pl.pallas_call(
        _mlp_kernel,
        out_shape=jax.ShapeDtypeStruct((b_pad, FLAT), jnp.float32),
        grid=grid,
        in_specs=[
            pl.BlockSpec((tm, FLAT), lambda i: (i, 0)),   # x batch tile
            pl.BlockSpec((FLAT, HIDDEN), const),          # w1
            pl.BlockSpec((1, HIDDEN), const),             # b1
            pl.BlockSpec((HIDDEN, HIDDEN), const),        # w2
            pl.BlockSpec((1, HIDDEN), const),             # b2
            pl.BlockSpec((HIDDEN, HIDDEN), const),        # w3
            pl.BlockSpec((1, HIDDEN), const),             # b3
            pl.BlockSpec((HIDDEN, FLAT), const),          # w4
            pl.BlockSpec((1, FLAT), const),               # b4
        ],
        out_specs=pl.BlockSpec((tm, FLAT), lambda i: (i, 0)),
        compiler_params=pltpu.CompilerParams(
            dimension_semantics=("parallel",),
            vmem_limit_bytes=48 << 20,  # actual footprint + headroom, < v7x 64 MiB
        ),
    )(x_flat, w1, b1, w2, b2, w3, b3, w4, b4)

    return out_flat[:b].reshape(b, c, w, h)


def init_params(key):
    """Deterministic synthetic weights with torch.nn.Linear-like init.

    Stored as W: (in_features, out_features), b: (1, out_features), f32."""
    dims = [(FLAT, HIDDEN), (HIDDEN, HIDDEN), (HIDDEN, HIDDEN), (HIDDEN, FLAT)]
    params = []
    for fan_in, fan_out in dims:
        key, kw, kb = jax.random.split(key, 3)
        bound = 1.0 / jnp.sqrt(fan_in)
        wgt = jax.random.uniform(kw, (fan_in, fan_out), jnp.float32, -bound, bound)
        bias = jax.random.uniform(kb, (1, fan_out), jnp.float32, -bound, bound)
        params.append((wgt, bias))
    return params


def _reference_forward(x, params):
    """Pure-JAX reference mirroring the kernel numerics (bf16 dot, f32 accum)."""
    b, c, w, h = x.shape
    z = x.reshape(b, FLAT)
    for idx, (wgt, bias) in enumerate(params):
        z = jnp.dot(z.astype(jnp.bfloat16), wgt.astype(jnp.bfloat16),
                    preferred_element_type=jnp.float32) + bias
        if idx < len(params) - 1:
            z = jnp.maximum(z, 0.0)
    return z.reshape(b, c, w, h)


if __name__ == "__main__":
    key = jax.random.PRNGKey(0)
    k_x, k_p = jax.random.split(key)

    # batch=2, channels=4, spatial=32x32 -> 4*32*32 = 4096 = TOKEN_LENGTH*EMBEDDING_SIZE
    x = jax.random.normal(k_x, (2, 4, 32, 32), dtype=jnp.float32)
    params = init_params(k_p)

    out = jax.block_until_ready(autoencoder_forward(x, params))

    ref = _reference_forward(x, params)
    assert out.shape == x.shape
    assert jnp.allclose(out, ref, atol=2e-2, rtol=2e-2), \
        float(jnp.max(jnp.abs(out - ref)))

    print("KERNEL_OK")
</pallas_src>

<mosaic_0001>
module attributes {stable_mosaic.version = 11 : i64} {
  func.func @_mlp_kernel(%arg0: i32, %arg1: memref<8x4096xf32, #tpu.memory_space<vmem>>, %arg2: memref<4096x256xbf16, #tpu.memory_space<vmem>>, %arg3: memref<1x256xf32, #tpu.memory_space<vmem>>, %arg4: memref<256x256xbf16, #tpu.memory_space<vmem>>, %arg5: memref<1x256xf32, #tpu.memory_space<vmem>>, %arg6: memref<256x256xbf16, #tpu.memory_space<vmem>>, %arg7: memref<1x256xf32, #tpu.memory_space<vmem>>, %arg8: memref<256x4096xbf16, #tpu.memory_space<vmem>>, %arg9: memref<1x4096xf32, #tpu.memory_space<vmem>>, %arg10: memref<8x4096xf32, #tpu.memory_space<vmem>>) attributes {dimension_semantics = [#tpu.dimension_semantics<parallel>], iteration_bounds = array<i64: 1>, scalar_prefetch = 0 : i64, scratch_operands = 0 : i64, tpu.core_type = #tpu.core_type<tc>, window_params = [{transform_indices = @transform_0, window_bounds = array<i64: 8, 4096>}, {pipeline_mode = #tpu.pipeline_mode<synchronous>, transform_indices = @transform_1, window_bounds = array<i64: 4096, 256>}, {pipeline_mode = #tpu.pipeline_mode<synchronous>, transform_indices = @transform_2, window_bounds = array<i64: 1, 256>}, {pipeline_mode = #tpu.pipeline_mode<synchronous>, transform_indices = @transform_3, window_bounds = array<i64: 256, 256>}, {pipeline_mode = #tpu.pipeline_mode<synchronous>, transform_indices = @transform_4, window_bounds = array<i64: 1, 256>}, {pipeline_mode = #tpu.pipeline_mode<synchronous>, transform_indices = @transform_5, window_bounds = array<i64: 256, 256>}, {pipeline_mode = #tpu.pipeline_mode<synchronous>, transform_indices = @transform_6, window_bounds = array<i64: 1, 256>}, {pipeline_mode = #tpu.pipeline_mode<synchronous>, transform_indices = @transform_7, window_bounds = array<i64: 256, 4096>}, {pipeline_mode = #tpu.pipeline_mode<synchronous>, transform_indices = @transform_8, window_bounds = array<i64: 1, 4096>}, {transform_indices = @transform_9, window_bounds = array<i64: 8, 4096>}]} {
    %c0 = arith.constant 0 : index
    %c0_0 = arith.constant 0 : index
    %0 = vector.load %arg1[%c0, %c0_0] : memref<8x4096xf32, #tpu.memory_space<vmem>>, vector<8x4096xf32>
    %1 = arith.truncf %0 : vector<8x4096xf32> to vector<8x4096xbf16>
    %c0_1 = arith.constant 0 : index
    %c0_2 = arith.constant 0 : index
    %2 = vector.load %arg2[%c0_1, %c0_2] : memref<4096x256xbf16, #tpu.memory_space<vmem>>, vector<4096x256xbf16>
    %cst = arith.constant dense<0.000000e+00> : vector<8x256xf32>
    %3 = tpu.matmul %1, %2, %cst {dimension_numbers = #tpu.dot_dimension_numbers<[1], [0], [0], [1], [0, 0, 1, 1], [], []>} : vector<8x4096xbf16>, vector<4096x256xbf16>, vector<8x256xf32> -> vector<8x256xf32>
    %c0_3 = arith.constant 0 : index
    %c0_4 = arith.constant 0 : index
    %4 = vector.load %arg3[%c0_3, %c0_4] : memref<1x256xf32, #tpu.memory_space<vmem>>, vector<1x256xf32>
    %5 = vector.broadcast %4 : vector<1x256xf32> to vector<8x256xf32>
    %6 = arith.addf %3, %5 : vector<8x256xf32>
    %cst_5 = arith.constant 0.000000e+00 : f32
    %7 = vector.broadcast %cst_5 : f32 to vector<8x256xf32>
    %8 = arith.maximumf %6, %7 : vector<8x256xf32>
    %9 = arith.truncf %8 : vector<8x256xf32> to vector<8x256xbf16>
    %c0_6 = arith.constant 0 : index
    %c0_7 = arith.constant 0 : index
    %10 = vector.load %arg4[%c0_6, %c0_7] : memref<256x256xbf16, #tpu.memory_space<vmem>>, vector<256x256xbf16>
    %cst_8 = arith.constant dense<0.000000e+00> : vector<8x256xf32>
    %11 = tpu.matmul %9, %10, %cst_8 {dimension_numbers = #tpu.dot_dimension_numbers<[1], [0], [0], [1], [0, 0, 1, 1], [], []>} : vector<8x256xbf16>, vector<256x256xbf16>, vector<8x256xf32> -> vector<8x256xf32>
    %c0_9 = arith.constant 0 : index
    %c0_10 = arith.constant 0 : index
    %12 = vector.load %arg5[%c0_9, %c0_10] : memref<1x256xf32, #tpu.memory_space<vmem>>, vector<1x256xf32>
    %13 = vector.broadcast %12 : vector<1x256xf32> to vector<8x256xf32>
    %14 = arith.addf %11, %13 : vector<8x256xf32>
    %cst_11 = arith.constant 0.000000e+00 : f32
    %15 = vector.broadcast %cst_11 : f32 to vector<8x256xf32>
    %16 = arith.maximumf %14, %15 : vector<8x256xf32>
    %17 = arith.truncf %16 : vector<8x256xf32> to vector<8x256xbf16>
    %c0_12 = arith.constant 0 : index
    %c0_13 = arith.constant 0 : index
    %18 = vector.load %arg6[%c0_12, %c0_13] : memref<256x256xbf16, #tpu.memory_space<vmem>>, vector<256x256xbf16>
    %cst_14 = arith.constant dense<0.000000e+00> : vector<8x256xf32>
    %19 = tpu.matmul %17, %18, %cst_14 {dimension_numbers = #tpu.dot_dimension_numbers<[1], [0], [0], [1], [0, 0, 1, 1], [], []>} : vector<8x256xbf16>, vector<256x256xbf16>, vector<8x256xf32> -> vector<8x256xf32>
    %c0_15 = arith.constant 0 : index
    %c0_16 = arith.constant 0 : index
    %20 = vector.load %arg7[%c0_15, %c0_16] : memref<1x256xf32, #tpu.memory_space<vmem>>, vector<1x256xf32>
    %21 = vector.broadcast %20 : vector<1x256xf32> to vector<8x256xf32>
    %22 = arith.addf %19, %21 : vector<8x256xf32>
    %cst_17 = arith.constant 0.000000e+00 : f32
    %23 = vector.broadcast %cst_17 : f32 to vector<8x256xf32>
    %24 = arith.maximumf %22, %23 : vector<8x256xf32>
    %25 = arith.truncf %24 : vector<8x256xf32> to vector<8x256xbf16>
    %c0_18 = arith.constant 0 : index
    %c0_19 = arith.constant 0 : index
    %26 = vector.load %arg8[%c0_18, %c0_19] : memref<256x4096xbf16, #tpu.memory_space<vmem>>, vector<256x4096xbf16>
    %cst_20 = arith.constant dense<0.000000e+00> : vector<8x4096xf32>
    %27 = tpu.matmul %25, %26, %cst_20 {dimension_numbers = #tpu.dot_dimension_numbers<[1], [0], [0], [1], [0, 0, 1, 1], [], []>} : vector<8x256xbf16>, vector<256x4096xbf16>, vector<8x4096xf32> -> vector<8x4096xf32>
    %c0_21 = arith.constant 0 : index
    %c0_22 = arith.constant 0 : index
    %28 = vector.load %arg9[%c0_21, %c0_22] : memref<1x4096xf32, #tpu.memory_space<vmem>>, vector<1x4096xf32>
    %29 = vector.broadcast %28 : vector<1x4096xf32> to vector<8x4096xf32>
    %30 = arith.addf %27, %29 : vector<8x4096xf32>
    %c0_23 = arith.constant 0 : index
    %c0_24 = arith.constant 0 : index
    %31 = vector.load %arg10[%c0_23, %c0_24] : memref<8x4096xf32, #tpu.memory_space<vmem>>, vector<8x4096xf32>
    tpu.vector_store %arg10[%c0_23, %c0_24], %30 {strides = array<i32>} : memref<8x4096xf32, #tpu.memory_space<vmem>>, vector<8x4096xf32>,
    return
  }
  func.func @transform_0(%arg0: i32) -> (i32, i32) {
    %c0_i32 = arith.constant 0 : i32
    %c0_i32_0 = arith.constant 0 : i32
    return %arg0, %c0_i32 : i32, i32
  }
  func.func @transform_1(%arg0: i32) -> (i32, i32) {
    %c0_i32 = arith.constant 0 : i32
    %c0_i32_0 = arith.constant 0 : i32
    %c0_i32_1 = arith.constant 0 : i32
    return %c0_i32, %c0_i32_0 : i32, i32
  }
  func.func @transform_2(%arg0: i32) -> (i32, i32) {
    %c0_i32 = arith.constant 0 : i32
    %c0_i32_0 = arith.constant 0 : i32
    %c0_i32_1 = arith.constant 0 : i32
    return %c0_i32, %c0_i32_0 : i32, i32
  }
  func.func @transform_3(%arg0: i32) -> (i32, i32) {
    %c0_i32 = arith.constant 0 : i32
    %c0_i32_0 = arith.constant 0 : i32
    %c0_i32_1 = arith.constant 0 : i32
    return %c0_i32, %c0_i32_0 : i32, i32
  }
  func.func @transform_4(%arg0: i32) -> (i32, i32) {
    %c0_i32 = arith.constant 0 : i32
    %c0_i32_0 = arith.constant 0 : i32
    %c0_i32_1 = arith.constant 0 : i32
    return %c0_i32, %c0_i32_0 : i32, i32
  }
  func.func @transform_5(%arg0: i32) -> (i32, i32) {
    %c0_i32 = arith.constant 0 : i32
    %c0_i32_0 = arith.constant 0 : i32
    %c0_i32_1 = arith.constant 0 : i32
    return %c0_i32, %c0_i32_0 : i32, i32
  }
  func.func @transform_6(%arg0: i32) -> (i32, i32) {
    %c0_i32 = arith.constant 0 : i32
    %c0_i32_0 = arith.constant 0 : i32
    %c0_i32_1 = arith.constant 0 : i32
    return %c0_i32, %c0_i32_0 : i32, i32
  }
  func.func @transform_7(%arg0: i32) -> (i32, i32) {
    %c0_i32 = arith.constant 0 : i32
    %c0_i32_0 = arith.constant 0 : i32
    %c0_i32_1 = arith.constant 0 : i32
    return %c0_i32, %c0_i32_0 : i32, i32
  }
  func.func @transform_8(%arg0: i32) -> (i32, i32) {
    %c0_i32 = arith.constant 0 : i32
    %c0_i32_0 = arith.constant 0 : i32
    %c0_i32_1 = arith.constant 0 : i32
    return %c0_i32, %c0_i32_0 : i32, i32
  }
  func.func @transform_9(%arg0: i32) -> (i32, i32) {
    %c0_i32 = arith.constant 0 : i32
    %c0_i32_0 = arith.constant 0 : i32
    return %arg0, %c0_i32 : i32, i32
  }
}

</mosaic_0001>

<bundles_post_ra>
// kernel: tpu_custom_call.1
= control target key start
LH: loop header
LB: loop body
LE: loop exit
PB: predicated region body
PF: predicated region fallthrough
CT: control target
= control target key end

     0   :  { %14 = vsyncpa [#allocation3], 0  ;;  %s10992_s0 = inlined_call_operand.hbm [shape: f32[8,4096], index: 0, kind: input, shape index: {}]   ;;  %s10993_s1 = inlined_call_operand.hbm [shape: bf16[4096,256], index: 1, kind: input, shape index: {}]   ;;  %s10994_s2 = inlined_call_operand.hbm [shape: f32[1,256], index: 2, kind: input, shape index: {}]   ;;  %s10995_s3 = inlined_call_operand.hbm [shape: bf16[256,256], index: 3, kind: input, shape index: {}]   ;;  %s10996_s4 = inlined_call_operand.hbm [shape: f32[1,256], index: 4, kind: input, shape index: {}]   ;;  %s10997_s5 = inlined_call_operand.hbm [shape: bf16[256,256], index: 5, kind: input, shape index: {}]   ;;  %s10998_s6 = inlined_call_operand.hbm [shape: f32[1,256], index: 6, kind: input, shape index: {}]   ;;  %s10999_s7 = inlined_call_operand.hbm [shape: bf16[256,4096], index: 7, kind: input, shape index: {}]   ;;  %s11000_s8 = inlined_call_operand.hbm [shape: f32[1,4096], index: 8, kind: input, shape index: {}]   ;;  %s11001_s9 = inlined_call_operand.hbm [shape: f32[8,4096], index: 9, kind: output, shape index: {}]  }
   0x1   :  { %15 = vsyncpa [#allocation6], 0 }
   0x2   :  { %16 = vsyncpa [#allocation9], 0 }
   0x3   :  { %17 = vsyncpa [#allocation12], 0 }
   0x4   :  { %18 = vsyncpa [#allocation15], 0 }
   0x5   :  { %19 = vsyncpa [#allocation4], 0  ;;  %s10658_s30 = smov [#allocation5]   ;;  %s10426_s13 = scalar_lea.hbm %s10993_s1, 65536 }
   0x6   :  { %s35_s10 = sshll.u32 %s10658_s30, 4  ;;  %p10427_p0 = scmp.ne.s32.totalorder %s10993_s1, %s10426_s13  ;;  %s36_s10 = int_to_ptr.vmem [resolvable:$true] %s35_s10 }
   0x7   :  { %p10430_p1 = scmp.lt.u32.totalorder %s10426_s13, %s10993_s1 }
   0x9   :  { %p10432_p2 = pnand %p10430_p1, %p10427_p0 }
   0xb   :  { %10435 = shalt.err (!%p10432_p2)
}
   0xc   :  { %s10436_s18 = scalar_lea.vmem %s36_s10, 65536  ;;  %p10441_p4 = scmp.lt.s32.totalorder %s36_s10, %s36_s10 }
   0xd   :  { %p10437_p3 = scmp.ne.s32.totalorder %s36_s10, %s10436_s18  ;;  %p10442_p5 = scmp.lt.s32.totalorder %s10436_s18, %s10436_s18 }
   0xf   :  { %p10443_p6 = por %p10442_p5, %p10441_p4 }
  0x11   :  { %p10444_p7 = pnand %p10443_p6, %p10437_p3 }
  0x13   :  { %10447 = shalt.err (!%p10444_p7)
}
  0x14   :  { %s10659_s19 = smov 128   ;;  %s10660_s20 = smov 8  }
  0x15   :  { %41 = dma.hbm_to_vmem [thread:$0]  %s10993_s1, 65536, %s36_s10, [#allocation6], %s10659_s19, %s10659_s19, %s10660_s20  }
  0x16   :  { %s10661_s23 = smov [#allocation8]   ;;  %s10662_s25 = smov [#allocation11]  }
  0x17   :  { %s57_s24 = sshll.u32 %s10661_s23, 4  ;;  %s79_s26 = sshll.u32 %s10662_s25, 4  ;;  %s58_s24 = int_to_ptr.vmem [resolvable:$true] %s57_s24  ;;  %s80_s26 = int_to_ptr.vmem [resolvable:$true] %s79_s26 }
  0x18   :  { %s10448_s29 = scalar_lea.hbm %s10995_s3, 4096 }
  0x19   :  { %p10449_p8 = scmp.ne.s32.totalorder %s10995_s3, %s10448_s29  ;;  %p10452_p9 = scmp.lt.u32.totalorder %s10448_s29, %s10995_s3 }
  0x1b   :  { %p10454_p10 = pnand %p10452_p9, %p10449_p8 }
  0x1d   :  { %10457 = shalt.err (!%p10454_p10)
}
  0x1e   :  { %s10458_s1 = scalar_lea.vmem %s58_s24, 4096  ;;  %p10463_p12 = scmp.lt.s32.totalorder %s58_s24, %s58_s24 }
  0x1f   :  { %p10459_p11 = scmp.ne.s32.totalorder %s58_s24, %s10458_s1  ;;  %p10464_p13 = scmp.lt.s32.totalorder %s10458_s1, %s10458_s1 }
  0x21   :  { %p10465_p0 = por %p10464_p13, %p10463_p12 }
  0x23   :  { %p10466_p1 = pnand %p10465_p0, %p10459_p11 }
  0x25   :  { %10469 = shalt.err (!%p10466_p1)
}
  0x26   :  { %63 = dma.hbm_to_vmem [thread:$0]  %s10995_s3, 4096, %s58_s24, [#allocation9], %s10659_s19, %s10659_s19, %s10660_s20  }
  0x27   :  { %s10470_s17 = scalar_lea.hbm %s10997_s5, 4096 }
  0x28   :  { %p10471_p2 = scmp.ne.s32.totalorder %s10997_s5, %s10470_s17  ;;  %p10474_p3 = scmp.lt.u32.totalorder %s10470_s17, %s10997_s5 }
  0x2a   :  { %p10476_p4 = pnand %p10474_p3, %p10471_p2 }
  0x2c   :  { %10479 = shalt.err (!%p10476_p4)
}
  0x2d   :  { %s10480_s25 = scalar_lea.vmem %s80_s26, 4096  ;;  %p10485_p6 = scmp.lt.s32.totalorder %s80_s26, %s80_s26 }
  0x2e   :  { %p10481_p5 = scmp.ne.s32.totalorder %s80_s26, %s10480_s25  ;;  %p10486_p7 = scmp.lt.s32.totalorder %s10480_s25, %s10480_s25 }
  0x30   :  { %p10487_p8 = por %p10486_p7, %p10485_p6 }
  0x32   :  { %p10488_p9 = pnand %p10487_p8, %p10481_p5 }
  0x34   :  { %10491 = shalt.err (!%p10488_p9)
}
  0x35   :  { %85 = dma.hbm_to_vmem [thread:$0]  %s10997_s5, 4096, %s80_s26, [#allocation12], %s10659_s19, %s10659_s19, %s10660_s20  }
  0x36   :  { %s10663_s27 = smov [#allocation14]   ;;  %s10492_s11 = scalar_lea.hbm %s10999_s7, 65536 }
  0x37   :  { %s101_s28 = sshll.u32 %s10663_s27, 4  ;;  %p10493_p10 = scmp.ne.s32.totalorder %s10999_s7, %s10492_s11  ;;  %s102_s28 = int_to_ptr.vmem [resolvable:$true] %s101_s28 }
  0x38   :  { %p10496_p11 = scmp.lt.u32.totalorder %s10492_s11, %s10999_s7 }
  0x3a   :  { %p10498_p12 = pnand %p10496_p11, %p10493_p10 }
  0x3c   :  { %10501 = shalt.err (!%p10498_p12)
}
  0x3d   :  { %s10502_s14 = scalar_lea.vmem %s102_s28, 65536  ;;  %p10507_p0 = scmp.lt.s32.totalorder %s102_s28, %s102_s28 }
  0x3e   :  { %p10503_p13 = scmp.ne.s32.totalorder %s102_s28, %s10502_s14  ;;  %p10508_p1 = scmp.lt.s32.totalorder %s10502_s14, %s10502_s14 }
  0x40   :  { %p10509_p2 = por %p10508_p1, %p10507_p0 }
  0x42   :  { %p10510_p3 = pnand %p10509_p2, %p10503_p13 }
  0x44   :  { %10513 = shalt.err (!%p10510_p3)
}
  0x45   :  { %s10664_s5 = smov 2048   ;;  %s10665_s15 = smov [#allocation2]  }
  0x46   :  { %107 = dma.hbm_to_vmem [thread:$0]  %s10999_s7, 65536, %s102_s28, [#allocation15], %s10664_s5, %s10664_s5, %s10659_s19  }
  0x47   :  { %s26_s16 = sshll.u32 %s10665_s15, 4  ;;  %s10666_s17 = smov [#allocation7]   ;;  %s27_s16 = int_to_ptr.vmem [resolvable:$true] %s26_s16 }
  0x48   :  { %s48_s18 = sshll.u32 %s10666_s17, 4  ;;  %s10514_s23 = scalar_lea.hbm %s10992_s0, 4096  ;;  %s49_s18 = int_to_ptr.vmem [resolvable:$true] %s48_s18 }
  0x49   :  { %p10515_p4 = scmp.ne.s32.totalorder %s10992_s0, %s10514_s23  ;;  %p10518_p5 = scmp.lt.u32.totalorder %s10514_s23, %s10992_s0 }
  0x4b   :  { %p10520_p6 = pnand %p10518_p5, %p10515_p4 }
  0x4d   :  { %10523 = shalt.err (!%p10520_p6)
}
  0x4e   :  { %s10524_s7 = scalar_lea.vmem %s27_s16, 4096  ;;  %p10529_p8 = scmp.lt.s32.totalorder %s27_s16, %s27_s16 }
  0x4f   :  { %p10525_p7 = scmp.ne.s32.totalorder %s27_s16, %s10524_s7  ;;  %p10530_p9 = scmp.lt.s32.totalorder %s10524_s7, %s10524_s7 }
  0x51   :  { %p10531_p10 = por %p10530_p9, %p10529_p8 }
  0x53   :  { %p10532_p11 = pnand %p10531_p10, %p10525_p7 }
  0x55   :  { %10535 = shalt.err (!%p10532_p11)
}
  0x56   :  { %29 = dma.hbm_to_vmem [thread:$0]  %s10992_s0, 4096, %s27_s16, [#allocation3]  }
  0x57   :  { %s10536_s11 = scalar_lea.hbm %s10994_s2, 32 }
  0x58   :  { %p10537_p12 = scmp.ne.s32.totalorder %s10994_s2, %s10536_s11  ;;  %p10540_p13 = scmp.lt.u32.totalorder %s10536_s11, %s10994_s2 }
  0x5a   :  { %p10542_p0 = pnand %p10540_p13, %p10537_p12 }
  0x5c   :  { %10545 = shalt.err (!%p10542_p0)
}
  0x5d   :  { %s10546_s14 = scalar_lea.vmem %s49_s18, 32  ;;  %p10551_p2 = scmp.lt.s32.totalorder %s49_s18, %s49_s18 }
  0x5e   :  { %p10547_p1 = scmp.ne.s32.totalorder %s49_s18, %s10546_s14  ;;  %p10552_p3 = scmp.lt.s32.totalorder %s10546_s14, %s10546_s14 }
  0x60   :  { %p10553_p4 = por %p10552_p3, %p10551_p2 }
  0x62   :  { %p10554_p5 = pnand %p10553_p4, %p10547_p1 }
  0x64   :  { %10557 = shalt.err (!%p10554_p5)
}
  0x65   :  { %51 = dma.hbm_to_vmem [thread:$0]  %s10994_s2, 32, %s49_s18, [#allocation6]  }
  0x66   :  { %s10667_s20 = smov [#allocation10]   ;;  %s10668_s15 = smov [#allocation13]  }
  0x67   :  { %s70_s26 = sshll.u32 %s10667_s20, 4  ;;  %s92_s16 = sshll.u32 %s10668_s15, 4  ;;  %s71_s26 = int_to_ptr.vmem [resolvable:$true] %s70_s26  ;;  %s93_s16 = int_to_ptr.vmem [resolvable:$true] %s92_s16 }
  0x68   :  { %s10558_s22 = scalar_lea.hbm %s10996_s4, 32 }
  0x69   :  { %p10559_p6 = scmp.ne.s32.totalorder %s10996_s4, %s10558_s22  ;;  %p10562_p7 = scmp.lt.u32.totalorder %s10558_s22, %s10996_s4 }
  0x6b   :  { %p10564_p8 = pnand %p10562_p7, %p10559_p6 }
  0x6d   :  { %10567 = shalt.err (!%p10564_p8)
}
  0x6e   :  { %s10568_s2 = scalar_lea.vmem %s71_s26, 32  ;;  %p10573_p10 = scmp.lt.s32.totalorder %s71_s26, %s71_s26 }
  0x6f   :  { %p10569_p9 = scmp.ne.s32.totalorder %s71_s26, %s10568_s2  ;;  %p10574_p11 = scmp.lt.s32.totalorder %s10568_s2, %s10568_s2 }
  0x71   :  { %p10575_p12 = por %p10574_p11, %p10573_p10 }
  0x73   :  { %p10576_p13 = pnand %p10575_p12, %p10569_p9 }
  0x75   :  { %10579 = shalt.err (!%p10576_p13)
}
  0x76   :  { %73 = dma.hbm_to_vmem [thread:$0]  %s10996_s4, 32, %s71_s26, [#allocation9]  }
  0x77   :  { %s10580_s28 = scalar_lea.hbm %s10998_s6, 32 }
  0x78   :  { %p10581_p0 = scmp.ne.s32.totalorder %s10998_s6, %s10580_s28  ;;  %p10584_p1 = scmp.lt.u32.totalorder %s10580_s28, %s10998_s6 }
  0x7a   :  { %p10586_p2 = pnand %p10584_p1, %p10581_p0 }
  0x7c   :  { %10589 = shalt.err (!%p10586_p2)
}
  0x7d   :  { %s10590_s13 = scalar_lea.vmem %s93_s16, 32  ;;  %p10595_p4 = scmp.lt.s32.totalorder %s93_s16, %s93_s16 }
  0x7e   :  { %p10591_p3 = scmp.ne.s32.totalorder %s93_s16, %s10590_s13  ;;  %p10596_p5 = scmp.lt.s32.totalorder %s10590_s13, %s10590_s13 }
  0x80   :  { %p10597_p6 = por %p10596_p5, %p10595_p4 }
  0x82   :  { %p10598_p7 = pnand %p10597_p6, %p10591_p3 }
  0x84   :  { %10601 = shalt.err (!%p10598_p7)
}
  0x85   :  { %95 = dma.hbm_to_vmem [thread:$0]  %s10998_s6, 32, %s93_s16, [#allocation12]  }
  0x86   :  { %s10669_s10 = smov [#allocation16]   ;;  %s10602_s20 = scalar_lea.hbm %s11000_s8, 512 }
  0x87   :  { %s114_s14 = sshll.u32 %s10669_s10, 4  ;;  %p10603_p8 = scmp.ne.s32.totalorder %s11000_s8, %s10602_s20  ;;  %s115_s14 = int_to_ptr.vmem [resolvable:$true] %s114_s14 }
  0x88   :  { %p10606_p9 = scmp.lt.u32.totalorder %s10602_s20, %s11000_s8 }
  0x8a   :  { %p10608_p10 = pnand %p10606_p9, %p10603_p8 }
  0x8c   :  { %10611 = shalt.err (!%p10608_p10)
}
  0x8d   :  { %s10612_s22 = scalar_lea.vmem %s115_s14, 512  ;;  %p10617_p12 = scmp.lt.s32.totalorder %s115_s14, %s115_s14 }
  0x8e   :  { %p10613_p11 = scmp.ne.s32.totalorder %s115_s14, %s10612_s22  ;;  %p10618_p13 = scmp.lt.s32.totalorder %s10612_s22, %s10612_s22 }
  0x90   :  { %p10619_p0 = por %p10618_p13, %p10617_p12 }
  0x92   :  { %p10620_p1 = pnand %p10619_p0, %p10613_p11 }
  0x94   :  { %10623 = shalt.err (!%p10620_p1)
}
  0x95   :  { %117 = dma.hbm_to_vmem [thread:$0]  %s11000_s8, 512, %s115_s14, [#allocation15]  }
  0x96   :  { %10646 = dma.done.wait [#allocation3], 4096  }
  0x97   :  { %10647 = vsyncadd [#allocation3], 4294963200 }
  0x98   :  { %10648 = dma.done.wait [#allocation6], 65568  }
  0x99   :  { %10649 = vsyncadd [#allocation6], 4294901728 }
  0x9a   :  { %10650 = dma.done.wait [#allocation9], 4128  }
  0x9b   :  { %10651 = vsyncadd [#allocation9], 4294963168 }
  0x9c   :  { %10652 = dma.done.wait [#allocation12], 4128  }
  0x9d   :  { %10653 = vsyncadd [#allocation12], 4294963168 }
  0x9e   :  { %10654 = dma.done.wait [#allocation15], 66048  }
  0x9f   :  { %10655 = vsyncadd [#allocation15], 4294901248  ;;  %v9561_v0 = vld [vmem:[#allocation5 + $0x4] ss:$8 sps:$4 sm:$0xff]   ;;  %v9563_v1 = vld [vmem:[#allocation5] ss:$8 sps:$4 sm:$0xff]  }
  0xa0   :  { %3293 = vmatprep.subr.bf16.mxu0 %v9561_v0  ;;  %v9564_v2 = vld [vmem:[#allocation5 + $0x14] ss:$8 sps:$4 sm:$0xff]   ;;  %v9566_v3 = vld [vmem:[#allocation5 + $0x10] ss:$8 sps:$4 sm:$0xff]   ;;  %v9567_v4 = vld [vmem:[#allocation5 + $0x24] ss:$8 sps:$4 sm:$0xff]  }
  0xa1   :  { %3294 = vmatpush1.bf16.msra.mxu0 %v9563_v1  ;;  %v9569_v5 = vld [vmem:[#allocation5 + $0x20] ss:$8 sps:$4 sm:$0xff]   ;;  %v9570_v6 = vld [vmem:[#allocation5 + $0x34] ss:$8 sps:$4 sm:$0xff]   ;;  %v9572_v7 = vld [vmem:[#allocation5 + $0x30] ss:$8 sps:$4 sm:$0xff]  }
  0xa2   :  { %3295 = vmatprep.subr.bf16.mxu0 %v9564_v2  ;;  %v9573_v8 = vld [vmem:[#allocation5 + $0x44] ss:$8 sps:$4 sm:$0xff]   ;;  %v9575_v9 = vld [vmem:[#allocation5 + $0x40] ss:$8 sps:$4 sm:$0xff]   ;;  %v9576_v10 = vld [vmem:[#allocation5 + $0x54] ss:$8 sps:$4 sm:$0xff]  }
  0xa3   :  { %v9578_v11 = vld [vmem:[#allocation5 + $0x50] ss:$8 sps:$4 sm:$0xff]   ;;  %v9579_v12 = vld [vmem:[#allocation5 + $0x64] ss:$8 sps:$4 sm:$0xff]   ;;  %v9581_v15 = vld [vmem:[#allocation5 + $0x60] ss:$8 sps:$4 sm:$0xff]  }
  0xa4   :  { %v146_v13 = vld [vmem:[#allocation2 + $0x8] sm:$0xff]  ;;  %v9582_v16 = vld [vmem:[#allocation5 + $0x74] ss:$8 sps:$4 sm:$0xff]   ;;  %v9584_v17 = vld [vmem:[#allocation5 + $0x70] ss:$8 sps:$4 sm:$0xff]   ;;  %s10670_s8 = smov [#allocation17]  }
  0xa5   :  { %3296 = vmatpush1.bf16.msra.mxu0 %v9566_v3  ;;  %v178_v14 = vpack.c.bf16 %v146_v13, %v146_v13  ;;  %v9585_v18 = vld [vmem:[#allocation5 + $0x84] ss:$8 sps:$4 sm:$0xff]   ;;  %v9587_v19 = vld [vmem:[#allocation5 + $0x80] ss:$8 sps:$4 sm:$0xff]   ;;  %v9588_v20 = vld [vmem:[#allocation5 + $0x94] ss:$8 sps:$4 sm:$0xff]  }
  0xa6   :  { %3297 = vmatprep.subr.bf16.mxu0 %v9567_v4  ;;  %v9590_v21 = vld [vmem:[#allocation5 + $0x90] ss:$8 sps:$4 sm:$0xff]   ;;  %v9591_v22 = vld [vmem:[#allocation5 + $0xa4] ss:$8 sps:$4 sm:$0xff]   ;;  %v9593_v23 = vld [vmem:[#allocation5 + $0xa0] ss:$8 sps:$4 sm:$0xff]  }
  0xa7   :  { %3325 = vmatprep.mubr.bf16.mxu0 %v178_v14  ;;  %v9594_v24 = vld [vmem:[#allocation5 + $0xb4] ss:$8 sps:$4 sm:$0xff]   ;;  %v9596_v25 = vld [vmem:[#allocation5 + $0xb0] ss:$8 sps:$4 sm:$0xff]   ;;  %v9597_v26 = vld [vmem:[#allocation5 + $0xc4] ss:$8 sps:$4 sm:$0xff]  }
  0xa8   :  { %v9599_v27 = vld [vmem:[#allocation5 + $0xc0] ss:$8 sps:$4 sm:$0xff]   ;;  %v9600_v28 = vld [vmem:[#allocation5 + $0xd4] ss:$8 sps:$4 sm:$0xff]   ;;  %v9602_v29 = vld [vmem:[#allocation5 + $0xd0] ss:$8 sps:$4 sm:$0xff]  }
  0xa9   :  { %3298 = vmatpush1.bf16.msra.mxu0 %v9569_v5  ;;  %v9603_v30 = vld [vmem:[#allocation5 + $0xe4] ss:$8 sps:$4 sm:$0xff]   ;;  %v9605_v31 = vld [vmem:[#allocation5 + $0xe0] ss:$8 sps:$4 sm:$0xff]   ;;  %v9606_v32 = vld [vmem:[#allocation5 + $0xf4] ss:$8 sps:$4 sm:$0xff]  }
  0xaa   :  { %3299 = vmatprep.subr.bf16.mxu0 %v9570_v6  ;;  %v9608_v33 = vld [vmem:[#allocation5 + $0xf0] ss:$8 sps:$4 sm:$0xff]   ;;  %v9611_v34 = vld [vmem:[#allocation5 + $0x104] ss:$8 sps:$4 sm:$0xff]   ;;  %v9609_v38 = vld [vmem:[#allocation5 + $0x100] ss:$8 sps:$4 sm:$0xff]  }
  0xab   :  { %v145_v35 = vld [vmem:[#allocation2] sm:$0xff]  ;;  %v148_v36 = vld [vmem:[#allocation2 + $0x18] sm:$0xff]  ;;  %s8385_s23 = sshll.u32 %s10670_s8, 4  ;;  %s8386_s23 = int_to_ptr.vmem [resolvable:$true] %s8385_s23 }
  0xac   :  { %v177_v37 = vpack.c.bf16 %v145_v35, %v145_v35  ;;  %v180_v39 = vpack.c.bf16 %v148_v36, %v148_v36  ;;  %v9614_v40 = vld [vmem:[#allocation5 + $0x114] ss:$8 sps:$4 sm:$0xff]   ;;  %v9612_v41 = vld [vmem:[#allocation5 + $0x110] ss:$8 sps:$4 sm:$0xff]   ;;  %v9617_v42 = vld [vmem:[#allocation5 + $0x124] ss:$8 sps:$4 sm:$0xff]   ;;  %p10629_p3 = scmp.lt.s32.totalorder %s8386_s23, %s8386_s23 }
  0xad   :  { %3300 = vmatpush1.bf16.msra.mxu0 %v9572_v7  ;;  %v9615_v43 = vld [vmem:[#allocation5 + $0x120] ss:$8 sps:$4 sm:$0xff]   ;;  %v9620_v44 = vld [vmem:[#allocation5 + $0x134] ss:$8 sps:$4 sm:$0xff]   ;;  %v9618_v45 = vld [vmem:[#allocation5 + $0x130] ss:$8 sps:$4 sm:$0xff]  }
  0xae   :  { %3301 = vmatprep.subr.bf16.mxu0 %v9573_v8  ;;  %v9623_v46 = vld [vmem:[#allocation5 + $0x144] ss:$8 sps:$4 sm:$0xff]   ;;  %v9621_v47 = vld [vmem:[#allocation5 + $0x140] ss:$8 sps:$4 sm:$0xff]   ;;  %v9626_v48 = vld [vmem:[#allocation5 + $0x154] ss:$8 sps:$4 sm:$0xff]  }
  0xaf   :  { %v9624_v49 = vld [vmem:[#allocation5 + $0x150] ss:$8 sps:$4 sm:$0xff]   ;;  %v9629_v50 = vld [vmem:[#allocation5 + $0x164] ss:$8 sps:$4 sm:$0xff]   ;;  %v9627_v51 = vld [vmem:[#allocation5 + $0x160] ss:$8 sps:$4 sm:$0xff]  }
  0xb0   :  { %v9632_v52 = vld [vmem:[#allocation5 + $0x174] ss:$8 sps:$4 sm:$0xff]   ;;  %v9630_v53 = vld [vmem:[#allocation5 + $0x170] ss:$8 sps:$4 sm:$0xff]   ;;  %v9635_v54 = vld [vmem:[#allocation5 + $0x184] ss:$8 sps:$4 sm:$0xff]  }
  0xb1   :  { %3302 = vmatpush1.bf16.msra.mxu0 %v9575_v9  ;;  %v9633_v55 = vld [vmem:[#allocation5 + $0x180] ss:$8 sps:$4 sm:$0xff]   ;;  %v9638_v56 = vld [vmem:[#allocation5 + $0x194] ss:$8 sps:$4 sm:$0xff]   ;;  %v9636_v57 = vld [vmem:[#allocation5 + $0x190] ss:$8 sps:$4 sm:$0xff]  }
  0xb2   :  { %3303 = vmatprep.subr.bf16.mxu0 %v9576_v10  ;;  %v9641_v58 = vld [vmem:[#allocation5 + $0x1a4] ss:$8 sps:$4 sm:$0xff]   ;;  %v9639_v59 = vld [vmem:[#allocation5 + $0x1a0] ss:$8 sps:$4 sm:$0xff]   ;;  %v9644_v60 = vld [vmem:[#allocation5 + $0x1b4] ss:$8 sps:$4 sm:$0xff]  }
  0xb3   :  { %v9642_v61 = vld [vmem:[#allocation5 + $0x1b0] ss:$8 sps:$4 sm:$0xff]   ;;  %v9647_v62 = vld [vmem:[#allocation5 + $0x1c4] ss:$8 sps:$4 sm:$0xff]   ;;  %v9645_v63 = vld [vmem:[#allocation5 + $0x1c0] ss:$8 sps:$4 sm:$0xff]  }
  0xb4   :  { %v9650_v0 = vld [vmem:[#allocation5 + $0x1d4] ss:$8 sps:$4 sm:$0xff]   ;;  %v9648_v1 = vld [vmem:[#allocation5 + $0x1d0] ss:$8 sps:$4 sm:$0xff]   ;;  %v9653_v2 = vld [vmem:[#allocation5 + $0x1e4] ss:$8 sps:$4 sm:$0xff]  }
  0xb5   :  { %3304 = vmatpush1.bf16.msra.mxu0 %v9578_v11  ;;  %v9651_v3 = vld [vmem:[#allocation5 + $0x1e0] ss:$8 sps:$4 sm:$0xff]   ;;  %v9656_v4 = vld [vmem:[#allocation5 + $0x1f4] ss:$8 sps:$4 sm:$0xff]   ;;  %v9654_v5 = vld [vmem:[#allocation5 + $0x1f0] ss:$8 sps:$4 sm:$0xff]  }
  0xb6   :  { %3305 = vmatprep.subr.bf16.mxu0 %v9579_v12  ;;  %v9659_v6 = vld [vmem:[#allocation5 + $0x204] ss:$8 sps:$4 sm:$0xff]   ;;  %v147_v7 = vld [vmem:[#allocation2 + $0x10] sm:$0xff]  ;;  %v9657_v10 = vld [vmem:[#allocation5 + $0x200] ss:$8 sps:$4 sm:$0xff]   ;;  %s10624_s25 = scalar_lea.vmem %s8386_s23, 4096 }
  0xb7   :  { %v150_v8 = vld [vmem:[#allocation2 + $0x28] sm:$0xff]  ;;  %v179_v9 = vpack.c.bf16 %v147_v7, %v147_v7  ;;  %v9662_v12 = vld [vmem:[#allocation5 + $0x214] ss:$8 sps:$4 sm:$0xff]   ;;  %v9660_v13 = vld [vmem:[#allocation5 + $0x210] ss:$8 sps:$4 sm:$0xff]   ;;  %p10625_p2 = scmp.ne.s32.totalorder %s8386_s23, %s10624_s25  ;;  %p10630_p4 = scmp.lt.s32.totalorder %s10624_s25, %s10624_s25 }
  0xb8   :  { %v182_v11 = vpack.c.bf16 %v150_v8, %v150_v8  ;;  %v9665_v14 = vld [vmem:[#allocation5 + $0x224] ss:$8 sps:$4 sm:$0xff]   ;;  %v9693_v35 = vld [vmem:[#allocation5 + $0x2c0] ss:$8 sps:$4 sm:$0xff]   ;;  %v9698_v36 = vld [vmem:[#allocation5 + $0x2d4] ss:$8 sps:$4 sm:$0xff]  }
  0xb9   :  { %3306 = vmatpush1.bf16.msra.mxu0 %v9581_v15  ;;  %v9663_v15 = vld [vmem:[#allocation5 + $0x220] ss:$8 sps:$4 sm:$0xff]   ;;  %v9746_v8 = vld [vmem:[#allocation5 + $0x3d4] ss:$8 sps:$4 sm:$0xff]   ;;  %p10631_p5 = por %p10630_p4, %p10629_p3 }
  0xba   :  { %3307 = vmatprep.subr.bf16.mxu0 %v9582_v16  ;;  %v9668_v16 = vld [vmem:[#allocation5 + $0x234] ss:$8 sps:$4 sm:$0xff]   ;;  %v9741_v7 = vld [vmem:[#allocation5 + $0x3c0] ss:$8 sps:$4 sm:$0xff]  }
  0xbb   :  { %p10632_p6 = pnand %p10631_p5, %p10625_p2 }
  0xbd   :  { %3308 = vmatpush1.bf16.msra.mxu0 %v9584_v17  ;;  %v9666_v17 = vld [vmem:[#allocation5 + $0x230] ss:$8 sps:$4 sm:$0xff]  }
  0xbe   :  { %3309 = vmatprep.subr.bf16.mxu0 %v9585_v18  ;;  %v9671_v18 = vld [vmem:[#allocation5 + $0x244] ss:$8 sps:$4 sm:$0xff]  }
  0xc1   :  { %3310 = vmatpush1.bf16.msra.mxu0 %v9587_v19  ;;  %v9669_v19 = vld [vmem:[#allocation5 + $0x240] ss:$8 sps:$4 sm:$0xff]  }
  0xc2   :  { %3311 = vmatprep.subr.bf16.mxu0 %v9588_v20  ;;  %v9674_v20 = vld [vmem:[#allocation5 + $0x254] ss:$8 sps:$4 sm:$0xff]  }
  0xc5   :  { %3312 = vmatpush1.bf16.msra.mxu0 %v9590_v21  ;;  %v9672_v21 = vld [vmem:[#allocation5 + $0x250] ss:$8 sps:$4 sm:$0xff]  }
  0xc6   :  { %3313 = vmatprep.subr.bf16.mxu0 %v9591_v22  ;;  %v9677_v22 = vld [vmem:[#allocation5 + $0x264] ss:$8 sps:$4 sm:$0xff]  }
  0xc9   :  { %3314 = vmatpush1.bf16.msra.mxu0 %v9593_v23  ;;  %v9675_v23 = vld [vmem:[#allocation5 + $0x260] ss:$8 sps:$4 sm:$0xff]  }
  0xca   :  { %3315 = vmatprep.subr.bf16.mxu0 %v9594_v24  ;;  %v9680_v24 = vld [vmem:[#allocation5 + $0x274] ss:$8 sps:$4 sm:$0xff]  }
  0xcd   :  { %3316 = vmatpush1.bf16.msra.mxu0 %v9596_v25  ;;  %v9678_v25 = vld [vmem:[#allocation5 + $0x270] ss:$8 sps:$4 sm:$0xff]  }
  0xce   :  { %3317 = vmatprep.subr.bf16.mxu0 %v9597_v26  ;;  %v9683_v26 = vld [vmem:[#allocation5 + $0x284] ss:$8 sps:$4 sm:$0xff]  }
  0xd1   :  { %3318 = vmatpush1.bf16.msra.mxu0 %v9599_v27  ;;  %v9681_v27 = vld [vmem:[#allocation5 + $0x280] ss:$8 sps:$4 sm:$0xff]  }
  0xd2   :  { %3319 = vmatprep.subr.bf16.mxu0 %v9600_v28  ;;  %v9686_v28 = vld [vmem:[#allocation5 + $0x294] ss:$8 sps:$4 sm:$0xff]  }
  0xd5   :  { %3320 = vmatpush1.bf16.msra.mxu0 %v9602_v29  ;;  %v9684_v29 = vld [vmem:[#allocation5 + $0x290] ss:$8 sps:$4 sm:$0xff]  }
  0xd6   :  { %3321 = vmatprep.subr.bf16.mxu0 %v9603_v30  ;;  %v9689_v30 = vld [vmem:[#allocation5 + $0x2a4] ss:$8 sps:$4 sm:$0xff]  }
  0xd9   :  { %3322 = vmatpush1.bf16.msra.mxu0 %v9605_v31  ;;  %v9687_v31 = vld [vmem:[#allocation5 + $0x2a0] ss:$8 sps:$4 sm:$0xff]  }
  0xda   :  { %3323 = vmatprep.subr.bf16.mxu0 %v9606_v32  ;;  %v9692_v32 = vld [vmem:[#allocation5 + $0x2b4] ss:$8 sps:$4 sm:$0xff]  }
  0xdd   :  { %3324 = vmatpush1.bf16.msra.mxu0 %v9608_v33  ;;  %v9690_v33 = vld [vmem:[#allocation5 + $0x2b0] ss:$8 sps:$4 sm:$0xff]  }
  0xde   :  { %3334 = vmatprep.subr.bf16.mxu0 %v9611_v34  ;;  %v9695_v34 = vld [vmem:[#allocation5 + $0x2c4] ss:$8 sps:$4 sm:$0xff]  }
  0xe0   :  { %3326 = vmatmul.mubr.bf16.vlgmr.msra.gmra.mrb[0].mxu0 %v177_v37  ;;  %v9696_v37 = vld [vmem:[#allocation5 + $0x2d0] ss:$8 sps:$4 sm:$0xff]  }
  0xe1   :  { %3335 = vmatpush1.bf16.msra.mxu0 %v9609_v38  ;;  %3366 = vmatprep.mubr.bf16.mxu0 %v180_v39  ;;  %v9701_v38 = vld [vmem:[#allocation5 + $0x2e4] ss:$8 sps:$4 sm:$0xff]   ;;  %v9699_v39 = vld [vmem:[#allocation5 + $0x2e0] ss:$8 sps:$4 sm:$0xff]  }
  0xe2   :  { %3336 = vmatprep.subr.bf16.mxu0 %v9614_v40  ;;  %v9704_v40 = vld [vmem:[#allocation5 + $0x2f4] ss:$8 sps:$4 sm:$0xff]  }
  0xe5   :  { %3337 = vmatpush1.bf16.msra.mxu0 %v9612_v41  ;;  %v9702_v41 = vld [vmem:[#allocation5 + $0x2f0] ss:$8 sps:$4 sm:$0xff]  }
  0xe6   :  { %3338 = vmatprep.subr.bf16.mxu0 %v9617_v42  ;;  %v9707_v42 = vld [vmem:[#allocation5 + $0x304] ss:$8 sps:$4 sm:$0xff]  }
  0xe9   :  { %3339 = vmatpush1.bf16.msra.mxu0 %v9615_v43  ;;  %v149_v43 = vld [vmem:[#allocation2 + $0x20] sm:$0xff] }
  0xea   :  { %3340 = vmatprep.subr.bf16.mxu0 %v9620_v44  ;;  %v152_v44 = vld [vmem:[#allocation2 + $0x38] sm:$0xff] }
  0xed   :  { %3341 = vmatpush1.bf16.msra.mxu0 %v9618_v45  ;;  %v181_v45 = vpack.c.bf16 %v149_v43, %v149_v43  ;;  %v9789_v43 = vld [vmem:[#allocation5 + $0x4c0] ss:$8 sps:$4 sm:$0xff]  }
  0xee   :  { %3342 = vmatprep.subr.bf16.mxu0 %v9623_v46  ;;  %v9705_v46 = vld [vmem:[#allocation5 + $0x300] ss:$8 sps:$4 sm:$0xff]  }
  0xf1   :  { %3343 = vmatpush1.bf16.msra.mxu0 %v9621_v47  ;;  %v184_v47 = vpack.c.bf16 %v152_v44, %v152_v44  ;;  %v9794_v44 = vld [vmem:[#allocation5 + $0x4d4] ss:$8 sps:$4 sm:$0xff]  }
  0xf2   :  { %3344 = vmatprep.subr.bf16.mxu0 %v9626_v48  ;;  %v9710_v48 = vld [vmem:[#allocation5 + $0x314] ss:$8 sps:$4 sm:$0xff]  }
  0xf5   :  { %3345 = vmatpush1.bf16.msra.mxu0 %v9624_v49  ;;  %v9708_v49 = vld [vmem:[#allocation5 + $0x310] ss:$8 sps:$4 sm:$0xff]  }
  0xf6   :  { %3346 = vmatprep.subr.bf16.mxu0 %v9629_v50  ;;  %v9713_v50 = vld [vmem:[#allocation5 + $0x324] ss:$8 sps:$4 sm:$0xff]  }
  0xf9   :  { %3347 = vmatpush1.bf16.msra.mxu0 %v9627_v51  ;;  %v9711_v51 = vld [vmem:[#allocation5 + $0x320] ss:$8 sps:$4 sm:$0xff]  }
  0xfa   :  { %3348 = vmatprep.subr.bf16.mxu0 %v9632_v52  ;;  %v9716_v52 = vld [vmem:[#allocation5 + $0x334] ss:$8 sps:$4 sm:$0xff]  }
  0xfd   :  { %3349 = vmatpush1.bf16.msra.mxu0 %v9630_v53  ;;  %v9714_v53 = vld [vmem:[#allocation5 + $0x330] ss:$8 sps:$4 sm:$0xff]  }
  0xfe   :  { %3350 = vmatprep.subr.bf16.mxu0 %v9635_v54  ;;  %v9719_v54 = vld [vmem:[#allocation5 + $0x344] ss:$8 sps:$4 sm:$0xff]  }
 0x101   :  { %3351 = vmatpush1.bf16.msra.mxu0 %v9633_v55  ;;  %v9717_v55 = vld [vmem:[#allocation5 + $0x340] ss:$8 sps:$4 sm:$0xff]  }
 0x102   :  { %3352 = vmatprep.subr.bf16.mxu0 %v9638_v56  ;;  %v9722_v56 = vld [vmem:[#allocation5 + $0x354] ss:$8 sps:$4 sm:$0xff]  }
 0x105   :  { %3353 = vmatpush1.bf16.msra.mxu0 %v9636_v57  ;;  %v9720_v57 = vld [vmem:[#allocation5 + $0x350] ss:$8 sps:$4 sm:$0xff]  }
 0x106   :  { %3354 = vmatprep.subr.bf16.mxu0 %v9641_v58  ;;  %v9725_v58 = vld [vmem:[#allocation5 + $0x364] ss:$8 sps:$4 sm:$0xff]  }
 0x109   :  { %3355 = vmatpush1.bf16.msra.mxu0 %v9639_v59  ;;  %v9723_v59 = vld [vmem:[#allocation5 + $0x360] ss:$8 sps:$4 sm:$0xff]  }
 0x10a   :  { %3356 = vmatprep.subr.bf16.mxu0 %v9644_v60  ;;  %v9728_v60 = vld [vmem:[#allocation5 + $0x374] ss:$8 sps:$4 sm:$0xff]  }
 0x10d   :  { %3357 = vmatpush1.bf16.msra.mxu0 %v9642_v61  ;;  %v9726_v61 = vld [vmem:[#allocation5 + $0x370] ss:$8 sps:$4 sm:$0xff]  }
 0x10e   :  { %3358 = vmatprep.subr.bf16.mxu0 %v9647_v62  ;;  %v9731_v62 = vld [vmem:[#allocation5 + $0x384] ss:$8 sps:$4 sm:$0xff]  }
 0x111   :  { %3359 = vmatpush1.bf16.msra.mxu0 %v9645_v63  ;;  %v9729_v63 = vld [vmem:[#allocation5 + $0x380] ss:$8 sps:$4 sm:$0xff]  }
 0x112   :  { %3360 = vmatprep.subr.bf16.mxu0 %v9650_v0  ;;  %v9734_v0 = vld [vmem:[#allocation5 + $0x394] ss:$8 sps:$4 sm:$0xff]  }
 0x115   :  { %3361 = vmatpush1.bf16.msra.mxu0 %v9648_v1  ;;  %v9732_v1 = vld [vmem:[#allocation5 + $0x390] ss:$8 sps:$4 sm:$0xff]  }
 0x116   :  { %3362 = vmatprep.subr.bf16.mxu0 %v9653_v2  ;;  %v9737_v2 = vld [vmem:[#allocation5 + $0x3a4] ss:$8 sps:$4 sm:$0xff]  }
 0x119   :  { %3363 = vmatpush1.bf16.msra.mxu0 %v9651_v3  ;;  %v9735_v3 = vld [vmem:[#allocation5 + $0x3a0] ss:$8 sps:$4 sm:$0xff]  }
 0x11a   :  { %3364 = vmatprep.subr.bf16.mxu0 %v9656_v4  ;;  %v9740_v4 = vld [vmem:[#allocation5 + $0x3b4] ss:$8 sps:$4 sm:$0xff]  }
 0x11d   :  { %3365 = vmatpush1.bf16.msra.mxu0 %v9654_v5  ;;  %v9738_v5 = vld [vmem:[#allocation5 + $0x3b0] ss:$8 sps:$4 sm:$0xff]  }
 0x11e   :  { %3375 = vmatprep.subr.bf16.mxu0 %v9659_v6  ;;  %v9743_v6 = vld [vmem:[#allocation5 + $0x3c4] ss:$8 sps:$4 sm:$0xff]  }
 0x120   :  { %3367 = vmatmul.mubr.bf16.vlgmr.msra.gmra.mrb[0].mxu0 %v179_v9  ;;  %v9744_v9 = vld [vmem:[#allocation5 + $0x3d0] ss:$8 sps:$4 sm:$0xff]  }
 0x121   :  { %3376 = vmatpush1.bf16.msra.mxu0 %v9657_v10  ;;  %3407 = vmatprep.mubr.bf16.mxu0 %v182_v11  ;;  %v9749_v10 = vld [vmem:[#allocation5 + $0x3e4] ss:$8 sps:$4 sm:$0xff]   ;;  %v9747_v11 = vld [vmem:[#allocation5 + $0x3e0] ss:$8 sps:$4 sm:$0xff]  }
 0x122   :  { %3377 = vmatprep.subr.bf16.mxu0 %v9662_v12  ;;  %v9752_v12 = vld [vmem:[#allocation5 + $0x3f4] ss:$8 sps:$4 sm:$0xff]  }
 0x125   :  { %3378 = vmatpush1.bf16.msra.mxu0 %v9660_v13  ;;  %v9750_v13 = vld [vmem:[#allocation5 + $0x3f0] ss:$8 sps:$4 sm:$0xff]  }
 0x126   :  { %3379 = vmatprep.subr.bf16.mxu0 %v9665_v14  ;;  %v9755_v14 = vld [vmem:[#allocation5 + $0x404] ss:$8 sps:$4 sm:$0xff]  }
 0x129   :  { %3380 = vmatpush1.bf16.msra.mxu0 %v9663_v15  ;;  %v151_v15 = vld [vmem:[#allocation2 + $0x30] sm:$0xff] }
 0x12a   :  { %3381 = vmatprep.subr.bf16.mxu0 %v9668_v16  ;;  %v154_v16 = vld [vmem:[#allocation2 + $0x48] sm:$0xff] }
 0x12d   :  { %3382 = vmatpush1.bf16.msra.mxu0 %v9666_v17  ;;  %v183_v17 = vpack.c.bf16 %v151_v15, %v151_v15  ;;  %v9837_v15 = vld [vmem:[#allocation5 + $0x5c0] ss:$8 sps:$4 sm:$0xff]  }
 0x12e   :  { %3383 = vmatprep.subr.bf16.mxu0 %v9671_v18  ;;  %v9753_v18 = vld [vmem:[#allocation5 + $0x400] ss:$8 sps:$4 sm:$0xff]  }
 0x131   :  { %3384 = vmatpush1.bf16.msra.mxu0 %v9669_v19  ;;  %v186_v19 = vpack.c.bf16 %v154_v16, %v154_v16  ;;  %v9842_v16 = vld [vmem:[#allocation5 + $0x5d4] ss:$8 sps:$4 sm:$0xff]  }
 0x132   :  { %3385 = vmatprep.subr.bf16.mxu0 %v9674_v20  ;;  %v9758_v20 = vld [vmem:[#allocation5 + $0x414] ss:$8 sps:$4 sm:$0xff]  }
 0x135   :  { %3386 = vmatpush1.bf16.msra.mxu0 %v9672_v21  ;;  %v9756_v21 = vld [vmem:[#allocation5 + $0x410] ss:$8 sps:$4 sm:$0xff]  }
 0x136   :  { %3387 = vmatprep.subr.bf16.mxu0 %v9677_v22  ;;  %v9761_v22 = vld [vmem:[#allocation5 + $0x424] ss:$8 sps:$4 sm:$0xff]  }
 0x139   :  { %3388 = vmatpush1.bf16.msra.mxu0 %v9675_v23  ;;  %v9759_v23 = vld [vmem:[#allocation5 + $0x420] ss:$8 sps:$4 sm:$0xff]  }
 0x13a   :  { %3389 = vmatprep.subr.bf16.mxu0 %v9680_v24  ;;  %v9764_v24 = vld [vmem:[#allocation5 + $0x434] ss:$8 sps:$4 sm:$0xff]  }
 0x13d   :  { %3390 = vmatpush1.bf16.msra.mxu0 %v9678_v25  ;;  %v9762_v25 = vld [vmem:[#allocation5 + $0x430] ss:$8 sps:$4 sm:$0xff]  }
 0x13e   :  { %3391 = vmatprep.subr.bf16.mxu0 %v9683_v26  ;;  %v9767_v26 = vld [vmem:[#allocation5 + $0x444] ss:$8 sps:$4 sm:$0xff]  }
 0x141   :  { %3392 = vmatpush1.bf16.msra.mxu0 %v9681_v27  ;;  %v9765_v27 = vld [vmem:[#allocation5 + $0x440] ss:$8 sps:$4 sm:$0xff]  }
 0x142   :  { %3393 = vmatprep.subr.bf16.mxu0 %v9686_v28  ;;  %v9770_v28 = vld [vmem:[#allocation5 + $0x454] ss:$8 sps:$4 sm:$0xff]  }
 0x145   :  { %3394 = vmatpush1.bf16.msra.mxu0 %v9684_v29  ;;  %v9768_v29 = vld [vmem:[#allocation5 + $0x450] ss:$8 sps:$4 sm:$0xff]  }
 0x146   :  { %3395 = vmatprep.subr.bf16.mxu0 %v9689_v30  ;;  %v9773_v30 = vld [vmem:[#allocation5 + $0x464] ss:$8 sps:$4 sm:$0xff]  }
 0x149   :  { %3396 = vmatpush1.bf16.msra.mxu0 %v9687_v31  ;;  %v9771_v31 = vld [vmem:[#allocation5 + $0x460] ss:$8 sps:$4 sm:$0xff]  }
 0x14a   :  { %3397 = vmatprep.subr.bf16.mxu0 %v9692_v32  ;;  %v9776_v32 = vld [vmem:[#allocation5 + $0x474] ss:$8 sps:$4 sm:$0xff]  }
 0x14d   :  { %3398 = vmatpush1.bf16.msra.mxu0 %v9690_v33  ;;  %v9774_v33 = vld [vmem:[#allocation5 + $0x470] ss:$8 sps:$4 sm:$0xff]  }
 0x14e   :  { %3399 = vmatprep.subr.bf16.mxu0 %v9695_v34  ;;  %v9779_v34 = vld [vmem:[#allocation5 + $0x484] ss:$8 sps:$4 sm:$0xff]  }
 0x151   :  { %3400 = vmatpush1.bf16.msra.mxu0 %v9693_v35  ;;  %v9777_v35 = vld [vmem:[#allocation5 + $0x480] ss:$8 sps:$4 sm:$0xff]  }
 0x152   :  { %3401 = vmatprep.subr.bf16.mxu0 %v9698_v36  ;;  %v9782_v36 = vld [vmem:[#allocation5 + $0x494] ss:$8 sps:$4 sm:$0xff]  }
 0x155   :  { %3402 = vmatpush1.bf16.msra.mxu0 %v9696_v37  ;;  %v9780_v37 = vld [vmem:[#allocation5 + $0x490] ss:$8 sps:$4 sm:$0xff]  }
 0x156   :  { %3403 = vmatprep.subr.bf16.mxu0 %v9701_v38  ;;  %v9785_v38 = vld [vmem:[#allocation5 + $0x4a4] ss:$8 sps:$4 sm:$0xff]  }
 0x159   :  { %3404 = vmatpush1.bf16.msra.mxu0 %v9699_v39  ;;  %v9783_v39 = vld [vmem:[#allocation5 + $0x4a0] ss:$8 sps:$4 sm:$0xff]  }
 0x15a   :  { %3405 = vmatprep.subr.bf16.mxu0 %v9704_v40  ;;  %v9788_v40 = vld [vmem:[#allocation5 + $0x4b4] ss:$8 sps:$4 sm:$0xff]  }
 0x15d   :  { %3406 = vmatpush1.bf16.msra.mxu0 %v9702_v41  ;;  %v9786_v41 = vld [vmem:[#allocation5 + $0x4b0] ss:$8 sps:$4 sm:$0xff]  }
 0x15e   :  { %3416 = vmatprep.subr.bf16.mxu0 %v9707_v42  ;;  %v9791_v42 = vld [vmem:[#allocation5 + $0x4c4] ss:$8 sps:$4 sm:$0xff]  }
 0x160   :  { %3408 = vmatmul.mubr.bf16.vlgmr.msra.gmra.mrb[0].mxu0 %v181_v45  ;;  %v9792_v45 = vld [vmem:[#allocation5 + $0x4d0] ss:$8 sps:$4 sm:$0xff]  }
 0x161   :  { %3417 = vmatpush1.bf16.msra.mxu0 %v9705_v46  ;;  %3448 = vmatprep.mubr.bf16.mxu0 %v184_v47  ;;  %v9797_v46 = vld [vmem:[#allocation5 + $0x4e4] ss:$8 sps:$4 sm:$0xff]   ;;  %v9795_v47 = vld [vmem:[#allocation5 + $0x4e0] ss:$8 sps:$4 sm:$0xff]  }
 0x162   :  { %3418 = vmatprep.subr.bf16.mxu0 %v9710_v48  ;;  %v9800_v48 = vld [vmem:[#allocation5 + $0x4f4] ss:$8 sps:$4 sm:$0xff]  }
 0x165   :  { %3419 = vmatpush1.bf16.msra.mxu0 %v9708_v49  ;;  %v9798_v49 = vld [vmem:[#allocation5 + $0x4f0] ss:$8 sps:$4 sm:$0xff]  }
 0x166   :  { %3420 = vmatprep.subr.bf16.mxu0 %v9713_v50  ;;  %v153_v50 = vld [vmem:[#allocation2 + $0x40] sm:$0xff] }
 0x169   :  { %3421 = vmatpush1.bf16.msra.mxu0 %v9711_v51  ;;  %v9803_v51 = vld [vmem:[#allocation5 + $0x504] ss:$8 sps:$4 sm:$0xff]  }
 0x16a   :  { %3422 = vmatprep.subr.bf16.mxu0 %v9716_v52  ;;  %v156_v52 = vld [vmem:[#allocation2 + $0x58] sm:$0xff] }
 0x16d   :  { %3423 = vmatpush1.bf16.msra.mxu0 %v9714_v53  ;;  %v185_v53 = vpack.c.bf16 %v153_v50, %v153_v50  ;;  %v9887_v50 = vld [vmem:[#allocation5 + $0x6c4] ss:$8 sps:$4 sm:$0xff]  }
 0x16e   :  { %3424 = vmatprep.subr.bf16.mxu0 %v9719_v54  ;;  %v9801_v54 = vld [vmem:[#allocation5 + $0x500] ss:$8 sps:$4 sm:$0xff]  }
 0x171   :  { %3425 = vmatpush1.bf16.msra.mxu0 %v9717_v55  ;;  %v188_v55 = vpack.c.bf16 %v156_v52, %v156_v52  ;;  %v9890_v52 = vld [vmem:[#allocation5 + $0x6d4] ss:$8 sps:$4 sm:$0xff]  }
 0x172   :  { %3426 = vmatprep.subr.bf16.mxu0 %v9722_v56  ;;  %v9806_v56 = vld [vmem:[#allocation5 + $0x514] ss:$8 sps:$4 sm:$0xff]  }
 0x175   :  { %3427 = vmatpush1.bf16.msra.mxu0 %v9720_v57  ;;  %v9804_v57 = vld [vmem:[#allocation5 + $0x510] ss:$8 sps:$4 sm:$0xff]  }
 0x176   :  { %3428 = vmatprep.subr.bf16.mxu0 %v9725_v58  ;;  %v9809_v58 = vld [vmem:[#allocation5 + $0x524] ss:$8 sps:$4 sm:$0xff]  }
 0x179   :  { %3429 = vmatpush1.bf16.msra.mxu0 %v9723_v59  ;;  %v9807_v59 = vld [vmem:[#allocation5 + $0x520] ss:$8 sps:$4 sm:$0xff]  }
 0x17a   :  { %3430 = vmatprep.subr.bf16.mxu0 %v9728_v60  ;;  %v9812_v60 = vld [vmem:[#allocation5 + $0x534] ss:$8 sps:$4 sm:$0xff]  }
 0x17d   :  { %3431 = vmatpush1.bf16.msra.mxu0 %v9726_v61  ;;  %v9810_v61 = vld [vmem:[#allocation5 + $0x530] ss:$8 sps:$4 sm:$0xff]  }
 0x17e   :  { %3432 = vmatprep.subr.bf16.mxu0 %v9731_v62  ;;  %v9815_v62 = vld [vmem:[#allocation5 + $0x544] ss:$8 sps:$4 sm:$0xff]  }
 0x181   :  { %3433 = vmatpush1.bf16.msra.mxu0 %v9729_v63  ;;  %v9813_v63 = vld [vmem:[#allocation5 + $0x540] ss:$8 sps:$4 sm:$0xff]  }
 0x182   :  { %3434 = vmatprep.subr.bf16.mxu0 %v9734_v0  ;;  %v9818_v0 = vld [vmem:[#allocation5 + $0x554] ss:$8 sps:$4 sm:$0xff]  }
 0x185   :  { %3435 = vmatpush1.bf16.msra.mxu0 %v9732_v1  ;;  %v9816_v1 = vld [vmem:[#allocation5 + $0x550] ss:$8 sps:$4 sm:$0xff]  }
 0x186   :  { %3436 = vmatprep.subr.bf16.mxu0 %v9737_v2  ;;  %v9821_v2 = vld [vmem:[#allocation5 + $0x564] ss:$8 sps:$4 sm:$0xff]  }
 0x189   :  { %3437 = vmatpush1.bf16.msra.mxu0 %v9735_v3  ;;  %v9819_v3 = vld [vmem:[#allocation5 + $0x560] ss:$8 sps:$4 sm:$0xff]  }
 0x18a   :  { %3438 = vmatprep.subr.bf16.mxu0 %v9740_v4  ;;  %v9824_v4 = vld [vmem:[#allocation5 + $0x574] ss:$8 sps:$4 sm:$0xff]  }
 0x18d   :  { %3439 = vmatpush1.bf16.msra.mxu0 %v9738_v5  ;;  %v9822_v5 = vld [vmem:[#allocation5 + $0x570] ss:$8 sps:$4 sm:$0xff]  }
 0x18e   :  { %3440 = vmatprep.subr.bf16.mxu0 %v9743_v6  ;;  %v9827_v6 = vld [vmem:[#allocation5 + $0x584] ss:$8 sps:$4 sm:$0xff]  }
 0x191   :  { %3441 = vmatpush1.bf16.msra.mxu0 %v9741_v7  ;;  %v9825_v7 = vld [vmem:[#allocation5 + $0x580] ss:$8 sps:$4 sm:$0xff]  }
 0x192   :  { %3442 = vmatprep.subr.bf16.mxu0 %v9746_v8  ;;  %v9830_v8 = vld [vmem:[#allocation5 + $0x594] ss:$8 sps:$4 sm:$0xff]  }
 0x195   :  { %3443 = vmatpush1.bf16.msra.mxu0 %v9744_v9  ;;  %v9828_v9 = vld [vmem:[#allocation5 + $0x590] ss:$8 sps:$4 sm:$0xff]  }
 0x196   :  { %3444 = vmatprep.subr.bf16.mxu0 %v9749_v10  ;;  %v9833_v10 = vld [vmem:[#allocation5 + $0x5a4] ss:$8 sps:$4 sm:$0xff]  }
 0x199   :  { %3445 = vmatpush1.bf16.msra.mxu0 %v9747_v11  ;;  %v9831_v11 = vld [vmem:[#allocation5 + $0x5a0] ss:$8 sps:$4 sm:$0xff]  }
 0x19a   :  { %3446 = vmatprep.subr.bf16.mxu0 %v9752_v12  ;;  %v9836_v12 = vld [vmem:[#allocation5 + $0x5b4] ss:$8 sps:$4 sm:$0xff]  }
 0x19d   :  { %3447 = vmatpush1.bf16.msra.mxu0 %v9750_v13  ;;  %v9834_v13 = vld [vmem:[#allocation5 + $0x5b0] ss:$8 sps:$4 sm:$0xff]  }
 0x19e   :  { %3457 = vmatprep.subr.bf16.mxu0 %v9755_v14  ;;  %v9839_v14 = vld [vmem:[#allocation5 + $0x5c4] ss:$8 sps:$4 sm:$0xff]  }
 0x1a0   :  { %3449 = vmatmul.mubr.bf16.vlgmr.msra.gmra.mrb[0].mxu0 %v183_v17  ;;  %v9840_v17 = vld [vmem:[#allocation5 + $0x5d0] ss:$8 sps:$4 sm:$0xff]  }
 0x1a1   :  { %3458 = vmatpush1.bf16.msra.mxu0 %v9753_v18  ;;  %3489 = vmatprep.mubr.bf16.mxu0 %v186_v19  ;;  %v9845_v18 = vld [vmem:[#allocation5 + $0x5e4] ss:$8 sps:$4 sm:$0xff]   ;;  %v9843_v19 = vld [vmem:[#allocation5 + $0x5e0] ss:$8 sps:$4 sm:$0xff]  }
 0x1a2   :  { %3459 = vmatprep.subr.bf16.mxu0 %v9758_v20  ;;  %v9848_v20 = vld [vmem:[#allocation5 + $0x5f4] ss:$8 sps:$4 sm:$0xff]  }
 0x1a5   :  { %3460 = vmatpush1.bf16.msra.mxu0 %v9756_v21  ;;  %v9846_v21 = vld [vmem:[#allocation5 + $0x5f0] ss:$8 sps:$4 sm:$0xff]  }
 0x1a6   :  { %3461 = vmatprep.subr.bf16.mxu0 %v9761_v22  ;;  %v155_v22 = vld [vmem:[#allocation2 + $0x50] sm:$0xff] }
 0x1a9   :  { %3462 = vmatpush1.bf16.msra.mxu0 %v9759_v23  ;;  %v9851_v23 = vld [vmem:[#allocation5 + $0x604] ss:$8 sps:$4 sm:$0xff]  }
 0x1aa   :  { %3463 = vmatprep.subr.bf16.mxu0 %v9764_v24  ;;  %v158_v24 = vld [vmem:[#allocation2 + $0x68] sm:$0xff] }
 0x1ad   :  { %3464 = vmatpush1.bf16.msra.mxu0 %v9762_v25  ;;  %v187_v25 = vpack.c.bf16 %v155_v22, %v155_v22  ;;  %v9935_v22 = vld [vmem:[#allocation5 + $0x7c4] ss:$8 sps:$4 sm:$0xff]  }
 0x1ae   :  { %3465 = vmatprep.subr.bf16.mxu0 %v9767_v26  ;;  %v9849_v26 = vld [vmem:[#allocation5 + $0x600] ss:$8 sps:$4 sm:$0xff]  }
 0x1b1   :  { %3466 = vmatpush1.bf16.msra.mxu0 %v9765_v27  ;;  %v190_v27 = vpack.c.bf16 %v158_v24, %v158_v24  ;;  %v9938_v24 = vld [vmem:[#allocation5 + $0x7d4] ss:$8 sps:$4 sm:$0xff]  }
 0x1b2   :  { %3467 = vmatprep.subr.bf16.mxu0 %v9770_v28  ;;  %v9854_v28 = vld [vmem:[#allocation5 + $0x614] ss:$8 sps:$4 sm:$0xff]  }
 0x1b5   :  { %3468 = vmatpush1.bf16.msra.mxu0 %v9768_v29  ;;  %v9852_v29 = vld [vmem:[#allocation5 + $0x610] ss:$8 sps:$4 sm:$0xff]  }
 0x1b6   :  { %3469 = vmatprep.subr.bf16.mxu0 %v9773_v30  ;;  %v9857_v30 = vld [vmem:[#allocation5 + $0x624] ss:$8 sps:$4 sm:$0xff]  }
 0x1b9   :  { %3470 = vmatpush1.bf16.msra.mxu0 %v9771_v31  ;;  %v9855_v31 = vld [vmem:[#allocation5 + $0x620] ss:$8 sps:$4 sm:$0xff]  }
 0x1ba   :  { %3471 = vmatprep.subr.bf16.mxu0 %v9776_v32  ;;  %v9860_v32 = vld [vmem:[#allocation5 + $0x634] ss:$8 sps:$4 sm:$0xff]  }
 0x1bd   :  { %3472 = vmatpush1.bf16.msra.mxu0 %v9774_v33  ;;  %v9858_v33 = vld [vmem:[#allocation5 + $0x630] ss:$8 sps:$4 sm:$0xff]  }
 0x1be   :  { %3473 = vmatprep.subr.bf16.mxu0 %v9779_v34  ;;  %v9863_v34 = vld [vmem:[#allocation5 + $0x644] ss:$8 sps:$4 sm:$0xff]  }
 0x1c1   :  { %3474 = vmatpush1.bf16.msra.mxu0 %v9777_v35  ;;  %v9861_v35 = vld [vmem:[#allocation5 + $0x640] ss:$8 sps:$4 sm:$0xff]  }
 0x1c2   :  { %3475 = vmatprep.subr.bf16.mxu0 %v9782_v36  ;;  %v9866_v36 = vld [vmem:[#allocation5 + $0x654] ss:$8 sps:$4 sm:$0xff]  }
 0x1c5   :  { %3476 = vmatpush1.bf16.msra.mxu0 %v9780_v37  ;;  %v9864_v37 = vld [vmem:[#allocation5 + $0x650] ss:$8 sps:$4 sm:$0xff]  }
 0x1c6   :  { %3477 = vmatprep.subr.bf16.mxu0 %v9785_v38  ;;  %v9869_v38 = vld [vmem:[#allocation5 + $0x664] ss:$8 sps:$4 sm:$0xff]  }
 0x1c9   :  { %3478 = vmatpush1.bf16.msra.mxu0 %v9783_v39  ;;  %v9867_v39 = vld [vmem:[#allocation5 + $0x660] ss:$8 sps:$4 sm:$0xff]  }
 0x1ca   :  { %3479 = vmatprep.subr.bf16.mxu0 %v9788_v40  ;;  %v9872_v40 = vld [vmem:[#allocation5 + $0x674] ss:$8 sps:$4 sm:$0xff]  }
 0x1cd   :  { %3480 = vmatpush1.bf16.msra.mxu0 %v9786_v41  ;;  %v9870_v41 = vld [vmem:[#allocation5 + $0x670] ss:$8 sps:$4 sm:$0xff]  }
 0x1ce   :  { %3481 = vmatprep.subr.bf16.mxu0 %v9791_v42  ;;  %v9875_v42 = vld [vmem:[#allocation5 + $0x684] ss:$8 sps:$4 sm:$0xff]  }
 0x1d1   :  { %3482 = vmatpush1.bf16.msra.mxu0 %v9789_v43  ;;  %v9873_v43 = vld [vmem:[#allocation5 + $0x680] ss:$8 sps:$4 sm:$0xff]  }
 0x1d2   :  { %3483 = vmatprep.subr.bf16.mxu0 %v9794_v44  ;;  %v9878_v44 = vld [vmem:[#allocation5 + $0x694] ss:$8 sps:$4 sm:$0xff]  }
 0x1d5   :  { %3484 = vmatpush1.bf16.msra.mxu0 %v9792_v45  ;;  %v9876_v45 = vld [vmem:[#allocation5 + $0x690] ss:$8 sps:$4 sm:$0xff]  }
 0x1d6   :  { %3485 = vmatprep.subr.bf16.mxu0 %v9797_v46  ;;  %v9881_v46 = vld [vmem:[#allocation5 + $0x6a4] ss:$8 sps:$4 sm:$0xff]  }
 0x1d9   :  { %3486 = vmatpush1.bf16.msra.mxu0 %v9795_v47  ;;  %v9879_v47 = vld [vmem:[#allocation5 + $0x6a0] ss:$8 sps:$4 sm:$0xff]  }
 0x1da   :  { %3487 = vmatprep.subr.bf16.mxu0 %v9800_v48  ;;  %v9884_v48 = vld [vmem:[#allocation5 + $0x6b4] ss:$8 sps:$4 sm:$0xff]  }
 0x1dd   :  { %3488 = vmatpush1.bf16.msra.mxu0 %v9798_v49  ;;  %v9882_v49 = vld [vmem:[#allocation5 + $0x6b0] ss:$8 sps:$4 sm:$0xff]  }
 0x1de   :  { %3498 = vmatprep.subr.bf16.mxu0 %v9803_v51  ;;  %v9885_v51 = vld [vmem:[#allocation5 + $0x6c0] ss:$8 sps:$4 sm:$0xff]  }
 0x1e0   :  { %3490 = vmatmul.mubr.bf16.vlgmr.msra.gmra.mrb[0].mxu0 %v185_v53  ;;  %v9888_v53 = vld [vmem:[#allocation5 + $0x6d0] ss:$8 sps:$4 sm:$0xff]  }
 0x1e1   :  { %3499 = vmatpush1.bf16.msra.mxu0 %v9801_v54  ;;  %3530 = vmatprep.mubr.bf16.mxu0 %v188_v55  ;;  %v9893_v54 = vld [vmem:[#allocation5 + $0x6e4] ss:$8 sps:$4 sm:$0xff]   ;;  %v9891_v55 = vld [vmem:[#allocation5 + $0x6e0] ss:$8 sps:$4 sm:$0xff]  }
 0x1e2   :  { %3500 = vmatprep.subr.bf16.mxu0 %v9806_v56  ;;  %v9896_v56 = vld [vmem:[#allocation5 + $0x6f4] ss:$8 sps:$4 sm:$0xff]  }
 0x1e5   :  { %3501 = vmatpush1.bf16.msra.mxu0 %v9804_v57  ;;  %v9894_v57 = vld [vmem:[#allocation5 + $0x6f0] ss:$8 sps:$4 sm:$0xff]  }
 0x1e6   :  { %3502 = vmatprep.subr.bf16.mxu0 %v9809_v58  ;;  %v157_v58 = vld [vmem:[#allocation2 + $0x60] sm:$0xff] }
 0x1e9   :  { %3503 = vmatpush1.bf16.msra.mxu0 %v9807_v59  ;;  %v9899_v59 = vld [vmem:[#allocation5 + $0x704] ss:$8 sps:$4 sm:$0xff]  }
 0x1ea   :  { %3504 = vmatprep.subr.bf16.mxu0 %v9812_v60  ;;  %v160_v60 = vld [vmem:[#allocation2 + $0x78] sm:$0xff] }
 0x1ed   :  { %3505 = vmatpush1.bf16.msra.mxu0 %v9810_v61  ;;  %v189_v61 = vpack.c.bf16 %v157_v58, %v157_v58  ;;  %v9983_v58 = vld [vmem:[#allocation5 + $0x8c4] ss:$8 sps:$4 sm:$0xff]  }
 0x1ee   :  { %3506 = vmatprep.subr.bf16.mxu0 %v9815_v62  ;;  %v9897_v62 = vld [vmem:[#allocation5 + $0x700] ss:$8 sps:$4 sm:$0xff]  }
 0x1f1   :  { %3507 = vmatpush1.bf16.msra.mxu0 %v9813_v63  ;;  %v192_v63 = vpack.c.bf16 %v160_v60, %v160_v60  ;;  %v9986_v60 = vld [vmem:[#allocation5 + $0x8d4] ss:$8 sps:$4 sm:$0xff]  }
 0x1f2   :  { %3508 = vmatprep.subr.bf16.mxu0 %v9818_v0  ;;  %v9902_v0 = vld [vmem:[#allocation5 + $0x714] ss:$8 sps:$4 sm:$0xff]  }
 0x1f5   :  { %3509 = vmatpush1.bf16.msra.mxu0 %v9816_v1  ;;  %v9900_v1 = vld [vmem:[#allocation5 + $0x710] ss:$8 sps:$4 sm:$0xff]  }
 0x1f6   :  { %3510 = vmatprep.subr.bf16.mxu0 %v9821_v2  ;;  %v9905_v2 = vld [vmem:[#allocation5 + $0x724] ss:$8 sps:$4 sm:$0xff]  }
 0x1f9   :  { %3511 = vmatpush1.bf16.msra.mxu0 %v9819_v3  ;;  %v9903_v3 = vld [vmem:[#allocation5 + $0x720] ss:$8 sps:$4 sm:$0xff]  }
 0x1fa   :  { %3512 = vmatprep.subr.bf16.mxu0 %v9824_v4  ;;  %v9908_v4 = vld [vmem:[#allocation5 + $0x734] ss:$8 sps:$4 sm:$0xff]  }
 0x1fd   :  { %3513 = vmatpush1.bf16.msra.mxu0 %v9822_v5  ;;  %v9906_v5 = vld [vmem:[#allocation5 + $0x730] ss:$8 sps:$4 sm:$0xff]  }
 0x1fe   :  { %3514 = vmatprep.subr.bf16.mxu0 %v9827_v6  ;;  %v9911_v6 = vld [vmem:[#allocation5 + $0x744] ss:$8 sps:$4 sm:$0xff]  }
 0x201   :  { %3515 = vmatpush1.bf16.msra.mxu0 %v9825_v7  ;;  %v9909_v7 = vld [vmem:[#allocation5 + $0x740] ss:$8 sps:$4 sm:$0xff]  }
 0x202   :  { %3516 = vmatprep.subr.bf16.mxu0 %v9830_v8  ;;  %v9914_v8 = vld [vmem:[#allocation5 + $0x754] ss:$8 sps:$4 sm:$0xff]  }
 0x205   :  { %3517 = vmatpush1.bf16.msra.mxu0 %v9828_v9  ;;  %v9912_v9 = vld [vmem:[#allocation5 + $0x750] ss:$8 sps:$4 sm:$0xff]  }
 0x206   :  { %3518 = vmatprep.subr.bf16.mxu0 %v9833_v10  ;;  %v9917_v10 = vld [vmem:[#allocation5 + $0x764] ss:$8 sps:$4 sm:$0xff]  }
 0x209   :  { %3519 = vmatpush1.bf16.msra.mxu0 %v9831_v11  ;;  %v9915_v11 = vld [vmem:[#allocation5 + $0x760] ss:$8 sps:$4 sm:$0xff]  }
 0x20a   :  { %3520 = vmatprep.subr.bf16.mxu0 %v9836_v12  ;;  %v9920_v12 = vld [vmem:[#allocation5 + $0x774] ss:$8 sps:$4 sm:$0xff]  }
 0x20d   :  { %3521 = vmatpush1.bf16.msra.mxu0 %v9834_v13  ;;  %v9918_v13 = vld [vmem:[#allocation5 + $0x770] ss:$8 sps:$4 sm:$0xff]  }
 0x20e   :  { %3522 = vmatprep.subr.bf16.mxu0 %v9839_v14  ;;  %v9923_v14 = vld [vmem:[#allocation5 + $0x784] ss:$8 sps:$4 sm:$0xff]  }
 0x211   :  { %3523 = vmatpush1.bf16.msra.mxu0 %v9837_v15  ;;  %v9921_v15 = vld [vmem:[#allocation5 + $0x780] ss:$8 sps:$4 sm:$0xff]  }
 0x212   :  { %3524 = vmatprep.subr.bf16.mxu0 %v9842_v16  ;;  %v9926_v16 = vld [vmem:[#allocation5 + $0x794] ss:$8 sps:$4 sm:$0xff]  }
 0x215   :  { %3525 = vmatpush1.bf16.msra.mxu0 %v9840_v17  ;;  %v9924_v17 = vld [vmem:[#allocation5 + $0x790] ss:$8 sps:$4 sm:$0xff]  }
 0x216   :  { %3526 = vmatprep.subr.bf16.mxu0 %v9845_v18  ;;  %v9929_v18 = vld [vmem:[#allocation5 + $0x7a4] ss:$8 sps:$4 sm:$0xff]  }
 0x219   :  { %3527 = vmatpush1.bf16.msra.mxu0 %v9843_v19  ;;  %v9927_v19 = vld [vmem:[#allocation5 + $0x7a0] ss:$8 sps:$4 sm:$0xff]  }
 0x21a   :  { %3528 = vmatprep.subr.bf16.mxu0 %v9848_v20  ;;  %v9932_v20 = vld [vmem:[#allocation5 + $0x7b4] ss:$8 sps:$4 sm:$0xff]  }
 0x21d   :  { %3529 = vmatpush1.bf16.msra.mxu0 %v9846_v21  ;;  %v9930_v21 = vld [vmem:[#allocation5 + $0x7b0] ss:$8 sps:$4 sm:$0xff]  }
 0x21e   :  { %3539 = vmatprep.subr.bf16.mxu0 %v9851_v23  ;;  %v9933_v23 = vld [vmem:[#allocation5 + $0x7c0] ss:$8 sps:$4 sm:$0xff]  }
 0x220   :  { %3531 = vmatmul.mubr.bf16.vlgmr.msra.gmra.mrb[0].mxu0 %v187_v25  ;;  %v9936_v25 = vld [vmem:[#allocation5 + $0x7d0] ss:$8 sps:$4 sm:$0xff]  }
 0x221   :  { %3540 = vmatpush1.bf16.msra.mxu0 %v9849_v26  ;;  %3571 = vmatprep.mubr.bf16.mxu0 %v190_v27  ;;  %v9941_v26 = vld [vmem:[#allocation5 + $0x7e4] ss:$8 sps:$4 sm:$0xff]   ;;  %v9939_v27 = vld [vmem:[#allocation5 + $0x7e0] ss:$8 sps:$4 sm:$0xff]  }
 0x222   :  { %3541 = vmatprep.subr.bf16.mxu0 %v9854_v28  ;;  %v9944_v28 = vld [vmem:[#allocation5 + $0x7f4] ss:$8 sps:$4 sm:$0xff]  }
 0x225   :  { %3542 = vmatpush1.bf16.msra.mxu0 %v9852_v29  ;;  %v9942_v29 = vld [vmem:[#allocation5 + $0x7f0] ss:$8 sps:$4 sm:$0xff]  }
 0x226   :  { %3543 = vmatprep.subr.bf16.mxu0 %v9857_v30  ;;  %v159_v30 = vld [vmem:[#allocation2 + $0x70] sm:$0xff] }
 0x229   :  { %3544 = vmatpush1.bf16.msra.mxu0 %v9855_v31  ;;  %v9947_v31 = vld [vmem:[#allocation5 + $0x804] ss:$8 sps:$4 sm:$0xff]  }
 0x22a   :  { %3545 = vmatprep.subr.bf16.mxu0 %v9860_v32  ;;  %v162_v32 = vld [vmem:[#allocation2 + $0x88] sm:$0xff] }
 0x22d   :  { %3546 = vmatpush1.bf16.msra.mxu0 %v9858_v33  ;;  %v191_v33 = vpack.c.bf16 %v159_v30, %v159_v30  ;;  %v10031_v30 = vld [vmem:[#allocation5 + $0x9c4] ss:$8 sps:$4 sm:$0xff]  }
 0x22e   :  { %3547 = vmatprep.subr.bf16.mxu0 %v9863_v34  ;;  %v9945_v34 = vld [vmem:[#allocation5 + $0x800] ss:$8 sps:$4 sm:$0xff]  }
 0x231   :  { %3548 = vmatpush1.bf16.msra.mxu0 %v9861_v35  ;;  %v194_v35 = vpack.c.bf16 %v162_v32, %v162_v32  ;;  %v10034_v32 = vld [vmem:[#allocation5 + $0x9d4] ss:$8 sps:$4 sm:$0xff]  }
 0x232   :  { %3549 = vmatprep.subr.bf16.mxu0 %v9866_v36  ;;  %v9950_v36 = vld [vmem:[#allocation5 + $0x814] ss:$8 sps:$4 sm:$0xff]  }
 0x235   :  { %3550 = vmatpush1.bf16.msra.mxu0 %v9864_v37  ;;  %v9948_v37 = vld [vmem:[#allocation5 + $0x810] ss:$8 sps:$4 sm:$0xff]  }
 0x236   :  { %3551 = vmatprep.subr.bf16.mxu0 %v9869_v38  ;;  %v9953_v38 = vld [vmem:[#allocation5 + $0x824] ss:$8 sps:$4 sm:$0xff]  }
 0x239   :  { %3552 = vmatpush1.bf16.msra.mxu0 %v9867_v39  ;;  %v9951_v39 = vld [vmem:[#allocation5 + $0x820] ss:$8 sps:$4 sm:$0xff]  }
 0x23a   :  { %3553 = vmatprep.subr.bf16.mxu0 %v9872_v40  ;;  %v9956_v40 = vld [vmem:[#allocation5 + $0x834] ss:$8 sps:$4 sm:$0xff]  }
 0x23d   :  { %3554 = vmatpush1.bf16.msra.mxu0 %v9870_v41  ;;  %v9954_v41 = vld [vmem:[#allocation5 + $0x830] ss:$8 sps:$4 sm:$0xff]  }
 0x23e   :  { %3555 = vmatprep.subr.bf16.mxu0 %v9875_v42  ;;  %v9959_v42 = vld [vmem:[#allocation5 + $0x844] ss:$8 sps:$4 sm:$0xff]  }
 0x241   :  { %3556 = vmatpush1.bf16.msra.mxu0 %v9873_v43  ;;  %v9957_v43 = vld [vmem:[#allocation5 + $0x840] ss:$8 sps:$4 sm:$0xff]  }
 0x242   :  { %3557 = vmatprep.subr.bf16.mxu0 %v9878_v44  ;;  %v9962_v44 = vld [vmem:[#allocation5 + $0x854] ss:$8 sps:$4 sm:$0xff]  }
 0x245   :  { %3558 = vmatpush1.bf16.msra.mxu0 %v9876_v45  ;;  %v9960_v45 = vld [vmem:[#allocation5 + $0x850] ss:$8 sps:$4 sm:$0xff]  }
 0x246   :  { %3559 = vmatprep.subr.bf16.mxu0 %v9881_v46  ;;  %v9965_v46 = vld [vmem:[#allocation5 + $0x864] ss:$8 sps:$4 sm:$0xff]  }
 0x249   :  { %3560 = vmatpush1.bf16.msra.mxu0 %v9879_v47  ;;  %v9963_v47 = vld [vmem:[#allocation5 + $0x860] ss:$8 sps:$4 sm:$0xff]  }
 0x24a   :  { %3561 = vmatprep.subr.bf16.mxu0 %v9884_v48  ;;  %v9968_v48 = vld [vmem:[#allocation5 + $0x874] ss:$8 sps:$4 sm:$0xff]  }
 0x24d   :  { %3562 = vmatpush1.bf16.msra.mxu0 %v9882_v49  ;;  %v9966_v49 = vld [vmem:[#allocation5 + $0x870] ss:$8 sps:$4 sm:$0xff]  }
 0x24e   :  { %3563 = vmatprep.subr.bf16.mxu0 %v9887_v50  ;;  %v9971_v50 = vld [vmem:[#allocation5 + $0x884] ss:$8 sps:$4 sm:$0xff]  }
 0x251   :  { %3564 = vmatpush1.bf16.msra.mxu0 %v9885_v51  ;;  %v9969_v51 = vld [vmem:[#allocation5 + $0x880] ss:$8 sps:$4 sm:$0xff]  }
 0x252   :  { %3565 = vmatprep.subr.bf16.mxu0 %v9890_v52  ;;  %v9974_v52 = vld [vmem:[#allocation5 + $0x894] ss:$8 sps:$4 sm:$0xff]  }
 0x255   :  { %3566 = vmatpush1.bf16.msra.mxu0 %v9888_v53  ;;  %v9972_v53 = vld [vmem:[#allocation5 + $0x890] ss:$8 sps:$4 sm:$0xff]  }
 0x256   :  { %3567 = vmatprep.subr.bf16.mxu0 %v9893_v54  ;;  %v9977_v54 = vld [vmem:[#allocation5 + $0x8a4] ss:$8 sps:$4 sm:$0xff]  }
 0x259   :  { %3568 = vmatpush1.bf16.msra.mxu0 %v9891_v55  ;;  %v9975_v55 = vld [vmem:[#allocation5 + $0x8a0] ss:$8 sps:$4 sm:$0xff]  }
 0x25a   :  { %3569 = vmatprep.subr.bf16.mxu0 %v9896_v56  ;;  %v9980_v56 = vld [vmem:[#allocation5 + $0x8b4] ss:$8 sps:$4 sm:$0xff]  }
 0x25d   :  { %3570 = vmatpush1.bf16.msra.mxu0 %v9894_v57  ;;  %v9978_v57 = vld [vmem:[#allocation5 + $0x8b0] ss:$8 sps:$4 sm:$0xff]  }
 0x25e   :  { %3580 = vmatprep.subr.bf16.mxu0 %v9899_v59  ;;  %v9981_v59 = vld [vmem:[#allocation5 + $0x8c0] ss:$8 sps:$4 sm:$0xff]  }
 0x260   :  { %3572 = vmatmul.mubr.bf16.vlgmr.msra.gmra.mrb[0].mxu0 %v189_v61  ;;  %v9984_v61 = vld [vmem:[#allocation5 + $0x8d0] ss:$8 sps:$4 sm:$0xff]  }
 0x261   :  { %3581 = vmatpush1.bf16.msra.mxu0 %v9897_v62  ;;  %3612 = vmatprep.mubr.bf16.mxu0 %v192_v63  ;;  %v9989_v62 = vld [vmem:[#allocation5 + $0x8e4] ss:$8 sps:$4 sm:$0xff]   ;;  %v9987_v63 = vld [vmem:[#allocation5 + $0x8e0] ss:$8 sps:$4 sm:$0xff]  }
 0x262   :  { %3582 = vmatprep.subr.bf16.mxu0 %v9902_v0  ;;  %v9992_v0 = vld [vmem:[#allocation5 + $0x8f4] ss:$8 sps:$4 sm:$0xff]  }
 0x265   :  { %3583 = vmatpush1.bf16.msra.mxu0 %v9900_v1  ;;  %v9990_v1 = vld [vmem:[#allocation5 + $0x8f0] ss:$8 sps:$4 sm:$0xff]  }
 0x266   :  { %3584 = vmatprep.subr.bf16.mxu0 %v9905_v2  ;;  %v161_v2 = vld [vmem:[#allocation2 + $0x80] sm:$0xff] }
 0x269   :  { %3585 = vmatpush1.bf16.msra.mxu0 %v9903_v3  ;;  %v9995_v3 = vld [vmem:[#allocation5 + $0x904] ss:$8 sps:$4 sm:$0xff]  }
 0x26a   :  { %3586 = vmatprep.subr.bf16.mxu0 %v9908_v4  ;;  %v164_v4 = vld [vmem:[#allocation2 + $0x98] sm:$0xff] }
 0x26d   :  { %3587 = vmatpush1.bf16.msra.mxu0 %v9906_v5  ;;  %v193_v5 = vpack.c.bf16 %v161_v2, %v161_v2  ;;  %v10079_v2 = vld [vmem:[#allocation5 + $0xac4] ss:$8 sps:$4 sm:$0xff]  }
 0x26e   :  { %3588 = vmatprep.subr.bf16.mxu0 %v9911_v6  ;;  %v9993_v6 = vld [vmem:[#allocation5 + $0x900] ss:$8 sps:$4 sm:$0xff]  }
 0x271   :  { %3589 = vmatpush1.bf16.msra.mxu0 %v9909_v7  ;;  %v196_v7 = vpack.c.bf16 %v164_v4, %v164_v4  ;;  %v10082_v4 = vld [vmem:[#allocation5 + $0xad4] ss:$8 sps:$4 sm:$0xff]  }
 0x272   :  { %3590 = vmatprep.subr.bf16.mxu0 %v9914_v8  ;;  %v9998_v8 = vld [vmem:[#allocation5 + $0x914] ss:$8 sps:$4 sm:$0xff]  }
 0x275   :  { %3591 = vmatpush1.bf16.msra.mxu0 %v9912_v9  ;;  %v9996_v9 = vld [vmem:[#allocation5 + $0x910] ss:$8 sps:$4 sm:$0xff]  }
 0x276   :  { %3592 = vmatprep.subr.bf16.mxu0 %v9917_v10  ;;  %v10001_v10 = vld [vmem:[#allocation5 + $0x924] ss:$8 sps:$4 sm:$0xff]  }
 0x279   :  { %3593 = vmatpush1.bf16.msra.mxu0 %v9915_v11  ;;  %v9999_v11 = vld [vmem:[#allocation5 + $0x920] ss:$8 sps:$4 sm:$0xff]  }
 0x27a   :  { %3594 = vmatprep.subr.bf16.mxu0 %v9920_v12  ;;  %v10004_v12 = vld [vmem:[#allocation5 + $0x934] ss:$8 sps:$4 sm:$0xff]  }
 0x27d   :  { %3595 = vmatpush1.bf16.msra.mxu0 %v9918_v13  ;;  %v10002_v13 = vld [vmem:[#allocation5 + $0x930] ss:$8 sps:$4 sm:$0xff]  }
 0x27e   :  { %3596 = vmatprep.subr.bf16.mxu0 %v9923_v14  ;;  %v10007_v14 = vld [vmem:[#allocation5 + $0x944] ss:$8 sps:$4 sm:$0xff]  }
 0x281   :  { %3597 = vmatpush1.bf16.msra.mxu0 %v9921_v15  ;;  %v10005_v15 = vld [vmem:[#allocation5 + $0x940] ss:$8 sps:$4 sm:$0xff]  }
 0x282   :  { %3598 = vmatprep.subr.bf16.mxu0 %v9926_v16  ;;  %v10010_v16 = vld [vmem:[#allocation5 + $0x954] ss:$8 sps:$4 sm:$0xff]  }
 0x285   :  { %3599 = vmatpush1.bf16.msra.mxu0 %v9924_v17  ;;  %v10008_v17 = vld [vmem:[#allocation5 + $0x950] ss:$8 sps:$4 sm:$0xff]  }
 0x286   :  { %3600 = vmatprep.subr.bf16.mxu0 %v9929_v18  ;;  %v10013_v18 = vld [vmem:[#allocation5 + $0x964] ss:$8 sps:$4 sm:$0xff]  }
 0x289   :  { %3601 = vmatpush1.bf16.msra.mxu0 %v9927_v19  ;;  %v10011_v19 = vld [vmem:[#allocation5 + $0x960] ss:$8 sps:$4 sm:$0xff]  }
 0x28a   :  { %3602 = vmatprep.subr.bf16.mxu0 %v9932_v20  ;;  %v10016_v20 = vld [vmem:[#allocation5 + $0x974] ss:$8 sps:$4 sm:$0xff]  }
 0x28d   :  { %3603 = vmatpush1.bf16.msra.mxu0 %v9930_v21  ;;  %v10014_v21 = vld [vmem:[#allocation5 + $0x970] ss:$8 sps:$4 sm:$0xff]  }
 0x28e   :  { %3604 = vmatprep.subr.bf16.mxu0 %v9935_v22  ;;  %v10019_v22 = vld [vmem:[#allocation5 + $0x984] ss:$8 sps:$4 sm:$0xff]  }
 0x291   :  { %3605 = vmatpush1.bf16.msra.mxu0 %v9933_v23  ;;  %v10017_v23 = vld [vmem:[#allocation5 + $0x980] ss:$8 sps:$4 sm:$0xff]  }
 0x292   :  { %3606 = vmatprep.subr.bf16.mxu0 %v9938_v24  ;;  %v10022_v24 = vld [vmem:[#allocation5 + $0x994] ss:$8 sps:$4 sm:$0xff]  }
 0x295   :  { %3607 = vmatpush1.bf16.msra.mxu0 %v9936_v25  ;;  %v10020_v25 = vld [vmem:[#allocation5 + $0x990] ss:$8 sps:$4 sm:$0xff]  }
 0x296   :  { %3608 = vmatprep.subr.bf16.mxu0 %v9941_v26  ;;  %v10025_v26 = vld [vmem:[#allocation5 + $0x9a4] ss:$8 sps:$4 sm:$0xff]  }
 0x299   :  { %3609 = vmatpush1.bf16.msra.mxu0 %v9939_v27  ;;  %v10023_v27 = vld [vmem:[#allocation5 + $0x9a0] ss:$8 sps:$4 sm:$0xff]  }
 0x29a   :  { %3610 = vmatprep.subr.bf16.mxu0 %v9944_v28  ;;  %v10028_v28 = vld [vmem:[#allocation5 + $0x9b4] ss:$8 sps:$4 sm:$0xff]  }
 0x29d   :  { %3611 = vmatpush1.bf16.msra.mxu0 %v9942_v29  ;;  %v10026_v29 = vld [vmem:[#allocation5 + $0x9b0] ss:$8 sps:$4 sm:$0xff]  }
 0x29e   :  { %3621 = vmatprep.subr.bf16.mxu0 %v9947_v31  ;;  %v10029_v31 = vld [vmem:[#allocation5 + $0x9c0] ss:$8 sps:$4 sm:$0xff]  }
 0x2a0   :  { %3613 = vmatmul.mubr.bf16.vlgmr.msra.gmra.mrb[0].mxu0 %v191_v33  ;;  %v10032_v33 = vld [vmem:[#allocation5 + $0x9d0] ss:$8 sps:$4 sm:$0xff]  }
 0x2a1   :  { %3622 = vmatpush1.bf16.msra.mxu0 %v9945_v34  ;;  %3653 = vmatprep.mubr.bf16.mxu0 %v194_v35  ;;  %v10037_v34 = vld [vmem:[#allocation5 + $0x9e4] ss:$8 sps:$4 sm:$0xff]   ;;  %v10035_v35 = vld [vmem:[#allocation5 + $0x9e0] ss:$8 sps:$4 sm:$0xff]  }
 0x2a2   :  { %3623 = vmatprep.subr.bf16.mxu0 %v9950_v36  ;;  %v10040_v36 = vld [vmem:[#allocation5 + $0x9f4] ss:$8 sps:$4 sm:$0xff]  }
 0x2a5   :  { %3624 = vmatpush1.bf16.msra.mxu0 %v9948_v37  ;;  %v10038_v37 = vld [vmem:[#allocation5 + $0x9f0] ss:$8 sps:$4 sm:$0xff]  }
 0x2a6   :  { %3625 = vmatprep.subr.bf16.mxu0 %v9953_v38  ;;  %v163_v38 = vld [vmem:[#allocation2 + $0x90] sm:$0xff] }
 0x2a9   :  { %3626 = vmatpush1.bf16.msra.mxu0 %v9951_v39  ;;  %v10043_v39 = vld [vmem:[#allocation5 + $0xa04] ss:$8 sps:$4 sm:$0xff]  }
 0x2aa   :  { %3627 = vmatprep.subr.bf16.mxu0 %v9956_v40  ;;  %v166_v40 = vld [vmem:[#allocation2 + $0xa8] sm:$0xff] }
 0x2ad   :  { %3628 = vmatpush1.bf16.msra.mxu0 %v9954_v41  ;;  %v195_v41 = vpack.c.bf16 %v163_v38, %v163_v38  ;;  %v10127_v38 = vld [vmem:[#allocation5 + $0xbc4] ss:$8 sps:$4 sm:$0xff]  }
 0x2ae   :  { %3629 = vmatprep.subr.bf16.mxu0 %v9959_v42  ;;  %v10041_v42 = vld [vmem:[#allocation5 + $0xa00] ss:$8 sps:$4 sm:$0xff]  }
 0x2b1   :  { %3630 = vmatpush1.bf16.msra.mxu0 %v9957_v43  ;;  %v198_v43 = vpack.c.bf16 %v166_v40, %v166_v40  ;;  %v10130_v40 = vld [vmem:[#allocation5 + $0xbd4] ss:$8 sps:$4 sm:$0xff]  }
 0x2b2   :  { %3631 = vmatprep.subr.bf16.mxu0 %v9962_v44  ;;  %v10046_v44 = vld [vmem:[#allocation5 + $0xa14] ss:$8 sps:$4 sm:$0xff]  }
 0x2b5   :  { %3632 = vmatpush1.bf16.msra.mxu0 %v9960_v45  ;;  %v10044_v45 = vld [vmem:[#allocation5 + $0xa10] ss:$8 sps:$4 sm:$0xff]  }
 0x2b6   :  { %3633 = vmatprep.subr.bf16.mxu0 %v9965_v46  ;;  %v10049_v46 = vld [vmem:[#allocation5 + $0xa24] ss:$8 sps:$4 sm:$0xff]  }
 0x2b9   :  { %3634 = vmatpush1.bf16.msra.mxu0 %v9963_v47  ;;  %v10047_v47 = vld [vmem:[#allocation5 + $0xa20] ss:$8 sps:$4 sm:$0xff]  }
 0x2ba   :  { %3635 = vmatprep.subr.bf16.mxu0 %v9968_v48  ;;  %v10052_v48 = vld [vmem:[#allocation5 + $0xa34] ss:$8 sps:$4 sm:$0xff]  }
 0x2bd   :  { %3636 = vmatpush1.bf16.msra.mxu0 %v9966_v49  ;;  %v10050_v49 = vld [vmem:[#allocation5 + $0xa30] ss:$8 sps:$4 sm:$0xff]  }
 0x2be   :  { %3637 = vmatprep.subr.bf16.mxu0 %v9971_v50  ;;  %v10055_v50 = vld [vmem:[#allocation5 + $0xa44] ss:$8 sps:$4 sm:$0xff]  }
 0x2c1   :  { %3638 = vmatpush1.bf16.msra.mxu0 %v9969_v51  ;;  %v10053_v51 = vld [vmem:[#allocation5 + $0xa40] ss:$8 sps:$4 sm:$0xff]  }
 0x2c2   :  { %3639 = vmatprep.subr.bf16.mxu0 %v9974_v52  ;;  %v10058_v52 = vld [vmem:[#allocation5 + $0xa54] ss:$8 sps:$4 sm:$0xff]  }
 0x2c5   :  { %3640 = vmatpush1.bf16.msra.mxu0 %v9972_v53  ;;  %v10056_v53 = vld [vmem:[#allocation5 + $0xa50] ss:$8 sps:$4 sm:$0xff]  }
 0x2c6   :  { %3641 = vmatprep.subr.bf16.mxu0 %v9977_v54  ;;  %v10061_v54 = vld [vmem:[#allocation5 + $0xa64] ss:$8 sps:$4 sm:$0xff]  }
 0x2c9   :  { %3642 = vmatpush1.bf16.msra.mxu0 %v9975_v55  ;;  %v10059_v55 = vld [vmem:[#allocation5 + $0xa60] ss:$8 sps:$4 sm:$0xff]  }
 0x2ca   :  { %3643 = vmatprep.subr.bf16.mxu0 %v9980_v56  ;;  %v10064_v56 = vld [vmem:[#allocation5 + $0xa74] ss:$8 sps:$4 sm:$0xff]  }
 0x2cd   :  { %3644 = vmatpush1.bf16.msra.mxu0 %v9978_v57  ;;  %v10062_v57 = vld [vmem:[#allocation5 + $0xa70] ss:$8 sps:$4 sm:$0xff]  }
 0x2ce   :  { %3645 = vmatprep.subr.bf16.mxu0 %v9983_v58  ;;  %v10067_v58 = vld [vmem:[#allocation5 + $0xa84] ss:$8 sps:$4 sm:$0xff]  }
 0x2d1   :  { %3646 = vmatpush1.bf16.msra.mxu0 %v9981_v59  ;;  %v10065_v59 = vld [vmem:[#allocation5 + $0xa80] ss:$8 sps:$4 sm:$0xff]  }
 0x2d2   :  { %3647 = vmatprep.subr.bf16.mxu0 %v9986_v60  ;;  %v10070_v60 = vld [vmem:[#allocation5 + $0xa94] ss:$8 sps:$4 sm:$0xff]  }
 0x2d5   :  { %3648 = vmatpush1.bf16.msra.mxu0 %v9984_v61  ;;  %v10068_v61 = vld [vmem:[#allocation5 + $0xa90] ss:$8 sps:$4 sm:$0xff]  }
 0x2d6   :  { %3649 = vmatprep.subr.bf16.mxu0 %v9989_v62  ;;  %v10073_v62 = vld [vmem:[#allocation5 + $0xaa4] ss:$8 sps:$4 sm:$0xff]  }
 0x2d9   :  { %3650 = vmatpush1.bf16.msra.mxu0 %v9987_v63  ;;  %v10071_v63 = vld [vmem:[#allocation5 + $0xaa0] ss:$8 sps:$4 sm:$0xff]  }
 0x2da   :  { %3651 = vmatprep.subr.bf16.mxu0 %v9992_v0  ;;  %v10076_v0 = vld [vmem:[#allocation5 + $0xab4] ss:$8 sps:$4 sm:$0xff]  }
 0x2dd   :  { %3652 = vmatpush1.bf16.msra.mxu0 %v9990_v1  ;;  %v10074_v1 = vld [vmem:[#allocation5 + $0xab0] ss:$8 sps:$4 sm:$0xff]  }
 0x2de   :  { %3662 = vmatprep.subr.bf16.mxu0 %v9995_v3  ;;  %v10077_v3 = vld [vmem:[#allocation5 + $0xac0] ss:$8 sps:$4 sm:$0xff]  }
 0x2e0   :  { %3654 = vmatmul.mubr.bf16.vlgmr.msra.gmra.mrb[0].mxu0 %v193_v5  ;;  %v10080_v5 = vld [vmem:[#allocation5 + $0xad0] ss:$8 sps:$4 sm:$0xff]  }
 0x2e1   :  { %3663 = vmatpush1.bf16.msra.mxu0 %v9993_v6  ;;  %3694 = vmatprep.mubr.bf16.mxu0 %v196_v7  ;;  %v10085_v6 = vld [vmem:[#allocation5 + $0xae4] ss:$8 sps:$4 sm:$0xff]   ;;  %v10083_v7 = vld [vmem:[#allocation5 + $0xae0] ss:$8 sps:$4 sm:$0xff]  }
 0x2e2   :  { %3664 = vmatprep.subr.bf16.mxu0 %v9998_v8  ;;  %v10088_v8 = vld [vmem:[#allocation5 + $0xaf4] ss:$8 sps:$4 sm:$0xff]  }
 0x2e5   :  { %3665 = vmatpush1.bf16.msra.mxu0 %v9996_v9  ;;  %v10086_v9 = vld [vmem:[#allocation5 + $0xaf0] ss:$8 sps:$4 sm:$0xff]  }
 0x2e6   :  { %3666 = vmatprep.subr.bf16.mxu0 %v10001_v10  ;;  %v165_v10 = vld [vmem:[#allocation2 + $0xa0] sm:$0xff] }
 0x2e9   :  { %3667 = vmatpush1.bf16.msra.mxu0 %v9999_v11  ;;  %v10091_v11 = vld [vmem:[#allocation5 + $0xb04] ss:$8 sps:$4 sm:$0xff]  }
 0x2ea   :  { %3668 = vmatprep.subr.bf16.mxu0 %v10004_v12  ;;  %v168_v12 = vld [vmem:[#allocation2 + $0xb8] sm:$0xff] }
 0x2ed   :  { %3669 = vmatpush1.bf16.msra.mxu0 %v10002_v13  ;;  %v197_v13 = vpack.c.bf16 %v165_v10, %v165_v10  ;;  %v10175_v10 = vld [vmem:[#allocation5 + $0xcc4] ss:$8 sps:$4 sm:$0xff]  }
 0x2ee   :  { %3670 = vmatprep.subr.bf16.mxu0 %v10007_v14  ;;  %v10089_v14 = vld [vmem:[#allocation5 + $0xb00] ss:$8 sps:$4 sm:$0xff]  }
 0x2f1   :  { %3671 = vmatpush1.bf16.msra.mxu0 %v10005_v15  ;;  %v200_v15 = vpack.c.bf16 %v168_v12, %v168_v12  ;;  %v10178_v12 = vld [vmem:[#allocation5 + $0xcd4] ss:$8 sps:$4 sm:$0xff]  }
 0x2f2   :  { %3672 = vmatprep.subr.bf16.mxu0 %v10010_v16  ;;  %v10094_v16 = vld [vmem:[#allocation5 + $0xb14] ss:$8 sps:$4 sm:$0xff]  }
 0x2f5   :  { %3673 = vmatpush1.bf16.msra.mxu0 %v10008_v17  ;;  %v10092_v17 = vld [vmem:[#allocation5 + $0xb10] ss:$8 sps:$4 sm:$0xff]  }
 0x2f6   :  { %3674 = vmatprep.subr.bf16.mxu0 %v10013_v18  ;;  %v10097_v18 = vld [vmem:[#allocation5 + $0xb24] ss:$8 sps:$4 sm:$0xff]  }
 0x2f9   :  { %3675 = vmatpush1.bf16.msra.mxu0 %v10011_v19  ;;  %v10095_v19 = vld [vmem:[#allocation5 + $0xb20] ss:$8 sps:$4 sm:$0xff]  }
 0x2fa   :  { %3676 = vmatprep.subr.bf16.mxu0 %v10016_v20  ;;  %v10100_v20 = vld [vmem:[#allocation5 + $0xb34] ss:$8 sps:$4 sm:$0xff]  }
 0x2fd   :  { %3677 = vmatpush1.bf16.msra.mxu0 %v10014_v21  ;;  %v10098_v21 = vld [vmem:[#allocation5 + $0xb30] ss:$8 sps:$4 sm:$0xff]  }
 0x2fe   :  { %3678 = vmatprep.subr.bf16.mxu0 %v10019_v22  ;;  %v10103_v22 = vld [vmem:[#allocation5 + $0xb44] ss:$8 sps:$4 sm:$0xff]  }
 0x301   :  { %3679 = vmatpush1.bf16.msra.mxu0 %v10017_v23  ;;  %v10101_v23 = vld [vmem:[#allocation5 + $0xb40] ss:$8 sps:$4 sm:$0xff]  }
 0x302   :  { %3680 = vmatprep.subr.bf16.mxu0 %v10022_v24  ;;  %v10106_v24 = vld [vmem:[#allocation5 + $0xb54] ss:$8 sps:$4 sm:$0xff]  }
 0x305   :  { %3681 = vmatpush1.bf16.msra.mxu0 %v10020_v25  ;;  %v10104_v25 = vld [vmem:[#allocation5 + $0xb50] ss:$8 sps:$4 sm:$0xff]  }
 0x306   :  { %3682 = vmatprep.subr.bf16.mxu0 %v10025_v26  ;;  %v10109_v26 = vld [vmem:[#allocation5 + $0xb64] ss:$8 sps:$4 sm:$0xff]  }
 0x309   :  { %3683 = vmatpush1.bf16.msra.mxu0 %v10023_v27  ;;  %v10107_v27 = vld [vmem:[#allocation5 + $0xb60] ss:$8 sps:$4 sm:$0xff]  }
 0x30a   :  { %3684 = vmatprep.subr.bf16.mxu0 %v10028_v28  ;;  %v10112_v28 = vld [vmem:[#allocation5 + $0xb74] ss:$8 sps:$4 sm:$0xff]  }
 0x30d   :  { %3685 = vmatpush1.bf16.msra.mxu0 %v10026_v29  ;;  %v10110_v29 = vld [vmem:[#allocation5 + $0xb70] ss:$8 sps:$4 sm:$0xff]  }
 0x30e   :  { %3686 = vmatprep.subr.bf16.mxu0 %v10031_v30  ;;  %v10115_v30 = vld [vmem:[#allocation5 + $0xb84] ss:$8 sps:$4 sm:$0xff]  }
 0x311   :  { %3687 = vmatpush1.bf16.msra.mxu0 %v10029_v31  ;;  %v10113_v31 = vld [vmem:[#allocation5 + $0xb80] ss:$8 sps:$4 sm:$0xff]  }
 0x312   :  { %3688 = vmatprep.subr.bf16.mxu0 %v10034_v32  ;;  %v10118_v32 = vld [vmem:[#allocation5 + $0xb94] ss:$8 sps:$4 sm:$0xff]  }
 0x315   :  { %3689 = vmatpush1.bf16.msra.mxu0 %v10032_v33  ;;  %v10116_v33 = vld [vmem:[#allocation5 + $0xb90] ss:$8 sps:$4 sm:$0xff]  }
 0x316   :  { %3690 = vmatprep.subr.bf16.mxu0 %v10037_v34  ;;  %v10121_v34 = vld [vmem:[#allocation5 + $0xba4] ss:$8 sps:$4 sm:$0xff]  }
 0x319   :  { %3691 = vmatpush1.bf16.msra.mxu0 %v10035_v35  ;;  %v10119_v35 = vld [vmem:[#allocation5 + $0xba0] ss:$8 sps:$4 sm:$0xff]  }
 0x31a   :  { %3692 = vmatprep.subr.bf16.mxu0 %v10040_v36  ;;  %v10124_v36 = vld [vmem:[#allocation5 + $0xbb4] ss:$8 sps:$4 sm:$0xff]  }
 0x31d   :  { %3693 = vmatpush1.bf16.msra.mxu0 %v10038_v37  ;;  %v10122_v37 = vld [vmem:[#allocation5 + $0xbb0] ss:$8 sps:$4 sm:$0xff]  }
 0x31e   :  { %3703 = vmatprep.subr.bf16.mxu0 %v10043_v39  ;;  %v10125_v39 = vld [vmem:[#allocation5 + $0xbc0] ss:$8 sps:$4 sm:$0xff]  }
 0x320   :  { %3695 = vmatmul.mubr.bf16.vlgmr.msra.gmra.mrb[0].mxu0 %v195_v41  ;;  %v10128_v41 = vld [vmem:[#allocation5 + $0xbd0] ss:$8 sps:$4 sm:$0xff]  }
 0x321   :  { %3704 = vmatpush1.bf16.msra.mxu0 %v10041_v42  ;;  %3735 = vmatprep.mubr.bf16.mxu0 %v198_v43  ;;  %v10133_v42 = vld [vmem:[#allocation5 + $0xbe4] ss:$8 sps:$4 sm:$0xff]   ;;  %v10131_v43 = vld [vmem:[#allocation5 + $0xbe0] ss:$8 sps:$4 sm:$0xff]  }
 0x322   :  { %3705 = vmatprep.subr.bf16.mxu0 %v10046_v44  ;;  %v10136_v44 = vld [vmem:[#allocation5 + $0xbf4] ss:$8 sps:$4 sm:$0xff]  }
 0x325   :  { %3706 = vmatpush1.bf16.msra.mxu0 %v10044_v45  ;;  %v10134_v45 = vld [vmem:[#allocation5 + $0xbf0] ss:$8 sps:$4 sm:$0xff]  }
 0x326   :  { %3707 = vmatprep.subr.bf16.mxu0 %v10049_v46  ;;  %v167_v46 = vld [vmem:[#allocation2 + $0xb0] sm:$0xff] }
 0x329   :  { %3708 = vmatpush1.bf16.msra.mxu0 %v10047_v47  ;;  %v10139_v47 = vld [vmem:[#allocation5 + $0xc04] ss:$8 sps:$4 sm:$0xff]  }
 0x32a   :  { %3709 = vmatprep.subr.bf16.mxu0 %v10052_v48  ;;  %v170_v48 = vld [vmem:[#allocation2 + $0xc8] sm:$0xff] }
 0x32d   :  { %3710 = vmatpush1.bf16.msra.mxu0 %v10050_v49  ;;  %v199_v49 = vpack.c.bf16 %v167_v46, %v167_v46  ;;  %v10223_v46 = vld [vmem:[#allocation5 + $0xdc4] ss:$8 sps:$4 sm:$0xff]  }
 0x32e   :  { %3711 = vmatprep.subr.bf16.mxu0 %v10055_v50  ;;  %v10137_v50 = vld [vmem:[#allocation5 + $0xc00] ss:$8 sps:$4 sm:$0xff]  }
 0x331   :  { %3712 = vmatpush1.bf16.msra.mxu0 %v10053_v51  ;;  %v202_v51 = vpack.c.bf16 %v170_v48, %v170_v48  ;;  %v10226_v48 = vld [vmem:[#allocation5 + $0xdd4] ss:$8 sps:$4 sm:$0xff]  }
 0x332   :  { %3713 = vmatprep.subr.bf16.mxu0 %v10058_v52  ;;  %v10142_v52 = vld [vmem:[#allocation5 + $0xc14] ss:$8 sps:$4 sm:$0xff]  }
 0x335   :  { %3714 = vmatpush1.bf16.msra.mxu0 %v10056_v53  ;;  %v10140_v53 = vld [vmem:[#allocation5 + $0xc10] ss:$8 sps:$4 sm:$0xff]  }
 0x336   :  { %3715 = vmatprep.subr.bf16.mxu0 %v10061_v54  ;;  %v10145_v54 = vld [vmem:[#allocation5 + $0xc24] ss:$8 sps:$4 sm:$0xff]  }
 0x339   :  { %3716 = vmatpush1.bf16.msra.mxu0 %v10059_v55  ;;  %v10143_v55 = vld [vmem:[#allocation5 + $0xc20] ss:$8 sps:$4 sm:$0xff]  }
 0x33a   :  { %3717 = vmatprep.subr.bf16.mxu0 %v10064_v56  ;;  %v10148_v56 = vld [vmem:[#allocation5 + $0xc34] ss:$8 sps:$4 sm:$0xff]  }
 0x33d   :  { %3718 = vmatpush1.bf16.msra.mxu0 %v10062_v57  ;;  %v10146_v57 = vld [vmem:[#allocation5 + $0xc30] ss:$8 sps:$4 sm:$0xff]  }
 0x33e   :  { %3719 = vmatprep.subr.bf16.mxu0 %v10067_v58  ;;  %v10151_v58 = vld [vmem:[#allocation5 + $0xc44] ss:$8 sps:$4 sm:$0xff]  }
 0x341   :  { %3720 = vmatpush1.bf16.msra.mxu0 %v10065_v59  ;;  %v10149_v59 = vld [vmem:[#allocation5 + $0xc40] ss:$8 sps:$4 sm:$0xff]  }
 0x342   :  { %3721 = vmatprep.subr.bf16.mxu0 %v10070_v60  ;;  %v10154_v60 = vld [vmem:[#allocation5 + $0xc54] ss:$8 sps:$4 sm:$0xff]  }
 0x345   :  { %3722 = vmatpush1.bf16.msra.mxu0 %v10068_v61  ;;  %v10152_v61 = vld [vmem:[#allocation5 + $0xc50] ss:$8 sps:$4 sm:$0xff]  }
 0x346   :  { %3723 = vmatprep.subr.bf16.mxu0 %v10073_v62  ;;  %v10157_v62 = vld [vmem:[#allocation5 + $0xc64] ss:$8 sps:$4 sm:$0xff]  }
 0x349   :  { %3724 = vmatpush1.bf16.msra.mxu0 %v10071_v63  ;;  %v10155_v63 = vld [vmem:[#allocation5 + $0xc60] ss:$8 sps:$4 sm:$0xff]  }
 0x34a   :  { %3725 = vmatprep.subr.bf16.mxu0 %v10076_v0  ;;  %v10160_v0 = vld [vmem:[#allocation5 + $0xc74] ss:$8 sps:$4 sm:$0xff]  }
 0x34d   :  { %3726 = vmatpush1.bf16.msra.mxu0 %v10074_v1  ;;  %v10158_v1 = vld [vmem:[#allocation5 + $0xc70] ss:$8 sps:$4 sm:$0xff]  }
 0x34e   :  { %3727 = vmatprep.subr.bf16.mxu0 %v10079_v2  ;;  %v10163_v2 = vld [vmem:[#allocation5 + $0xc84] ss:$8 sps:$4 sm:$0xff]  }
 0x351   :  { %3728 = vmatpush1.bf16.msra.mxu0 %v10077_v3  ;;  %v10161_v3 = vld [vmem:[#allocation5 + $0xc80] ss:$8 sps:$4 sm:$0xff]  }
 0x352   :  { %3729 = vmatprep.subr.bf16.mxu0 %v10082_v4  ;;  %v10166_v4 = vld [vmem:[#allocation5 + $0xc94] ss:$8 sps:$4 sm:$0xff]  }
 0x355   :  { %3730 = vmatpush1.bf16.msra.mxu0 %v10080_v5  ;;  %v10164_v5 = vld [vmem:[#allocation5 + $0xc90] ss:$8 sps:$4 sm:$0xff]  }
 0x356   :  { %3731 = vmatprep.subr.bf16.mxu0 %v10085_v6  ;;  %v10169_v6 = vld [vmem:[#allocation5 + $0xca4] ss:$8 sps:$4 sm:$0xff]  }
 0x359   :  { %3732 = vmatpush1.bf16.msra.mxu0 %v10083_v7  ;;  %v10167_v7 = vld [vmem:[#allocation5 + $0xca0] ss:$8 sps:$4 sm:$0xff]  }
 0x35a   :  { %3733 = vmatprep.subr.bf16.mxu0 %v10088_v8  ;;  %v10172_v8 = vld [vmem:[#allocation5 + $0xcb4] ss:$8 sps:$4 sm:$0xff]  }
 0x35d   :  { %3734 = vmatpush1.bf16.msra.mxu0 %v10086_v9  ;;  %v10170_v9 = vld [vmem:[#allocation5 + $0xcb0] ss:$8 sps:$4 sm:$0xff]  }
 0x35e   :  { %3744 = vmatprep.subr.bf16.mxu0 %v10091_v11  ;;  %v10173_v11 = vld [vmem:[#allocation5 + $0xcc0] ss:$8 sps:$4 sm:$0xff]  }
 0x360   :  { %3736 = vmatmul.mubr.bf16.vlgmr.msra.gmra.mrb[0].mxu0 %v197_v13  ;;  %v10176_v13 = vld [vmem:[#allocation5 + $0xcd0] ss:$8 sps:$4 sm:$0xff]  }
 0x361   :  { %3745 = vmatpush1.bf16.msra.mxu0 %v10089_v14  ;;  %3776 = vmatprep.mubr.bf16.mxu0 %v200_v15  ;;  %v10181_v14 = vld [vmem:[#allocation5 + $0xce4] ss:$8 sps:$4 sm:$0xff]   ;;  %v10179_v15 = vld [vmem:[#allocation5 + $0xce0] ss:$8 sps:$4 sm:$0xff]  }
 0x362   :  { %3746 = vmatprep.subr.bf16.mxu0 %v10094_v16  ;;  %v10184_v16 = vld [vmem:[#allocation5 + $0xcf4] ss:$8 sps:$4 sm:$0xff]  }
 0x365   :  { %3747 = vmatpush1.bf16.msra.mxu0 %v10092_v17  ;;  %v10182_v17 = vld [vmem:[#allocation5 + $0xcf0] ss:$8 sps:$4 sm:$0xff]  }
 0x366   :  { %3748 = vmatprep.subr.bf16.mxu0 %v10097_v18  ;;  %v169_v18 = vld [vmem:[#allocation2 + $0xc0] sm:$0xff] }
 0x369   :  { %3749 = vmatpush1.bf16.msra.mxu0 %v10095_v19  ;;  %v10187_v19 = vld [vmem:[#allocation5 + $0xd04] ss:$8 sps:$4 sm:$0xff]  }
 0x36a   :  { %3750 = vmatprep.subr.bf16.mxu0 %v10100_v20  ;;  %v172_v20 = vld [vmem:[#allocation2 + $0xd8] sm:$0xff] }
 0x36d   :  { %3751 = vmatpush1.bf16.msra.mxu0 %v10098_v21  ;;  %v201_v21 = vpack.c.bf16 %v169_v18, %v169_v18  ;;  %v10346_v18 = vld [vmem:[#allocation8 + $0x50] ss:$8 sps:$4 sm:$0xff]  }
 0x36e   :  { %3752 = vmatprep.subr.bf16.mxu0 %v10103_v22  ;;  %v10185_v22 = vld [vmem:[#allocation5 + $0xd00] ss:$8 sps:$4 sm:$0xff]  }
 0x371   :  { %3753 = vmatpush1.bf16.msra.mxu0 %v10101_v23  ;;  %v204_v23 = vpack.c.bf16 %v172_v20, %v172_v20  ;;  %v10251_v20 = vld [vmem:[#allocation5 + $0xe60] ss:$8 sps:$4 sm:$0xff]  }
 0x372   :  { %3754 = vmatprep.subr.bf16.mxu0 %v10106_v24  ;;  %v10190_v24 = vld [vmem:[#allocation5 + $0xd14] ss:$8 sps:$4 sm:$0xff]  }
 0x375   :  { %3755 = vmatpush1.bf16.msra.mxu0 %v10104_v25  ;;  %v10188_v25 = vld [vmem:[#allocation5 + $0xd10] ss:$8 sps:$4 sm:$0xff]  }
 0x376   :  { %3756 = vmatprep.subr.bf16.mxu0 %v10109_v26  ;;  %v10193_v26 = vld [vmem:[#allocation5 + $0xd24] ss:$8 sps:$4 sm:$0xff]  }
 0x379   :  { %3757 = vmatpush1.bf16.msra.mxu0 %v10107_v27  ;;  %v10191_v27 = vld [vmem:[#allocation5 + $0xd20] ss:$8 sps:$4 sm:$0xff]  }
 0x37a   :  { %3758 = vmatprep.subr.bf16.mxu0 %v10112_v28  ;;  %v10196_v28 = vld [vmem:[#allocation5 + $0xd34] ss:$8 sps:$4 sm:$0xff]  }
 0x37d   :  { %3759 = vmatpush1.bf16.msra.mxu0 %v10110_v29  ;;  %v10194_v29 = vld [vmem:[#allocation5 + $0xd30] ss:$8 sps:$4 sm:$0xff]  }
 0x37e   :  { %3760 = vmatprep.subr.bf16.mxu0 %v10115_v30  ;;  %v10199_v30 = vld [vmem:[#allocation5 + $0xd44] ss:$8 sps:$4 sm:$0xff]  }
 0x381   :  { %3761 = vmatpush1.bf16.msra.mxu0 %v10113_v31  ;;  %v10197_v31 = vld [vmem:[#allocation5 + $0xd40] ss:$8 sps:$4 sm:$0xff]  }
 0x382   :  { %3762 = vmatprep.subr.bf16.mxu0 %v10118_v32  ;;  %v10202_v32 = vld [vmem:[#allocation5 + $0xd54] ss:$8 sps:$4 sm:$0xff]  }
 0x385   :  { %3763 = vmatpush1.bf16.msra.mxu0 %v10116_v33  ;;  %v10200_v33 = vld [vmem:[#allocation5 + $0xd50] ss:$8 sps:$4 sm:$0xff]  }
 0x386   :  { %3764 = vmatprep.subr.bf16.mxu0 %v10121_v34  ;;  %v10205_v34 = vld [vmem:[#allocation5 + $0xd64] ss:$8 sps:$4 sm:$0xff]  }
 0x389   :  { %3765 = vmatpush1.bf16.msra.mxu0 %v10119_v35  ;;  %v10203_v35 = vld [vmem:[#allocation5 + $0xd60] ss:$8 sps:$4 sm:$0xff]  }
 0x38a   :  { %3766 = vmatprep.subr.bf16.mxu0 %v10124_v36  ;;  %v10208_v36 = vld [vmem:[#allocation5 + $0xd74] ss:$8 sps:$4 sm:$0xff]  }
 0x38d   :  { %3767 = vmatpush1.bf16.msra.mxu0 %v10122_v37  ;;  %v10206_v37 = vld [vmem:[#allocation5 + $0xd70] ss:$8 sps:$4 sm:$0xff]  }
 0x38e   :  { %3768 = vmatprep.subr.bf16.mxu0 %v10127_v38  ;;  %v10211_v38 = vld [vmem:[#allocation5 + $0xd84] ss:$8 sps:$4 sm:$0xff]  }
 0x391   :  { %3769 = vmatpush1.bf16.msra.mxu0 %v10125_v39  ;;  %v10209_v39 = vld [vmem:[#allocation5 + $0xd80] ss:$8 sps:$4 sm:$0xff]  }
 0x392   :  { %3770 = vmatprep.subr.bf16.mxu0 %v10130_v40  ;;  %v10214_v40 = vld [vmem:[#allocation5 + $0xd94] ss:$8 sps:$4 sm:$0xff]  }
 0x395   :  { %3771 = vmatpush1.bf16.msra.mxu0 %v10128_v41  ;;  %v10212_v41 = vld [vmem:[#allocation5 + $0xd90] ss:$8 sps:$4 sm:$0xff]  }
 0x396   :  { %3772 = vmatprep.subr.bf16.mxu0 %v10133_v42  ;;  %v10217_v42 = vld [vmem:[#allocation5 + $0xda4] ss:$8 sps:$4 sm:$0xff]  }
 0x399   :  { %3773 = vmatpush1.bf16.msra.mxu0 %v10131_v43  ;;  %v10215_v43 = vld [vmem:[#allocation5 + $0xda0] ss:$8 sps:$4 sm:$0xff]  }
 0x39a   :  { %3774 = vmatprep.subr.bf16.mxu0 %v10136_v44  ;;  %v10220_v44 = vld [vmem:[#allocation5 + $0xdb4] ss:$8 sps:$4 sm:$0xff]  }
 0x39d   :  { %3775 = vmatpush1.bf16.msra.mxu0 %v10134_v45  ;;  %v10218_v45 = vld [vmem:[#allocation5 + $0xdb0] ss:$8 sps:$4 sm:$0xff]  }
 0x39e   :  { %3785 = vmatprep.subr.bf16.mxu0 %v10139_v47  ;;  %v10221_v47 = vld [vmem:[#allocation5 + $0xdc0] ss:$8 sps:$4 sm:$0xff]  }
 0x3a0   :  { %3777 = vmatmul.mubr.bf16.vlgmr.msra.gmra.mrb[0].mxu0 %v199_v49  ;;  %v10224_v49 = vld [vmem:[#allocation5 + $0xdd0] ss:$8 sps:$4 sm:$0xff]  }
 0x3a1   :  { %3786 = vmatpush1.bf16.msra.mxu0 %v10137_v50  ;;  %3817 = vmatprep.mubr.bf16.mxu0 %v202_v51  ;;  %v10229_v50 = vld [vmem:[#allocation5 + $0xde4] ss:$8 sps:$4 sm:$0xff]   ;;  %v10227_v51 = vld [vmem:[#allocation5 + $0xde0] ss:$8 sps:$4 sm:$0xff]  }
 0x3a2   :  { %3787 = vmatprep.subr.bf16.mxu0 %v10142_v52  ;;  %v10232_v52 = vld [vmem:[#allocation5 + $0xdf4] ss:$8 sps:$4 sm:$0xff]  }
 0x3a5   :  { %3788 = vmatpush1.bf16.msra.mxu0 %v10140_v53  ;;  %v10230_v53 = vld [vmem:[#allocation5 + $0xdf0] ss:$8 sps:$4 sm:$0xff]  }
 0x3a6   :  { %3789 = vmatprep.subr.bf16.mxu0 %v10145_v54  ;;  %v171_v54 = vld [vmem:[#allocation2 + $0xd0] sm:$0xff] }
 0x3a9   :  { %3790 = vmatpush1.bf16.msra.mxu0 %v10143_v55  ;;  %v10235_v55 = vld [vmem:[#allocation5 + $0xe04] ss:$8 sps:$4 sm:$0xff]  }
 0x3aa   :  { %3791 = vmatprep.subr.bf16.mxu0 %v10148_v56  ;;  %v174_v56 = vld [vmem:[#allocation2 + $0xe8] sm:$0xff] }
 0x3ad   :  { %3792 = vmatpush1.bf16.msra.mxu0 %v10146_v57  ;;  %v203_v57 = vpack.c.bf16 %v171_v54, %v171_v54  ;;  %v173_v54 = vld [vmem:[#allocation2 + $0xe0] sm:$0xff] }
 0x3ae   :  { %3793 = vmatprep.subr.bf16.mxu0 %v10151_v58  ;;  %v10233_v58 = vld [vmem:[#allocation5 + $0xe00] ss:$8 sps:$4 sm:$0xff]  }
 0x3b1   :  { %3794 = vmatpush1.bf16.msra.mxu0 %v10149_v59  ;;  %v206_v59 = vpack.c.bf16 %v174_v56, %v174_v56  ;;  %v176_v56 = vld [vmem:[#allocation2 + $0xf8] sm:$0xff] }
 0x3b2   :  { %3795 = vmatprep.subr.bf16.mxu0 %v10154_v60  ;;  %v10238_v60 = vld [vmem:[#allocation5 + $0xe14] ss:$8 sps:$4 sm:$0xff]  }
 0x3b5   :  { %3796 = vmatpush1.bf16.msra.mxu0 %v10152_v61  ;;  %v10329_v61 = vld [vmem:[#allocation8 + $0x4] ss:$8 sps:$4 sm:$0xff]  }
 0x3b6   :  { %3797 = vmatprep.subr.bf16.mxu0 %v10157_v62  ;;  %v10331_v62 = vld [vmem:[#allocation8] ss:$8 sps:$4 sm:$0xff]   ;;  %4157 = vmatprep.subr.bf16.mxu1 %v10329_v61  ;;  %v10284_v61 = vld [vmem:[#allocation5 + $0xf10] ss:$8 sps:$4 sm:$0xff]  }
 0x3b7   :  { %4158 = vmatpush1.bf16.msra.mxu1 %v10331_v62  ;;  %v10289_v62 = vld [vmem:[#allocation5 + $0xf24] ss:$8 sps:$4 sm:$0xff]  }
 0x3b9   :  { %3798 = vmatpush1.bf16.msra.mxu0 %v10155_v63  ;;  %v10332_v63 = vld [vmem:[#allocation8 + $0x14] ss:$8 sps:$4 sm:$0xff]  }
 0x3ba   :  { %3799 = vmatprep.subr.bf16.mxu0 %v10160_v0  ;;  %v10236_v0 = vld [vmem:[#allocation5 + $0xe10] ss:$8 sps:$4 sm:$0xff]   ;;  %4159 = vmatprep.subr.bf16.mxu1 %v10332_v63  ;;  %v10287_v63 = vld [vmem:[#allocation5 + $0xf20] ss:$8 sps:$4 sm:$0xff]  }
 0x3bd   :  { %3800 = vmatpush1.bf16.msra.mxu0 %v10158_v1  ;;  %v10241_v1 = vld [vmem:[#allocation5 + $0xe24] ss:$8 sps:$4 sm:$0xff]  }
 0x3be   :  { %3801 = vmatprep.subr.bf16.mxu0 %v10163_v2  ;;  %v10334_v2 = vld [vmem:[#allocation8 + $0x10] ss:$8 sps:$4 sm:$0xff]  }
 0x3bf   :  { %4160 = vmatpush1.bf16.msra.mxu1 %v10334_v2  ;;  %v10295_v2 = vld [vmem:[#allocation5 + $0xf44] ss:$8 sps:$4 sm:$0xff]  }
 0x3c1   :  { %3802 = vmatpush1.bf16.msra.mxu0 %v10161_v3  ;;  %v10335_v3 = vld [vmem:[#allocation8 + $0x24] ss:$8 sps:$4 sm:$0xff]  }
 0x3c2   :  { %3803 = vmatprep.subr.bf16.mxu0 %v10166_v4  ;;  %v10239_v4 = vld [vmem:[#allocation5 + $0xe20] ss:$8 sps:$4 sm:$0xff]   ;;  %4161 = vmatprep.subr.bf16.mxu1 %v10335_v3 }
 0x3c3   :  { %v10293_v3 = vld [vmem:[#allocation5 + $0xf40] ss:$8 sps:$4 sm:$0xff]  }
 0x3c5   :  { %3804 = vmatpush1.bf16.msra.mxu0 %v10164_v5  ;;  %v10244_v5 = vld [vmem:[#allocation5 + $0xe34] ss:$8 sps:$4 sm:$0xff]  }
 0x3c6   :  { %3805 = vmatprep.subr.bf16.mxu0 %v10169_v6  ;;  %v10337_v6 = vld [vmem:[#allocation8 + $0x20] ss:$8 sps:$4 sm:$0xff]  }
 0x3c7   :  { %4162 = vmatpush1.bf16.msra.mxu1 %v10337_v6  ;;  %v10301_v6 = vld [vmem:[#allocation5 + $0xf64] ss:$8 sps:$4 sm:$0xff]  }
 0x3c9   :  { %3806 = vmatpush1.bf16.msra.mxu0 %v10167_v7  ;;  %v10338_v7 = vld [vmem:[#allocation8 + $0x34] ss:$8 sps:$4 sm:$0xff]  }
 0x3ca   :  { %3807 = vmatprep.subr.bf16.mxu0 %v10172_v8  ;;  %v10242_v8 = vld [vmem:[#allocation5 + $0xe30] ss:$8 sps:$4 sm:$0xff]   ;;  %4163 = vmatprep.subr.bf16.mxu1 %v10338_v7  ;;  %v10299_v7 = vld [vmem:[#allocation5 + $0xf60] ss:$8 sps:$4 sm:$0xff]  }
 0x3cd   :  { %3808 = vmatpush1.bf16.msra.mxu0 %v10170_v9  ;;  %v10247_v9 = vld [vmem:[#allocation5 + $0xe44] ss:$8 sps:$4 sm:$0xff]  }
 0x3ce   :  { %3809 = vmatprep.subr.bf16.mxu0 %v10175_v10  ;;  %v10340_v10 = vld [vmem:[#allocation8 + $0x30] ss:$8 sps:$4 sm:$0xff]  }
 0x3cf   :  { %4164 = vmatpush1.bf16.msra.mxu1 %v10340_v10  ;;  %v10307_v10 = vld [vmem:[#allocation5 + $0xf84] ss:$8 sps:$4 sm:$0xff]  }
 0x3d1   :  { %3810 = vmatpush1.bf16.msra.mxu0 %v10173_v11  ;;  %v10341_v11 = vld [vmem:[#allocation8 + $0x44] ss:$8 sps:$4 sm:$0xff]  }
 0x3d2   :  { %3811 = vmatprep.subr.bf16.mxu0 %v10178_v12  ;;  %v10245_v12 = vld [vmem:[#allocation5 + $0xe40] ss:$8 sps:$4 sm:$0xff]   ;;  %4165 = vmatprep.subr.bf16.mxu1 %v10341_v11 }
 0x3d3   :  { %v10305_v11 = vld [vmem:[#allocation5 + $0xf80] ss:$8 sps:$4 sm:$0xff]  }
 0x3d5   :  { %3812 = vmatpush1.bf16.msra.mxu0 %v10176_v13  ;;  %v10250_v13 = vld [vmem:[#allocation5 + $0xe54] ss:$8 sps:$4 sm:$0xff]  }
 0x3d6   :  { %3813 = vmatprep.subr.bf16.mxu0 %v10181_v14  ;;  %v10343_v14 = vld [vmem:[#allocation8 + $0x40] ss:$8 sps:$4 sm:$0xff]  }
 0x3d7   :  { %4166 = vmatpush1.bf16.msra.mxu1 %v10343_v14  ;;  %v10313_v14 = vld [vmem:[#allocation5 + $0xfa4] ss:$8 sps:$4 sm:$0xff]  }
 0x3d9   :  { %3814 = vmatpush1.bf16.msra.mxu0 %v10179_v15  ;;  %v10344_v15 = vld [vmem:[#allocation8 + $0x54] ss:$8 sps:$4 sm:$0xff]  }
 0x3da   :  { %3815 = vmatprep.subr.bf16.mxu0 %v10184_v16  ;;  %v10248_v16 = vld [vmem:[#allocation5 + $0xe50] ss:$8 sps:$4 sm:$0xff]   ;;  %4167 = vmatprep.subr.bf16.mxu1 %v10344_v15  ;;  %v10311_v15 = vld [vmem:[#allocation5 + $0xfa0] ss:$8 sps:$4 sm:$0xff]  }
 0x3db   :  { %4168 = vmatpush1.bf16.msra.mxu1 %v10346_v18  ;;  %v10319_v18 = vld [vmem:[#allocation5 + $0xfc4] ss:$8 sps:$4 sm:$0xff]  }
 0x3dd   :  { %3816 = vmatpush1.bf16.msra.mxu0 %v10182_v17  ;;  %v10253_v17 = vld [vmem:[#allocation5 + $0xe64] ss:$8 sps:$4 sm:$0xff]  }
 0x3de   :  { %3826 = vmatprep.subr.bf16.mxu0 %v10187_v19  ;;  %v10347_v19 = vld [vmem:[#allocation8 + $0x64] ss:$8 sps:$4 sm:$0xff]  }
 0x3df   :  { %4169 = vmatprep.subr.bf16.mxu1 %v10347_v19  ;;  %v10317_v19 = vld [vmem:[#allocation5 + $0xfc0] ss:$8 sps:$4 sm:$0xff]  }
 0x3e0   :  { %3818 = vmatmul.mubr.bf16.vlgmr.msra.gmra.mrb[0].mxu0 %v201_v21  ;;  %v10256_v21 = vld [vmem:[#allocation5 + $0xe74] ss:$8 sps:$4 sm:$0xff]  }
 0x3e1   :  { %3827 = vmatpush1.bf16.msra.mxu0 %v10185_v22  ;;  %3858 = vmatprep.mubr.bf16.mxu0 %v204_v23  ;;  %v10349_v22 = vld [vmem:[#allocation8 + $0x60] ss:$8 sps:$4 sm:$0xff]   ;;  %v10350_v23 = vld [vmem:[#allocation8 + $0x74] ss:$8 sps:$4 sm:$0xff]  }
 0x3e2   :  { %3828 = vmatprep.subr.bf16.mxu0 %v10190_v24  ;;  %v10254_v24 = vld [vmem:[#allocation5 + $0xe70] ss:$8 sps:$4 sm:$0xff]   ;;  %4170 = vmatpush1.bf16.msra.mxu1 %v10349_v22  ;;  %v10325_v22 = vld [vmem:[#allocation5 + $0xfe4] ss:$8 sps:$4 sm:$0xff]  }
 0x3e3   :  { %4171 = vmatprep.subr.bf16.mxu1 %v10350_v23  ;;  %v10323_v23 = vld [vmem:[#allocation5 + $0xfe0] ss:$8 sps:$4 sm:$0xff]  }
 0x3e5   :  { %3829 = vmatpush1.bf16.msra.mxu0 %v10188_v25  ;;  %v10259_v25 = vld [vmem:[#allocation5 + $0xe84] ss:$8 sps:$4 sm:$0xff]  }
 0x3e6   :  { %3830 = vmatprep.subr.bf16.mxu0 %v10193_v26  ;;  %v10352_v26 = vld [vmem:[#allocation8 + $0x70] ss:$8 sps:$4 sm:$0xff]  }
 0x3e7   :  { %4172 = vmatpush1.bf16.msra.mxu1 %v10352_v26  ;;  %v175_v26 = vld [vmem:[#allocation2 + $0xf0] sm:$0xff] }
 0x3e9   :  { %3831 = vmatpush1.bf16.msra.mxu0 %v10191_v27  ;;  %v10353_v27 = vld [vmem:[#allocation8 + $0x84] ss:$8 sps:$4 sm:$0xff]  }
 0x3ea   :  { %3832 = vmatprep.subr.bf16.mxu0 %v10196_v28  ;;  %v10257_v28 = vld [vmem:[#allocation5 + $0xe80] ss:$8 sps:$4 sm:$0xff]   ;;  %4173 = vmatprep.subr.bf16.mxu1 %v10353_v27  ;;  %v207_v27 = vpack.c.bf16 %v175_v26, %v175_v26  ;;  %v4513_v26 = vld [vmem:[#allocation14 + $0x1f0] sm:$0xff] }
 0x3ed   :  { %3833 = vmatpush1.bf16.msra.mxu0 %v10194_v29  ;;  %v10262_v29 = vld [vmem:[#allocation5 + $0xe94] ss:$8 sps:$4 sm:$0xff]  }
 0x3ee   :  { %3834 = vmatprep.subr.bf16.mxu0 %v10199_v30  ;;  %v10355_v30 = vld [vmem:[#allocation8 + $0x80] ss:$8 sps:$4 sm:$0xff]  }
 0x3ef   :  { %4174 = vmatpush1.bf16.msra.mxu1 %v10355_v30  ;;  %v10374_v30 = vld [vmem:[#allocation8 + $0xf4] ss:$8 sps:$4 sm:$0xff]  }
 0x3f1   :  { %3835 = vmatpush1.bf16.msra.mxu0 %v10197_v31  ;;  %v10356_v31 = vld [vmem:[#allocation8 + $0x94] ss:$8 sps:$4 sm:$0xff]  }
 0x3f2   :  { %3836 = vmatprep.subr.bf16.mxu0 %v10202_v32  ;;  %v10260_v32 = vld [vmem:[#allocation5 + $0xe90] ss:$8 sps:$4 sm:$0xff]   ;;  %4175 = vmatprep.subr.bf16.mxu1 %v10356_v31 }
 0x3f3   :  { %v10376_v31 = vld [vmem:[#allocation8 + $0xf0] ss:$8 sps:$4 sm:$0xff]  }
 0x3f5   :  { %3837 = vmatpush1.bf16.msra.mxu0 %v10200_v33  ;;  %v10265_v33 = vld [vmem:[#allocation5 + $0xea4] ss:$8 sps:$4 sm:$0xff]  }
 0x3f6   :  { %3838 = vmatprep.subr.bf16.mxu0 %v10205_v34  ;;  %v10358_v34 = vld [vmem:[#allocation8 + $0x90] ss:$8 sps:$4 sm:$0xff]  }
 0x3f7   :  { %4176 = vmatpush1.bf16.msra.mxu1 %v10358_v34 }
 0x3f9   :  { %3839 = vmatpush1.bf16.msra.mxu0 %v10203_v35  ;;  %v10359_v35 = vld [vmem:[#allocation8 + $0xa4] ss:$8 sps:$4 sm:$0xff]  }
 0x3fa   :  { %3840 = vmatprep.subr.bf16.mxu0 %v10208_v36  ;;  %v10263_v36 = vld [vmem:[#allocation5 + $0xea0] ss:$8 sps:$4 sm:$0xff]   ;;  %4177 = vmatprep.subr.bf16.mxu1 %v10359_v35 }
 0x3fd   :  { %3841 = vmatpush1.bf16.msra.mxu0 %v10206_v37  ;;  %v10268_v37 = vld [vmem:[#allocation5 + $0xeb4] ss:$8 sps:$4 sm:$0xff]  }
 0x3fe   :  { %3842 = vmatprep.subr.bf16.mxu0 %v10211_v38  ;;  %v10361_v38 = vld [vmem:[#allocation8 + $0xa0] ss:$8 sps:$4 sm:$0xff]  }
 0x3ff   :  { %4178 = vmatpush1.bf16.msra.mxu1 %v10361_v38 }
 0x401   :  { %3843 = vmatpush1.bf16.msra.mxu0 %v10209_v39  ;;  %v10362_v39 = vld [vmem:[#allocation8 + $0xb4] ss:$8 sps:$4 sm:$0xff]  }
 0x402   :  { %3844 = vmatprep.subr.bf16.mxu0 %v10214_v40  ;;  %v10266_v40 = vld [vmem:[#allocation5 + $0xeb0] ss:$8 sps:$4 sm:$0xff]   ;;  %4179 = vmatprep.subr.bf16.mxu1 %v10362_v39 }
 0x405   :  { %3845 = vmatpush1.bf16.msra.mxu0 %v10212_v41  ;;  %v10271_v41 = vld [vmem:[#allocation5 + $0xec4] ss:$8 sps:$4 sm:$0xff]  }
 0x406   :  { %3846 = vmatprep.subr.bf16.mxu0 %v10217_v42  ;;  %v10364_v42 = vld [vmem:[#allocation8 + $0xb0] ss:$8 sps:$4 sm:$0xff]  }
 0x407   :  { %4180 = vmatpush1.bf16.msra.mxu1 %v10364_v42 }
 0x409   :  { %3847 = vmatpush1.bf16.msra.mxu0 %v10215_v43  ;;  %v10365_v43 = vld [vmem:[#allocation8 + $0xc4] ss:$8 sps:$4 sm:$0xff]  }
 0x40a   :  { %3848 = vmatprep.subr.bf16.mxu0 %v10220_v44  ;;  %v10269_v44 = vld [vmem:[#allocation5 + $0xec0] ss:$8 sps:$4 sm:$0xff]   ;;  %4181 = vmatprep.subr.bf16.mxu1 %v10365_v43 }
 0x40d   :  { %3849 = vmatpush1.bf16.msra.mxu0 %v10218_v45  ;;  %v10274_v45 = vld [vmem:[#allocation5 + $0xed4] ss:$8 sps:$4 sm:$0xff]  }
 0x40e   :  { %3850 = vmatprep.subr.bf16.mxu0 %v10223_v46  ;;  %v10367_v46 = vld [vmem:[#allocation8 + $0xc0] ss:$8 sps:$4 sm:$0xff]  }
 0x40f   :  { %4182 = vmatpush1.bf16.msra.mxu1 %v10367_v46 }
 0x411   :  { %3851 = vmatpush1.bf16.msra.mxu0 %v10221_v47  ;;  %v10368_v47 = vld [vmem:[#allocation8 + $0xd4] ss:$8 sps:$4 sm:$0xff]  }
 0x412   :  { %3852 = vmatprep.subr.bf16.mxu0 %v10226_v48  ;;  %v10272_v48 = vld [vmem:[#allocation5 + $0xed0] ss:$8 sps:$4 sm:$0xff]   ;;  %4183 = vmatprep.subr.bf16.mxu1 %v10368_v47 }
 0x415   :  { %3853 = vmatpush1.bf16.msra.mxu0 %v10224_v49  ;;  %v10277_v49 = vld [vmem:[#allocation5 + $0xee4] ss:$8 sps:$4 sm:$0xff]  }
 0x416   :  { %3854 = vmatprep.subr.bf16.mxu0 %v10229_v50  ;;  %v10370_v50 = vld [vmem:[#allocation8 + $0xd0] ss:$8 sps:$4 sm:$0xff]  }
 0x417   :  { %4184 = vmatpush1.bf16.msra.mxu1 %v10370_v50 }
 0x419   :  { %3855 = vmatpush1.bf16.msra.mxu0 %v10227_v51  ;;  %v10275_v51 = vld [vmem:[#allocation5 + $0xee0] ss:$8 sps:$4 sm:$0xff]  }
 0x41a   :  { %3856 = vmatprep.subr.bf16.mxu0 %v10232_v52  ;;  %v10280_v52 = vld [vmem:[#allocation5 + $0xef4] ss:$8 sps:$4 sm:$0xff]  }
 0x41d   :  { %3857 = vmatpush1.bf16.msra.mxu0 %v10230_v53  ;;  %v10278_v53 = vld [vmem:[#allocation5 + $0xef0] ss:$8 sps:$4 sm:$0xff]  }
 0x41e   :  { %3867 = vmatprep.subr.bf16.mxu0 %v10235_v55  ;;  %v10283_v55 = vld [vmem:[#allocation5 + $0xf04] ss:$8 sps:$4 sm:$0xff]  }
 0x420   :  { %3859 = vmatmul.mubr.bf16.vlgmr.msra.gmra.mrb[0].mxu0 %v203_v57  ;;  %v205_v57 = vpack.c.bf16 %v173_v54, %v173_v54  ;;  %v10383_v54 = vld [vmem:[#allocation11 + $0x20] ss:$8 sps:$4 sm:$0xff]  }
 0x421   :  { %3868 = vmatpush1.bf16.msra.mxu0 %v10233_v58  ;;  %3899 = vmatprep.mubr.bf16.mxu0 %v206_v59  ;;  %v10281_v58 = vld [vmem:[#allocation5 + $0xf00] ss:$8 sps:$4 sm:$0xff]   ;;  %v208_v59 = vpack.c.bf16 %v176_v56, %v176_v56  ;;  %v10386_v56 = vld [vmem:[#allocation11 + $0x30] ss:$8 sps:$4 sm:$0xff]  }
 0x422   :  { %3869 = vmatprep.subr.bf16.mxu0 %v10238_v60  ;;  %v10286_v60 = vld [vmem:[#allocation5 + $0xf14] ss:$8 sps:$4 sm:$0xff]  }
 0x425   :  { %3870 = vmatpush1.bf16.msra.mxu0 %v10236_v0  ;;  %v10292_v0 = vld [vmem:[#allocation5 + $0xf34] ss:$8 sps:$4 sm:$0xff]  }
 0x426   :  { %3871 = vmatprep.subr.bf16.mxu0 %v10241_v1  ;;  %v10290_v1 = vld [vmem:[#allocation5 + $0xf30] ss:$8 sps:$4 sm:$0xff]  }
 0x429   :  { %3872 = vmatpush1.bf16.msra.mxu0 %v10239_v4  ;;  %v10298_v4 = vld [vmem:[#allocation5 + $0xf54] ss:$8 sps:$4 sm:$0xff]  }
 0x42a   :  { %3873 = vmatprep.subr.bf16.mxu0 %v10244_v5  ;;  %v10296_v5 = vld [vmem:[#allocation5 + $0xf50] ss:$8 sps:$4 sm:$0xff]  }
 0x42d   :  { %3874 = vmatpush1.bf16.msra.mxu0 %v10242_v8  ;;  %v10304_v8 = vld [vmem:[#allocation5 + $0xf74] ss:$8 sps:$4 sm:$0xff]  }
 0x42e   :  { %3875 = vmatprep.subr.bf16.mxu0 %v10247_v9  ;;  %v10302_v9 = vld [vmem:[#allocation5 + $0xf70] ss:$8 sps:$4 sm:$0xff]  }
 0x431   :  { %3876 = vmatpush1.bf16.msra.mxu0 %v10245_v12  ;;  %v10310_v12 = vld [vmem:[#allocation5 + $0xf94] ss:$8 sps:$4 sm:$0xff]  }
 0x432   :  { %3877 = vmatprep.subr.bf16.mxu0 %v10250_v13  ;;  %v10308_v13 = vld [vmem:[#allocation5 + $0xf90] ss:$8 sps:$4 sm:$0xff]  }
 0x435   :  { %3878 = vmatpush1.bf16.msra.mxu0 %v10248_v16  ;;  %v10316_v16 = vld [vmem:[#allocation5 + $0xfb4] ss:$8 sps:$4 sm:$0xff]  }
 0x436   :  { %3879 = vmatprep.subr.bf16.mxu0 %v10253_v17  ;;  %v10314_v17 = vld [vmem:[#allocation5 + $0xfb0] ss:$8 sps:$4 sm:$0xff]  }
 0x439   :  { %3880 = vmatpush1.bf16.msra.mxu0 %v10251_v20  ;;  %v10322_v20 = vld [vmem:[#allocation5 + $0xfd4] ss:$8 sps:$4 sm:$0xff]  }
 0x43a   :  { %3881 = vmatprep.subr.bf16.mxu0 %v10256_v21  ;;  %v10320_v21 = vld [vmem:[#allocation5 + $0xfd0] ss:$8 sps:$4 sm:$0xff]  }
 0x43d   :  { %3882 = vmatpush1.bf16.msra.mxu0 %v10254_v24  ;;  %v10328_v24 = vld [vmem:[#allocation5 + $0xff4] ss:$8 sps:$4 sm:$0xff]  }
 0x43e   :  { %3883 = vmatprep.subr.bf16.mxu0 %v10259_v25  ;;  %v10326_v25 = vld [vmem:[#allocation5 + $0xff0] ss:$8 sps:$4 sm:$0xff]  }
 0x441   :  { %3884 = vmatpush1.bf16.msra.mxu0 %v10257_v28  ;;  %v10371_v28 = vld [vmem:[#allocation8 + $0xe4] ss:$8 sps:$4 sm:$0xff]  }
 0x442   :  { %3885 = vmatprep.subr.bf16.mxu0 %v10262_v29  ;;  %v10373_v29 = vld [vmem:[#allocation8 + $0xe0] ss:$8 sps:$4 sm:$0xff]   ;;  %4185 = vmatprep.subr.bf16.mxu1 %v10371_v28 }
 0x443   :  { %4186 = vmatpush1.bf16.msra.mxu1 %v10373_v29  ;;  %v4529_v29 = vld [vmem:[#allocation14 + $0x270] sm:$0xff] }
 0x444   :  { %4187 = vmatprep.subr.bf16.mxu1 %v10374_v30  ;;  %v4545_v30 = vld [vmem:[#allocation14 + $0x2f0] sm:$0xff] }
 0x445   :  { %3886 = vmatpush1.bf16.msra.mxu0 %v10260_v32  ;;  %v10379_v32 = vld [vmem:[#allocation11 + $0x4] ss:$8 sps:$4 sm:$0xff]  }
 0x446   :  { %3887 = vmatprep.subr.bf16.mxu0 %v10265_v33  ;;  %v723_v33 = vlaneseq }
 0x447   :  { %4188 = vmatpush1.bf16.msra.mxu1 %v10376_v31  ;;  %v9066_v31 = vcombine.low %v4529_v29, %v4545_v30 }
 0x448   :  { %4406 = vmatprep.subr.bf16.mxu1 %v10379_v32  ;;  %v10839_v34 = vshrl.u32 %v723_v33, 7  ;;  %v9067_v32 = vcombine.high %v4529_v29, %v4545_v30  ;;  %v4561_v33 = vld [vmem:[#allocation14 + $0x370] sm:$0xff]  ;;  %v4483_v30 = vld [vmem:[#allocation14 + $0x100] sm:$0xff] }
 0x449   :  { %3888 = vmatpush1.bf16.msra.mxu0 %v10263_v36  ;;  %v721_v36 = vld [vmem:[#allocation7] sm:$0x3] }
 0x44a   :  { %3889 = vmatprep.subr.bf16.mxu0 %v10268_v37  ;;  %v10842_v35 = vsub.s32 0, %v10839_v34  ;;  %v10845_v37 = vsub.s32 1, %v10839_v34 }
 0x44c   :  { %v726_v38 = vrot.slane %v721_v36, %v10842_v35  ;;  %v730_v39 = vrot.slane %v721_v36, %v10845_v37  ;;  %v4577_v36 = vld [vmem:[#allocation14 + $0x3f0] sm:$0xff] }
 0x44d   :  { %3890 = vmatpush1.bf16.msra.mxu0 %v10266_v40 }
 0x44e   :  { %3891 = vmatprep.subr.bf16.mxu0 %v10271_v41 }
 0x451   :  { %3892 = vmatpush1.bf16.msra.mxu0 %v10269_v44 }
 0x452   :  { %3893 = vmatprep.subr.bf16.mxu0 %v10274_v45 }
 0x455   :  { %3894 = vmatpush1.bf16.msra.mxu0 %v10272_v48 }
 0x456   :  { %3895 = vmatprep.subr.bf16.mxu0 %v10277_v49  ;;  %v10377_v49 = vld [vmem:[#allocation11] ss:$8 sps:$4 sm:$0xff]  }
 0x459   :  { %3896 = vmatpush1.bf16.msra.mxu0 %v10275_v51  ;;  %v10382_v51 = vld [vmem:[#allocation11 + $0x14] ss:$8 sps:$4 sm:$0xff]  }
 0x45a   :  { %3897 = vmatprep.subr.bf16.mxu0 %v10280_v52  ;;  %v10380_v52 = vld [vmem:[#allocation11 + $0x10] ss:$8 sps:$4 sm:$0xff]  }
 0x45d   :  { %3898 = vmatpush1.bf16.msra.mxu0 %v10278_v53  ;;  %v10385_v53 = vld [vmem:[#allocation11 + $0x24] ss:$8 sps:$4 sm:$0xff]  }
 0x45e   :  { %3908 = vmatprep.subr.bf16.mxu0 %v10283_v55  ;;  %v10388_v55 = vld [vmem:[#allocation11 + $0x34] ss:$8 sps:$4 sm:$0xff]  }
 0x460   :  { %3900 = vmatmul.mubr.bf16.vlgmr.msra.gmra.mrb[0].mxu0 %v205_v57  ;;  %v10391_v57 = vld [vmem:[#allocation11 + $0x44] ss:$8 sps:$4 sm:$0xff]  }
 0x461   :  { %3909 = vmatpush1.bf16.msra.mxu0 %v10281_v58  ;;  %3940 = vmatprep.mubr.bf16.mxu0 %v208_v59  ;;  %v10389_v58 = vld [vmem:[#allocation11 + $0x40] ss:$8 sps:$4 sm:$0xff]   ;;  %v10394_v59 = vld [vmem:[#allocation11 + $0x54] ss:$8 sps:$4 sm:$0xff]  }
 0x462   :  { %3910 = vmatprep.subr.bf16.mxu0 %v10286_v60  ;;  %v10392_v60 = vld [vmem:[#allocation11 + $0x50] ss:$8 sps:$4 sm:$0xff]  }
 0x465   :  { %3911 = vmatpush1.bf16.msra.mxu0 %v10284_v61  ;;  %v10397_v61 = vld [vmem:[#allocation11 + $0x64] ss:$8 sps:$4 sm:$0xff]  }
 0x466   :  { %3912 = vmatprep.subr.bf16.mxu0 %v10289_v62  ;;  %v10395_v62 = vld [vmem:[#allocation11 + $0x60] ss:$8 sps:$4 sm:$0xff]  }
 0x469   :  { %3913 = vmatpush1.bf16.msra.mxu0 %v10287_v63  ;;  %v10400_v63 = vld [vmem:[#allocation11 + $0x74] ss:$8 sps:$4 sm:$0xff]  }
 0x46a   :  { %3914 = vmatprep.subr.bf16.mxu0 %v10292_v0  ;;  %v10398_v0 = vld [vmem:[#allocation11 + $0x70] ss:$8 sps:$4 sm:$0xff]  }
 0x46d   :  { %3915 = vmatpush1.bf16.msra.mxu0 %v10290_v1  ;;  %v10403_v1 = vld [vmem:[#allocation11 + $0x84] ss:$8 sps:$4 sm:$0xff]  }
 0x46e   :  { %3916 = vmatprep.subr.bf16.mxu0 %v10295_v2  ;;  %v10401_v2 = vld [vmem:[#allocation11 + $0x80] ss:$8 sps:$4 sm:$0xff]  }
 0x471   :  { %3917 = vmatpush1.bf16.msra.mxu0 %v10293_v3  ;;  %v10406_v3 = vld [vmem:[#allocation11 + $0x94] ss:$8 sps:$4 sm:$0xff]  }
 0x472   :  { %3918 = vmatprep.subr.bf16.mxu0 %v10298_v4  ;;  %v10404_v4 = vld [vmem:[#allocation11 + $0x90] ss:$8 sps:$4 sm:$0xff]  }
 0x475   :  { %3919 = vmatpush1.bf16.msra.mxu0 %v10296_v5  ;;  %v10409_v5 = vld [vmem:[#allocation11 + $0xa4] ss:$8 sps:$4 sm:$0xff]  }
 0x476   :  { %3920 = vmatprep.subr.bf16.mxu0 %v10301_v6  ;;  %v10407_v6 = vld [vmem:[#allocation11 + $0xa0] ss:$8 sps:$4 sm:$0xff]  }
 0x479   :  { %3921 = vmatpush1.bf16.msra.mxu0 %v10299_v7  ;;  %v10412_v7 = vld [vmem:[#allocation11 + $0xb4] ss:$8 sps:$4 sm:$0xff]  }
 0x47a   :  { %3922 = vmatprep.subr.bf16.mxu0 %v10304_v8  ;;  %v10410_v8 = vld [vmem:[#allocation11 + $0xb0] ss:$8 sps:$4 sm:$0xff]  }
 0x47d   :  { %3923 = vmatpush1.bf16.msra.mxu0 %v10302_v9  ;;  %v10415_v9 = vld [vmem:[#allocation11 + $0xc4] ss:$8 sps:$4 sm:$0xff]  }
 0x47e   :  { %3924 = vmatprep.subr.bf16.mxu0 %v10307_v10  ;;  %v10413_v10 = vld [vmem:[#allocation11 + $0xc0] ss:$8 sps:$4 sm:$0xff]  }
 0x481   :  { %3925 = vmatpush1.bf16.msra.mxu0 %v10305_v11  ;;  %v10418_v11 = vld [vmem:[#allocation11 + $0xd4] ss:$8 sps:$4 sm:$0xff]  }
 0x482   :  { %3926 = vmatprep.subr.bf16.mxu0 %v10310_v12  ;;  %v10416_v12 = vld [vmem:[#allocation11 + $0xd0] ss:$8 sps:$4 sm:$0xff]  }
 0x485   :  { %3927 = vmatpush1.bf16.msra.mxu0 %v10308_v13  ;;  %v10421_v13 = vld [vmem:[#allocation11 + $0xe4] ss:$8 sps:$4 sm:$0xff]  }
 0x486   :  { %3928 = vmatprep.subr.bf16.mxu0 %v10313_v14  ;;  %v10419_v14 = vld [vmem:[#allocation11 + $0xe0] ss:$8 sps:$4 sm:$0xff]  }
 0x489   :  { %3929 = vmatpush1.bf16.msra.mxu0 %v10311_v15  ;;  %v10424_v15 = vld [vmem:[#allocation11 + $0xf4] ss:$8 sps:$4 sm:$0xff]  }
 0x48a   :  { %3930 = vmatprep.subr.bf16.mxu0 %v10316_v16  ;;  %v10422_v16 = vld [vmem:[#allocation11 + $0xf0] ss:$8 sps:$4 sm:$0xff]  }
 0x48d   :  { %3931 = vmatpush1.bf16.msra.mxu0 %v10314_v17  ;;  %v10849_v17 = vld [vmem:[#allocation14] sm:$0xff] }
 0x48e   :  { %3932 = vmatprep.subr.bf16.mxu0 %v10319_v18  ;;  %v10851_v18 = vld [vmem:[#allocation14 + $0x80] sm:$0xff] }
 0x491   :  { %3933 = vmatpush1.bf16.msra.mxu0 %v10317_v19  ;;  %v8974_v19 = vcombine.low %v10849_v17, %v10851_v18 }
 0x492   :  { %3934 = vmatprep.subr.bf16.mxu0 %v10322_v20  ;;  %v8975_v20 = vcombine.high %v10849_v17, %v10851_v18 }
 0x495   :  { %3935 = vmatpush1.bf16.msra.mxu0 %v10320_v21  ;;  %v4465_v21 = vld [vmem:[#allocation14 + $0x70] sm:$0xff] }
 0x496   :  { %3936 = vmatprep.subr.bf16.mxu0 %v10325_v22  ;;  %v4481_v22 = vld [vmem:[#allocation14 + $0xf0] sm:$0xff] }
 0x499   :  { %3937 = vmatpush1.bf16.msra.mxu0 %v10323_v23  ;;  %v9002_v23 = vcombine.low %v4465_v21, %v4481_v22 }
 0x49a   :  { %3938 = vmatprep.subr.bf16.mxu0 %v10328_v24  ;;  %v9003_v24 = vcombine.high %v4465_v21, %v4481_v22 }
 0x49d   :  { %3939 = vmatpush1.bf16.msra.mxu0 %v10326_v25  ;;  %v4497_v25 = vld [vmem:[#allocation14 + $0x170] sm:$0xff] }
 0x49e   :  { %8265 = vmatprep.subr.bf16.mxu0 %v9003_v24  ;;  %v9035_v28 = vcombine.high %v4497_v25, %v4513_v26 }
 0x4a0   :  { %3941 = vmatmul.mubr.bf16.vlgmr.msra.gmra.mrb[0].mxu0 %v207_v27  ;;  %v9034_v27 = vcombine.low %v4497_v25, %v4513_v26 }
 0x4a1   :  { %8266 = vmatpush1.bf16.msra.mxu0 %v9002_v23 }
 0x4a2   :  { %8267 = vmatprep.subr.bf16.mxu0 %v9035_v28 }
 0x4a5   :  { %8268 = vmatpush1.bf16.msra.mxu0 %v9034_v27 }
 0x4a6   :  { %8269 = vmatprep.subr.bf16.mxu0 %v9067_v32 }
 0x4a9   :  { %8270 = vmatpush1.bf16.msra.mxu0 %v9066_v31  ;;  %v4499_v31 = vld [vmem:[#allocation14 + $0x180] sm:$0xff] }
 0x573   :  { %v3942_v40 = vpop.f32.mrb[0].mxu0 }
 0x574   :  { %v9486_v41 = vadd.f32 %v3942_v40, %v726_v38  ;;  %v3944_v42 = vpop.f32.mrb[1].mxu0  ;;  %v9098_v38 = vcombine.low %v4561_v33, %v4577_v36  ;;  %v4593_v40 = vld [vmem:[#allocation14 + $0x470] sm:$0xff] }
 0x575   :  { %v9487_v43 = vadd.f32 %v3944_v42, %v730_v39  ;;  %v3946_v44 = vpop.f32.mrb[2].mxu0  ;;  %v9099_v39 = vcombine.high %v4561_v33, %v4577_v36  ;;  %v9007_v36 = vcombine.high %v4483_v30, %v4499_v31 }
 0x576   :  { %v3949_v45 = vmax.f32 %v9486_v41, 0.0  ;;  %v3947_v46 = vpop.f32.mrb[3].mxu0  ;;  %v4609_v41 = vld [vmem:[#allocation14 + $0x4f0] sm:$0xff] }
 0x577   :  { %v3950_v47 = vmax.f32 %v9487_v43, 0.0  ;;  %8271 = vmatprep.subr.bf16.mxu0 %v9099_v39  ;;  %v9130_v42 = vcombine.low %v4593_v40, %v4609_v41  ;;  %v9131_v43 = vcombine.high %v4593_v40, %v4609_v41  ;;  %v4625_v44 = vld [vmem:[#allocation14 + $0x570] sm:$0xff]  ;;  %v4531_v39 = vld [vmem:[#allocation14 + $0x280] sm:$0xff]  ;;  %v9006_v40 = vcombine.low %v4483_v30, %v4499_v31 }
 0x578   :  { %v3951_v50 = vpack.c.bf16 %v3949_v45, %v3949_v45  ;;  %8272 = vmatpush1.bf16.msra.mxu0 %v9098_v38  ;;  %v4641_v45 = vld [vmem:[#allocation14 + $0x5f0] sm:$0xff]  ;;  %v4515_v38 = vld [vmem:[#allocation14 + $0x200] sm:$0xff] }
 0x579   :  { %v3952_v48 = vpack.c.bf16 %v3950_v47, %v3950_v47  ;;  %8273 = vmatprep.subr.bf16.mxu0 %v9131_v43  ;;  %v9162_v46 = vcombine.low %v4625_v44, %v4641_v45  ;;  %v9163_v47 = vcombine.high %v4625_v44, %v4641_v45  ;;  %v9039_v41 = vcombine.high %v4515_v38, %v4531_v39  ;;  %v4563_v43 = vld [vmem:[#allocation14 + $0x380] sm:$0xff] }
 0x57a   :  { %v9038_v44 = vcombine.low %v4515_v38, %v4531_v39  ;;  %v4931_v31 = vld [vmem:[#allocation14 + $0xf00] sm:$0xff]  ;;  %v4961_v38 = vld [vmem:[#allocation14 + $0xff0] sm:$0xff] }
 0x57b   :  { %4189 = vmatprep.mubr.bf16.mxu1 %v3952_v48  ;;  %v4657_v48 = vld [vmem:[#allocation14 + $0x670] sm:$0xff] }
 0x57c   :  { %4190 = vmatmul.mubr.bf16.vlgmr.msra.gmra.mrb[0].mxu1 %v3951_v50  ;;  %8274 = vmatpush1.bf16.msra.mxu0 %v9130_v42  ;;  %v4547_v42 = vld [vmem:[#allocation14 + $0x300] sm:$0xff] }
 0x57d   :  { %4407 = vmatpush1.bf16.msra.mxu1 %v10377_v49  ;;  %8275 = vmatprep.subr.bf16.mxu0 %v9163_v47  ;;  %v4673_v49 = vld [vmem:[#allocation14 + $0x6f0] sm:$0xff]  ;;  %v9071_v45 = vcombine.high %v4547_v42, %v4563_v43  ;;  %v4595_v47 = vld [vmem:[#allocation14 + $0x480] sm:$0xff] }
 0x57e   :  { %4408 = vmatprep.subr.bf16.mxu1 %v10382_v51  ;;  %v9194_v50 = vcombine.low %v4657_v48, %v4673_v49  ;;  %v9195_v51 = vcombine.high %v4657_v48, %v4673_v49  ;;  %v9070_v48 = vcombine.low %v4547_v42, %v4563_v43  ;;  %v4452_v42 = vld [vmem:[#allocation14 + $0x8] sm:$0xff] }
 0x57f   :  { %v4468_v43 = vld [vmem:[#allocation14 + $0x88] sm:$0xff] }
 0x580   :  { %8276 = vmatpush1.bf16.msra.mxu0 %v9162_v46  ;;  %v4579_v46 = vld [vmem:[#allocation14 + $0x400] sm:$0xff] }
 0x581   :  { %4409 = vmatpush1.bf16.msra.mxu1 %v10380_v52  ;;  %8277 = vmatprep.subr.bf16.mxu0 %v9195_v51  ;;  %v4689_v52 = vld [vmem:[#allocation14 + $0x770] sm:$0xff]  ;;  %v9103_v49 = vcombine.high %v4579_v46, %v4595_v47  ;;  %v4627_v51 = vld [vmem:[#allocation14 + $0x580] sm:$0xff]  ;;  %v9102_v17 = vcombine.low %v4579_v46, %v4595_v47  ;;  %v4234_v46 = vld [vmem:[#allocation13] sm:$0x3] }
 0x582   :  { %4410 = vmatprep.subr.bf16.mxu1 %v10385_v53  ;;  %v4705_v53 = vld [vmem:[#allocation14 + $0x7f0] sm:$0xff]  ;;  %v4239_v47 = vrot.slane %v4234_v46, %v10842_v35 }
 0x584   :  { %8278 = vmatpush1.bf16.msra.mxu0 %v9194_v50  ;;  %v4611_v50 = vld [vmem:[#allocation14 + $0x500] sm:$0xff] }
 0x585   :  { %4411 = vmatpush1.bf16.msra.mxu1 %v10383_v54  ;;  %v9226_v54 = vcombine.low %v4689_v52, %v4705_v53  ;;  %v9135_v18 = vcombine.high %v4611_v50, %v4627_v51 }
 0x586   :  { %4412 = vmatprep.subr.bf16.mxu1 %v10388_v55  ;;  %v9227_v55 = vcombine.high %v4689_v52, %v4705_v53  ;;  %v4659_v52 = vld [vmem:[#allocation14 + $0x680] sm:$0xff]  ;;  %v9134_v53 = vcombine.low %v4611_v50, %v4627_v51 }
 0x588   :  { %8279 = vmatprep.subr.bf16.mxu0 %v9227_v55  ;;  %v4675_v55 = vld [vmem:[#allocation14 + $0x700] sm:$0xff] }
 0x589   :  { %4413 = vmatpush1.bf16.msra.mxu1 %v10386_v56  ;;  %8280 = vmatpush1.bf16.msra.mxu0 %v9226_v54  ;;  %v4721_v56 = vld [vmem:[#allocation14 + $0x870] sm:$0xff] }
 0x58a   :  { %4414 = vmatprep.subr.bf16.mxu1 %v10391_v57  ;;  %v4737_v57 = vld [vmem:[#allocation14 + $0x8f0] sm:$0xff] }
 0x58d   :  { %4415 = vmatpush1.bf16.msra.mxu1 %v10389_v58  ;;  %v9258_v58 = vcombine.low %v4721_v56, %v4737_v57 }
 0x58e   :  { %4416 = vmatprep.subr.bf16.mxu1 %v10394_v59  ;;  %v9259_v59 = vcombine.high %v4721_v56, %v4737_v57  ;;  %v4691_v56 = vld [vmem:[#allocation14 + $0x780] sm:$0xff] }
 0x590   :  { %8281 = vmatprep.subr.bf16.mxu0 %v9259_v59  ;;  %v4707_v59 = vld [vmem:[#allocation14 + $0x800] sm:$0xff] }
 0x591   :  { %4417 = vmatpush1.bf16.msra.mxu1 %v10392_v60  ;;  %8282 = vmatpush1.bf16.msra.mxu0 %v9258_v58  ;;  %v4753_v60 = vld [vmem:[#allocation14 + $0x970] sm:$0xff]  ;;  %v9199_v58 = vcombine.high %v4675_v55, %v4691_v56 }
 0x592   :  { %4418 = vmatprep.subr.bf16.mxu1 %v10397_v61  ;;  %v4769_v61 = vld [vmem:[#allocation14 + $0x9f0] sm:$0xff] }
 0x595   :  { %4419 = vmatpush1.bf16.msra.mxu1 %v10395_v62  ;;  %v9290_v62 = vcombine.low %v4753_v60, %v4769_v61 }
 0x596   :  { %4420 = vmatprep.subr.bf16.mxu1 %v10400_v63  ;;  %v9291_v63 = vcombine.high %v4753_v60, %v4769_v61  ;;  %v4723_v60 = vld [vmem:[#allocation14 + $0x880] sm:$0xff]  ;;  %v9198_v61 = vcombine.low %v4675_v55, %v4691_v56  ;;  %v4500_v55 = vld [vmem:[#allocation14 + $0x188] sm:$0xff] }
 0x598   :  { %8283 = vmatprep.subr.bf16.mxu0 %v9291_v63  ;;  %v4739_v63 = vld [vmem:[#allocation14 + $0x900] sm:$0xff] }
 0x599   :  { %4421 = vmatpush1.bf16.msra.mxu1 %v10398_v0  ;;  %8284 = vmatpush1.bf16.msra.mxu0 %v9290_v62  ;;  %v4785_v0 = vld [vmem:[#allocation14 + $0xa70] sm:$0xff]  ;;  %v9231_v62 = vcombine.high %v4707_v59, %v4723_v60 }
 0x59a   :  { %4422 = vmatprep.subr.bf16.mxu1 %v10403_v1  ;;  %v4801_v1 = vld [vmem:[#allocation14 + $0xaf0] sm:$0xff] }
 0x59d   :  { %4423 = vmatpush1.bf16.msra.mxu1 %v10401_v2  ;;  %v9322_v2 = vcombine.low %v4785_v0, %v4801_v1 }
 0x59e   :  { %4424 = vmatprep.subr.bf16.mxu1 %v10406_v3  ;;  %v9323_v3 = vcombine.high %v4785_v0, %v4801_v1  ;;  %v4755_v0 = vld [vmem:[#allocation14 + $0x980] sm:$0xff]  ;;  %v9230_v1 = vcombine.low %v4707_v59, %v4723_v60  ;;  %v4516_v59 = vld [vmem:[#allocation14 + $0x208] sm:$0xff] }
 0x59f   :  { %v4532_v60 = vld [vmem:[#allocation14 + $0x288] sm:$0xff] }
 0x5a0   :  { %8285 = vmatprep.subr.bf16.mxu0 %v9323_v3  ;;  %v4771_v3 = vld [vmem:[#allocation14 + $0xa00] sm:$0xff] }
 0x5a1   :  { %4425 = vmatpush1.bf16.msra.mxu1 %v10404_v4  ;;  %8286 = vmatpush1.bf16.msra.mxu0 %v9322_v2  ;;  %v4817_v4 = vld [vmem:[#allocation14 + $0xb70] sm:$0xff]  ;;  %v9263_v2 = vcombine.high %v4739_v63, %v4755_v0 }
 0x5a2   :  { %4426 = vmatprep.subr.bf16.mxu1 %v10409_v5  ;;  %v4833_v5 = vld [vmem:[#allocation14 + $0xbf0] sm:$0xff] }
 0x5a5   :  { %4427 = vmatpush1.bf16.msra.mxu1 %v10407_v6  ;;  %v9354_v6 = vcombine.low %v4817_v4, %v4833_v5 }
 0x5a6   :  { %4428 = vmatprep.subr.bf16.mxu1 %v10412_v7  ;;  %v9355_v7 = vcombine.high %v4817_v4, %v4833_v5  ;;  %v4787_v4 = vld [vmem:[#allocation14 + $0xa80] sm:$0xff]  ;;  %v9262_v5 = vcombine.low %v4739_v63, %v4755_v0  ;;  %v4548_v63 = vld [vmem:[#allocation14 + $0x308] sm:$0xff] }
 0x5a7   :  { %v4564_v0 = vld [vmem:[#allocation14 + $0x388] sm:$0xff] }
 0x5a8   :  { %8287 = vmatprep.subr.bf16.mxu0 %v9355_v7  ;;  %v4803_v7 = vld [vmem:[#allocation14 + $0xb00] sm:$0xff] }
 0x5a9   :  { %4429 = vmatpush1.bf16.msra.mxu1 %v10410_v8  ;;  %8288 = vmatpush1.bf16.msra.mxu0 %v9354_v6  ;;  %v4849_v8 = vld [vmem:[#allocation14 + $0xc70] sm:$0xff]  ;;  %v9295_v6 = vcombine.high %v4771_v3, %v4787_v4 }
 0x5aa   :  { %4430 = vmatprep.subr.bf16.mxu1 %v10415_v9  ;;  %v4865_v9 = vld [vmem:[#allocation14 + $0xcf0] sm:$0xff] }
 0x5ad   :  { %4431 = vmatpush1.bf16.msra.mxu1 %v10413_v10  ;;  %v9386_v10 = vcombine.low %v4849_v8, %v4865_v9 }
 0x5ae   :  { %4432 = vmatprep.subr.bf16.mxu1 %v10418_v11  ;;  %v9387_v11 = vcombine.high %v4849_v8, %v4865_v9  ;;  %v4819_v8 = vld [vmem:[#allocation14 + $0xb80] sm:$0xff]  ;;  %v9294_v9 = vcombine.low %v4771_v3, %v4787_v4  ;;  %v4580_v3 = vld [vmem:[#allocation14 + $0x408] sm:$0xff] }
 0x5af   :  { %v4596_v4 = vld [vmem:[#allocation14 + $0x488] sm:$0xff] }
 0x5b0   :  { %8289 = vmatprep.subr.bf16.mxu0 %v9387_v11  ;;  %v4835_v11 = vld [vmem:[#allocation14 + $0xc00] sm:$0xff] }
 0x5b1   :  { %4433 = vmatpush1.bf16.msra.mxu1 %v10416_v12  ;;  %8290 = vmatpush1.bf16.msra.mxu0 %v9386_v10  ;;  %v4881_v12 = vld [vmem:[#allocation14 + $0xd70] sm:$0xff]  ;;  %v9327_v10 = vcombine.high %v4803_v7, %v4819_v8 }
 0x5b2   :  { %4434 = vmatprep.subr.bf16.mxu1 %v10421_v13  ;;  %v4897_v13 = vld [vmem:[#allocation14 + $0xdf0] sm:$0xff] }
 0x5b5   :  { %4435 = vmatpush1.bf16.msra.mxu1 %v10419_v14  ;;  %v9418_v14 = vcombine.low %v4881_v12, %v4897_v13 }
 0x5b6   :  { %4436 = vmatprep.subr.bf16.mxu1 %v10424_v15  ;;  %v9419_v15 = vcombine.high %v4881_v12, %v4897_v13  ;;  %v4851_v12 = vld [vmem:[#allocation14 + $0xc80] sm:$0xff]  ;;  %v9326_v13 = vcombine.low %v4803_v7, %v4819_v8  ;;  %v4612_v7 = vld [vmem:[#allocation14 + $0x508] sm:$0xff] }
 0x5b7   :  { %v4628_v8 = vld [vmem:[#allocation14 + $0x588] sm:$0xff] }
 0x5b8   :  { %8291 = vmatprep.subr.bf16.mxu0 %v9419_v15  ;;  %v4867_v15 = vld [vmem:[#allocation14 + $0xd00] sm:$0xff] }
 0x5b9   :  { %4437 = vmatpush1.bf16.msra.mxu1 %v10422_v16  ;;  %8292 = vmatpush1.bf16.msra.mxu0 %v9418_v14  ;;  %v3985_v16 = vld [vmem:[#allocation10] sm:$0x3]  ;;  %v9359_v14 = vcombine.high %v4835_v11, %v4851_v12 }
 0x5ba   :  { %7691 = vmatprep.subr.bf16.mxu1 %v8975_v20  ;;  %v3990_v20 = vrot.slane %v3985_v16, %v10842_v35  ;;  %v3994_v21 = vrot.slane %v3985_v16, %v10845_v37  ;;  %v4883_v16 = vld [vmem:[#allocation14 + $0xd80] sm:$0xff] }
 0x64f   :  { %v4191_v22 = vpop.f32.mrb[0].mxu1 }
 0x650   :  { %v4192_v23 = vadd.f32 %v4191_v22, %v3990_v20  ;;  %v4193_v24 = vpop.f32.mrb[1].mxu1  ;;  %v9358_v20 = vcombine.low %v4835_v11, %v4851_v12  ;;  %v9390_v22 = vcombine.low %v4867_v15, %v4883_v16  ;;  %v4644_v11 = vld [vmem:[#allocation14 + $0x608] sm:$0xff] }
 0x651   :  { %v4194_v25 = vadd.f32 %v4193_v24, %v3994_v21  ;;  %v4195_v26 = vpop.f32.mrb[2].mxu1  ;;  %v9391_v21 = vcombine.high %v4867_v15, %v4883_v16  ;;  %v4915_v24 = vld [vmem:[#allocation14 + $0xe80] sm:$0xff]  ;;  %v4660_v12 = vld [vmem:[#allocation14 + $0x688] sm:$0xff] }
 0x652   :  { %v4198_v27 = vmax.f32 %v4192_v23, 0.0  ;;  %v4196_v28 = vpop.f32.mrb[3].mxu1  ;;  %v4899_v23 = vld [vmem:[#allocation14 + $0xe00] sm:$0xff]  ;;  %v4913_v26 = vld [vmem:[#allocation14 + $0xe70] sm:$0xff]  ;;  %v4676_v15 = vld [vmem:[#allocation14 + $0x708] sm:$0xff] }
 0x653   :  { %v4199_v29 = vmax.f32 %v4194_v25, 0.0  ;;  %v9423_v25 = vcombine.high %v4899_v23, %v4915_v24  ;;  %v9422_v28 = vcombine.low %v4899_v23, %v4915_v24  ;;  %v4692_v16 = vld [vmem:[#allocation14 + $0x788] sm:$0xff] }
 0x654   :  { %v4200_v33 = vpack.c.bf16 %v4198_v27, %v4198_v27  ;;  %v4929_v27 = vld [vmem:[#allocation14 + $0xef0] sm:$0xff]  ;;  %v4724_v23 = vld [vmem:[#allocation14 + $0x888] sm:$0xff]  ;;  %v9200_v24 = vcombine.low %v4676_v15, %v4692_v16 }
 0x655   :  { %v4201_v32 = vpack.c.bf16 %v4199_v29, %v4199_v29  ;;  %v9451_v29 = vcombine.high %v4913_v26, %v4929_v27  ;;  %v9450_v30 = vcombine.low %v4913_v26, %v4929_v27  ;;  %v4740_v26 = vld [vmem:[#allocation14 + $0x908] sm:$0xff] }
 0x656   :  { %v4756_v27 = vld [vmem:[#allocation14 + $0x988] sm:$0xff] }
 0x657   :  { %4438 = vmatprep.mubr.bf16.mxu1 %v4201_v32  ;;  %8293 = vmatprep.subr.bf16.mxu0 %v9451_v29  ;;  %v4947_v32 = vld [vmem:[#allocation14 + $0xf80] sm:$0xff]  ;;  %v9265_v29 = vcombine.high %v4740_v26, %v4756_v27 }
 0x658   :  { %4439 = vmatmul.mubr.bf16.vlgmr.msra.gmra.mrb[4].mxu1 %v4200_v33  ;;  %8294 = vmatpush1.bf16.msra.mxu0 %v9450_v30  ;;  %v9455_v33 = vcombine.high %v4931_v31, %v4947_v32  ;;  %v9454_v39 = vcombine.low %v4931_v31, %v4947_v32  ;;  %v4772_v30 = vld [vmem:[#allocation14 + $0xa08] sm:$0xff]  ;;  %v9264_v32 = vcombine.low %v4740_v26, %v4756_v27  ;;  %v4709_v27 = vld [vmem:[#allocation14 + $0x810] sm:$0xff] }
 0x659   :  { %7692 = vmatpush1.bf16.msra.mxu1 %v8974_v19  ;;  %v4643_v19 = vld [vmem:[#allocation14 + $0x600] sm:$0xff]  ;;  %v4788_v31 = vld [vmem:[#allocation14 + $0xa88] sm:$0xff] }
 0x65a   :  { %7693 = vmatprep.subr.bf16.mxu1 %v9007_v36  ;;  %v9167_v54 = vcombine.high %v4643_v19, %v4659_v52  ;;  %v9166_v57 = vcombine.low %v4643_v19, %v4659_v52  ;;  %v4945_v36 = vld [vmem:[#allocation14 + $0xf70] sm:$0xff] }
 0x65d   :  { %7694 = vmatpush1.bf16.msra.mxu1 %v9006_v40  ;;  %v9483_v40 = vcombine.high %v4945_v36, %v4961_v38 }
 0x65e   :  { %7695 = vmatprep.subr.bf16.mxu1 %v9039_v41  ;;  %v9482_v41 = vcombine.low %v4945_v36, %v4961_v38  ;;  %v4804_v36 = vld [vmem:[#allocation14 + $0xb08] sm:$0xff] }
 0x65f   :  { %8295 = vmatprep.subr.bf16.mxu0 %v9483_v40  ;;  %v4820_v38 = vld [vmem:[#allocation14 + $0xb88] sm:$0xff] }
 0x660   :  { %8296 = vmatpush1.bf16.msra.mxu0 %v9482_v41  ;;  %v9329_v40 = vcombine.high %v4804_v36, %v4820_v38  ;;  %v4836_v41 = vld [vmem:[#allocation14 + $0xc08] sm:$0xff] }
 0x661   :  { %7696 = vmatpush1.bf16.msra.mxu1 %v9038_v44  ;;  %v8977_v44 = vcombine.high %v4452_v42, %v4468_v43 }
 0x662   :  { %7697 = vmatprep.subr.bf16.mxu1 %v9071_v45  ;;  %v8976_v45 = vcombine.low %v4452_v42, %v4468_v43  ;;  %v4852_v42 = vld [vmem:[#allocation14 + $0xc88] sm:$0xff]  ;;  %v9328_v43 = vcombine.low %v4804_v36, %v4820_v38  ;;  %v4773_v38 = vld [vmem:[#allocation14 + $0xa10] sm:$0xff] }
 0x665   :  { %7698 = vmatpush1.bf16.msra.mxu1 %v9070_v48  ;;  %v4243_v48 = vrot.slane %v4234_v46, %v10845_v37  ;;  %v4884_v46 = vld [vmem:[#allocation14 + $0xd88] sm:$0xff] }
 0x666   :  { %7699 = vmatprep.subr.bf16.mxu1 %v9103_v49 }
 0x669   :  { %7700 = vmatpush1.bf16.msra.mxu1 %v9102_v17 }
 0x66a   :  { %7701 = vmatprep.subr.bf16.mxu1 %v9135_v18 }
 0x66d   :  { %7702 = vmatpush1.bf16.msra.mxu1 %v9134_v53 }
 0x66e   :  { %7703 = vmatprep.subr.bf16.mxu1 %v9167_v54  ;;  %v4484_v54 = vld [vmem:[#allocation14 + $0x108] sm:$0xff] }
 0x671   :  { %7704 = vmatpush1.bf16.msra.mxu1 %v9166_v57 }
 0x672   :  { %7705 = vmatprep.subr.bf16.mxu1 %v9199_v58  ;;  %v9009_v58 = vcombine.high %v4484_v54, %v4500_v55 }
 0x675   :  { %7706 = vmatpush1.bf16.msra.mxu1 %v9198_v61  ;;  %v9008_v61 = vcombine.low %v4484_v54, %v4500_v55  ;;  %v4453_v54 = vld [vmem:[#allocation14 + $0x10] sm:$0xff] }
 0x676   :  { %7707 = vmatprep.subr.bf16.mxu1 %v9231_v62  ;;  %v9041_v62 = vcombine.high %v4516_v59, %v4532_v60  ;;  %v4469_v55 = vld [vmem:[#allocation14 + $0x90] sm:$0xff] }
 0x679   :  { %7708 = vmatpush1.bf16.msra.mxu1 %v9230_v1  ;;  %v9040_v1 = vcombine.low %v4516_v59, %v4532_v60  ;;  %v8979_v59 = vcombine.high %v4453_v54, %v4469_v55  ;;  %v4485_v60 = vld [vmem:[#allocation14 + $0x110] sm:$0xff] }
 0x67a   :  { %7709 = vmatprep.subr.bf16.mxu1 %v9263_v2  ;;  %v9073_v2 = vcombine.high %v4548_v63, %v4564_v0 }
 0x67d   :  { %7710 = vmatpush1.bf16.msra.mxu1 %v9262_v5  ;;  %v9072_v5 = vcombine.low %v4548_v63, %v4564_v0  ;;  %v4517_v0 = vld [vmem:[#allocation14 + $0x210] sm:$0xff] }
 0x67e   :  { %7711 = vmatprep.subr.bf16.mxu1 %v9295_v6  ;;  %v9105_v6 = vcombine.high %v4580_v3, %v4596_v4 }
 0x681   :  { %7712 = vmatpush1.bf16.msra.mxu1 %v9294_v9  ;;  %v9104_v9 = vcombine.low %v4580_v3, %v4596_v4  ;;  %v4549_v4 = vld [vmem:[#allocation14 + $0x310] sm:$0xff] }
 0x682   :  { %7713 = vmatprep.subr.bf16.mxu1 %v9327_v10  ;;  %v9137_v10 = vcombine.high %v4612_v7, %v4628_v8 }
 0x685   :  { %7714 = vmatpush1.bf16.msra.mxu1 %v9326_v13  ;;  %v9136_v13 = vcombine.low %v4612_v7, %v4628_v8  ;;  %v4581_v8 = vld [vmem:[#allocation14 + $0x410] sm:$0xff] }
 0x686   :  { %7715 = vmatprep.subr.bf16.mxu1 %v9359_v14  ;;  %v9169_v14 = vcombine.high %v4644_v11, %v4660_v12 }
 0x689   :  { %7716 = vmatpush1.bf16.msra.mxu1 %v9358_v20  ;;  %v9168_v20 = vcombine.low %v4644_v11, %v4660_v12  ;;  %v4613_v12 = vld [vmem:[#allocation14 + $0x510] sm:$0xff] }
 0x68a   :  { %7717 = vmatprep.subr.bf16.mxu1 %v9391_v21  ;;  %v9201_v21 = vcombine.high %v4676_v15, %v4692_v16  ;;  %v4645_v16 = vld [vmem:[#allocation14 + $0x610] sm:$0xff] }
 0x68d   :  { %7718 = vmatpush1.bf16.msra.mxu1 %v9390_v22  ;;  %v4708_v22 = vld [vmem:[#allocation14 + $0x808] sm:$0xff] }
 0x68e   :  { %7719 = vmatprep.subr.bf16.mxu1 %v9423_v25  ;;  %v9233_v25 = vcombine.high %v4708_v22, %v4724_v23 }
 0x691   :  { %7720 = vmatpush1.bf16.msra.mxu1 %v9422_v28  ;;  %v9232_v28 = vcombine.low %v4708_v22, %v4724_v23  ;;  %v4677_v23 = vld [vmem:[#allocation14 + $0x710] sm:$0xff] }
 0x692   :  { %7721 = vmatprep.subr.bf16.mxu1 %v9455_v33  ;;  %v9297_v33 = vcombine.high %v4772_v30, %v4788_v31 }
 0x695   :  { %7722 = vmatpush1.bf16.msra.mxu1 %v9454_v39  ;;  %v9296_v39 = vcombine.low %v4772_v30, %v4788_v31  ;;  %v4741_v31 = vld [vmem:[#allocation14 + $0x910] sm:$0xff] }
 0x696   :  { %7732 = vmatprep.subr.bf16.mxu1 %v8977_v44  ;;  %v9361_v44 = vcombine.high %v4836_v41, %v4852_v42 }
 0x72b   :  { %v4440_v49 = vpop.f32.mrb[4].mxu1 }
 0x72c   :  { %v4441_v50 = vadd.f32 %v4440_v49, %v4239_v47  ;;  %v4442_v51 = vpop.f32.mrb[5].mxu1  ;;  %v9360_v47 = vcombine.low %v4836_v41, %v4852_v42  ;;  %v4900_v49 = vld [vmem:[#allocation14 + $0xe08] sm:$0xff]  ;;  %v4805_v42 = vld [vmem:[#allocation14 + $0xb10] sm:$0xff] }
 0x72d   :  { %v4443_v17 = vadd.f32 %v4442_v51, %v4243_v48  ;;  %v4444_v18 = vpop.f32.mrb[6].mxu1 }
 0x72e   :  { %v4447_v19 = vmax.f32 %v4441_v50, 0.0  ;;  %v4445_v52 = vpop.f32.mrb[7].mxu1  ;;  %v4916_v50 = vld [vmem:[#allocation14 + $0xe88] sm:$0xff] }
 0x72f   :  { %v4448_v53 = vmax.f32 %v4443_v17, 0.0  ;;  %v9425_v17 = vcombine.high %v4900_v49, %v4916_v50  ;;  %v4932_v18 = vld [vmem:[#allocation14 + $0xf08] sm:$0xff]  ;;  %v9424_v52 = vcombine.low %v4900_v49, %v4916_v50  ;;  %v4869_v50 = vld [vmem:[#allocation14 + $0xd10] sm:$0xff] }
 0x730   :  { %v10866_v57 = vpack.c.bf16 %v4447_v19, %v4447_v19  ;;  %v4948_v19 = vld [vmem:[#allocation14 + $0xf88] sm:$0xff] }
 0x731   :  { %v10864_v56 = vpack.c.bf16 %v4448_v53, %v4448_v53  ;;  %v9457_v53 = vcombine.high %v4932_v18, %v4948_v19 }
 0x733   :  { %7723 = vmatprep.mubr.bf16.mxu1 %v10864_v56  ;;  %8297 = vmatprep.mubr.bf16.mxu0 %v10864_v56 }
 0x734   :  { %7724 = vmatmul.mubr.bf16.vlgmr.msra.gmra.mrb[8].mxu1 %v10866_v57  ;;  %8298 = vmatmul.mubr.bf16.vlgmr.msra.gmra.mrb[4].mxu0 %v10866_v57 }
 0x735   :  { %7733 = vmatpush1.bf16.msra.mxu1 %v8976_v45  ;;  %7764 = vmatprep.mubr.bf16.mxu1 %v10864_v56  ;;  %v4868_v45 = vld [vmem:[#allocation14 + $0xd08] sm:$0xff] }
 0x736   :  { %7734 = vmatprep.subr.bf16.mxu1 %v9009_v58  ;;  %v9393_v48 = vcombine.high %v4868_v45, %v4884_v46  ;;  %v9392_v51 = vcombine.low %v4868_v45, %v4884_v46  ;;  %v9456_v58 = vcombine.low %v4932_v18, %v4948_v19  ;;  %v4837_v46 = vld [vmem:[#allocation14 + $0xc10] sm:$0xff] }
 0x737   :  { %v4901_v19 = vld [vmem:[#allocation14 + $0xe10] sm:$0xff] }
 0x739   :  { %7735 = vmatpush1.bf16.msra.mxu1 %v9008_v61  ;;  %v4501_v61 = vld [vmem:[#allocation14 + $0x190] sm:$0xff] }
 0x73a   :  { %7736 = vmatprep.subr.bf16.mxu1 %v9041_v62  ;;  %v8978_v62 = vcombine.low %v4453_v54, %v4469_v55  ;;  %v9011_v63 = vcombine.high %v4485_v60, %v4501_v61  ;;  %v4933_v55 = vld [vmem:[#allocation14 + $0xf10] sm:$0xff] }
 0x73d   :  { %7737 = vmatpush1.bf16.msra.mxu1 %v9040_v1  ;;  %v4533_v1 = vld [vmem:[#allocation14 + $0x290] sm:$0xff] }
 0x73e   :  { %7738 = vmatprep.subr.bf16.mxu1 %v9073_v2  ;;  %v9010_v2 = vcombine.low %v4485_v60, %v4501_v61  ;;  %v9043_v3 = vcombine.high %v4517_v0, %v4533_v1  ;;  %v4454_v61 = vld [vmem:[#allocation14 + $0x18] sm:$0xff] }
 0x741   :  { %7739 = vmatpush1.bf16.msra.mxu1 %v9072_v5  ;;  %v4565_v5 = vld [vmem:[#allocation14 + $0x390] sm:$0xff] }
 0x742   :  { %7740 = vmatprep.subr.bf16.mxu1 %v9105_v6  ;;  %v9042_v6 = vcombine.low %v4517_v0, %v4533_v1  ;;  %v9075_v7 = vcombine.high %v4549_v4, %v4565_v5  ;;  %v4486_v1 = vld [vmem:[#allocation14 + $0x118] sm:$0xff] }
 0x745   :  { %7741 = vmatpush1.bf16.msra.mxu1 %v9104_v9  ;;  %v4597_v9 = vld [vmem:[#allocation14 + $0x490] sm:$0xff] }
 0x746   :  { %7742 = vmatprep.subr.bf16.mxu1 %v9137_v10  ;;  %v9074_v10 = vcombine.low %v4549_v4, %v4565_v5  ;;  %v9107_v11 = vcombine.high %v4581_v8, %v4597_v9  ;;  %v4518_v5 = vld [vmem:[#allocation14 + $0x218] sm:$0xff] }
 0x749   :  { %7743 = vmatpush1.bf16.msra.mxu1 %v9136_v13  ;;  %v4629_v13 = vld [vmem:[#allocation14 + $0x590] sm:$0xff] }
 0x74a   :  { %7744 = vmatprep.subr.bf16.mxu1 %v9169_v14  ;;  %v9106_v14 = vcombine.low %v4581_v8, %v4597_v9  ;;  %v9139_v15 = vcombine.high %v4613_v12, %v4629_v13  ;;  %v4550_v9 = vld [vmem:[#allocation14 + $0x318] sm:$0xff] }
 0x74d   :  { %7745 = vmatpush1.bf16.msra.mxu1 %v9168_v20  ;;  %v4661_v20 = vld [vmem:[#allocation14 + $0x690] sm:$0xff] }
 0x74e   :  { %7746 = vmatprep.subr.bf16.mxu1 %v9201_v21  ;;  %v9138_v21 = vcombine.low %v4613_v12, %v4629_v13  ;;  %v9171_v22 = vcombine.high %v4645_v16, %v4661_v20  ;;  %v4582_v13 = vld [vmem:[#allocation14 + $0x418] sm:$0xff] }
 0x751   :  { %7747 = vmatpush1.bf16.msra.mxu1 %v9200_v24  ;;  %v4693_v24 = vld [vmem:[#allocation14 + $0x790] sm:$0xff] }
 0x752   :  { %7748 = vmatprep.subr.bf16.mxu1 %v9233_v25  ;;  %v9170_v25 = vcombine.low %v4645_v16, %v4661_v20  ;;  %v9203_v26 = vcombine.high %v4677_v23, %v4693_v24  ;;  %v4614_v20 = vld [vmem:[#allocation14 + $0x518] sm:$0xff] }
 0x755   :  { %7749 = vmatpush1.bf16.msra.mxu1 %v9232_v28  ;;  %v4725_v28 = vld [vmem:[#allocation14 + $0x890] sm:$0xff] }
 0x756   :  { %7750 = vmatprep.subr.bf16.mxu1 %v9265_v29  ;;  %v9202_v29 = vcombine.low %v4677_v23, %v4693_v24  ;;  %v9235_v30 = vcombine.high %v4709_v27, %v4725_v28  ;;  %v4646_v24 = vld [vmem:[#allocation14 + $0x618] sm:$0xff] }
 0x759   :  { %7751 = vmatpush1.bf16.msra.mxu1 %v9264_v32  ;;  %v4757_v32 = vld [vmem:[#allocation14 + $0x990] sm:$0xff] }
 0x75a   :  { %7752 = vmatprep.subr.bf16.mxu1 %v9297_v33  ;;  %v9234_v33 = vcombine.low %v4709_v27, %v4725_v28  ;;  %v9267_v36 = vcombine.high %v4741_v31, %v4757_v32  ;;  %v4678_v28 = vld [vmem:[#allocation14 + $0x718] sm:$0xff] }
 0x75d   :  { %7753 = vmatpush1.bf16.msra.mxu1 %v9296_v39  ;;  %v4789_v39 = vld [vmem:[#allocation14 + $0xa90] sm:$0xff] }
 0x75e   :  { %7754 = vmatprep.subr.bf16.mxu1 %v9329_v40  ;;  %v9266_v40 = vcombine.low %v4741_v31, %v4757_v32  ;;  %v9299_v41 = vcombine.high %v4773_v38, %v4789_v39  ;;  %v4710_v32 = vld [vmem:[#allocation14 + $0x818] sm:$0xff] }
 0x761   :  { %7755 = vmatpush1.bf16.msra.mxu1 %v9328_v43  ;;  %v4821_v43 = vld [vmem:[#allocation14 + $0xb90] sm:$0xff] }
 0x762   :  { %7756 = vmatprep.subr.bf16.mxu1 %v9361_v44  ;;  %v9298_v44 = vcombine.low %v4773_v38, %v4789_v39  ;;  %v9331_v45 = vcombine.high %v4805_v42, %v4821_v43  ;;  %v4742_v39 = vld [vmem:[#allocation14 + $0x918] sm:$0xff] }
 0x765   :  { %7757 = vmatpush1.bf16.msra.mxu1 %v9360_v47  ;;  %v4853_v47 = vld [vmem:[#allocation14 + $0xc90] sm:$0xff] }
 0x766   :  { %7758 = vmatprep.subr.bf16.mxu1 %v9393_v48  ;;  %v9330_v48 = vcombine.low %v4805_v42, %v4821_v43  ;;  %v9363_v49 = vcombine.high %v4837_v46, %v4853_v47  ;;  %v4774_v43 = vld [vmem:[#allocation14 + $0xa18] sm:$0xff] }
 0x769   :  { %7759 = vmatpush1.bf16.msra.mxu1 %v9392_v51  ;;  %v4885_v51 = vld [vmem:[#allocation14 + $0xd90] sm:$0xff] }
 0x76a   :  { %7760 = vmatprep.subr.bf16.mxu1 %v9425_v17  ;;  %v9362_v17 = vcombine.low %v4837_v46, %v4853_v47  ;;  %v9395_v18 = vcombine.high %v4869_v50, %v4885_v51  ;;  %v4806_v47 = vld [vmem:[#allocation14 + $0xb18] sm:$0xff] }
 0x76d   :  { %7761 = vmatpush1.bf16.msra.mxu1 %v9424_v52  ;;  %v4917_v52 = vld [vmem:[#allocation14 + $0xe90] sm:$0xff] }
 0x76e   :  { %7762 = vmatprep.subr.bf16.mxu1 %v9457_v53  ;;  %v9394_v53 = vcombine.low %v4869_v50, %v4885_v51  ;;  %v9427_v54 = vcombine.high %v4901_v19, %v4917_v52  ;;  %v4838_v51 = vld [vmem:[#allocation14 + $0xc18] sm:$0xff] }
 0x771   :  { %7763 = vmatpush1.bf16.msra.mxu1 %v9456_v58  ;;  %v4949_v58 = vld [vmem:[#allocation14 + $0xf90] sm:$0xff] }
 0x772   :  { %7773 = vmatprep.subr.bf16.mxu1 %v8979_v59  ;;  %v9426_v59 = vcombine.low %v4901_v19, %v4917_v52  ;;  %v9459_v60 = vcombine.high %v4933_v55, %v4949_v58  ;;  %v4870_v52 = vld [vmem:[#allocation14 + $0xd18] sm:$0xff] }
 0x774   :  { %7765 = vmatmul.mubr.bf16.vlgmr.msra.gmra.mrb[12].mxu1 %v10866_v57 }
 0x775   :  { %7774 = vmatpush1.bf16.msra.mxu1 %v8978_v62  ;;  %7805 = vmatprep.mubr.bf16.mxu1 %v10864_v56  ;;  %v4470_v62 = vld [vmem:[#allocation14 + $0x98] sm:$0xff] }
 0x776   :  { %7775 = vmatprep.subr.bf16.mxu1 %v9011_v63  ;;  %v9458_v63 = vcombine.low %v4933_v55, %v4949_v58  ;;  %v8981_v0 = vcombine.high %v4454_v61, %v4470_v62  ;;  %v4902_v58 = vld [vmem:[#allocation14 + $0xe18] sm:$0xff] }
 0x779   :  { %7776 = vmatpush1.bf16.msra.mxu1 %v9010_v2  ;;  %v4502_v2 = vld [vmem:[#allocation14 + $0x198] sm:$0xff] }
 0x77a   :  { %7777 = vmatprep.subr.bf16.mxu1 %v9043_v3  ;;  %v8980_v3 = vcombine.low %v4454_v61, %v4470_v62  ;;  %v9013_v4 = vcombine.high %v4486_v1, %v4502_v2  ;;  %v4934_v62 = vld [vmem:[#allocation14 + $0xf18] sm:$0xff] }
 0x77d   :  { %7778 = vmatpush1.bf16.msra.mxu1 %v9042_v6  ;;  %v4534_v6 = vld [vmem:[#allocation14 + $0x298] sm:$0xff] }
 0x77e   :  { %7779 = vmatprep.subr.bf16.mxu1 %v9075_v7  ;;  %v9012_v7 = vcombine.low %v4486_v1, %v4502_v2  ;;  %v9045_v8 = vcombine.high %v4518_v5, %v4534_v6  ;;  %v4455_v2 = vld [vmem:[#allocation14 + $0x20] sm:$0xff] }
 0x781   :  { %7780 = vmatpush1.bf16.msra.mxu1 %v9074_v10  ;;  %v4566_v10 = vld [vmem:[#allocation14 + $0x398] sm:$0xff] }
 0x782   :  { %7781 = vmatprep.subr.bf16.mxu1 %v9107_v11  ;;  %v9044_v11 = vcombine.low %v4518_v5, %v4534_v6  ;;  %v9077_v12 = vcombine.high %v4550_v9, %v4566_v10  ;;  %v4487_v6 = vld [vmem:[#allocation14 + $0x120] sm:$0xff] }
 0x785   :  { %7782 = vmatpush1.bf16.msra.mxu1 %v9106_v14  ;;  %v4598_v14 = vld [vmem:[#allocation14 + $0x498] sm:$0xff] }
 0x786   :  { %7783 = vmatprep.subr.bf16.mxu1 %v9139_v15  ;;  %v9076_v15 = vcombine.low %v4550_v9, %v4566_v10  ;;  %v9109_v16 = vcombine.high %v4582_v13, %v4598_v14  ;;  %v4519_v10 = vld [vmem:[#allocation14 + $0x220] sm:$0xff] }
 0x789   :  { %7784 = vmatpush1.bf16.msra.mxu1 %v9138_v21  ;;  %v4630_v21 = vld [vmem:[#allocation14 + $0x598] sm:$0xff] }
 0x78a   :  { %7785 = vmatprep.subr.bf16.mxu1 %v9171_v22  ;;  %v9108_v22 = vcombine.low %v4582_v13, %v4598_v14  ;;  %v9141_v23 = vcombine.high %v4614_v20, %v4630_v21  ;;  %v4551_v14 = vld [vmem:[#allocation14 + $0x320] sm:$0xff] }
 0x78d   :  { %7786 = vmatpush1.bf16.msra.mxu1 %v9170_v25  ;;  %v4662_v25 = vld [vmem:[#allocation14 + $0x698] sm:$0xff] }
 0x78e   :  { %7787 = vmatprep.subr.bf16.mxu1 %v9203_v26  ;;  %v9140_v26 = vcombine.low %v4614_v20, %v4630_v21  ;;  %v9173_v27 = vcombine.high %v4646_v24, %v4662_v25  ;;  %v4583_v21 = vld [vmem:[#allocation14 + $0x420] sm:$0xff] }
 0x791   :  { %7788 = vmatpush1.bf16.msra.mxu1 %v9202_v29  ;;  %v4694_v29 = vld [vmem:[#allocation14 + $0x798] sm:$0xff] }
 0x792   :  { %7789 = vmatprep.subr.bf16.mxu1 %v9235_v30  ;;  %v9172_v30 = vcombine.low %v4646_v24, %v4662_v25  ;;  %v9205_v31 = vcombine.high %v4678_v28, %v4694_v29  ;;  %v4615_v25 = vld [vmem:[#allocation14 + $0x520] sm:$0xff] }
 0x795   :  { %7790 = vmatpush1.bf16.msra.mxu1 %v9234_v33  ;;  %v4726_v33 = vld [vmem:[#allocation14 + $0x898] sm:$0xff] }
 0x796   :  { %7791 = vmatprep.subr.bf16.mxu1 %v9267_v36  ;;  %v9204_v36 = vcombine.low %v4678_v28, %v4694_v29  ;;  %v9237_v38 = vcombine.high %v4710_v32, %v4726_v33  ;;  %v10882_v29 = vld [vmem:[#allocation16] sm:$0xff] }
 0x799   :  { %7792 = vmatpush1.bf16.msra.mxu1 %v9266_v40  ;;  %v4758_v40 = vld [vmem:[#allocation14 + $0x998] sm:$0xff] }
 0x79a   :  { %7793 = vmatprep.subr.bf16.mxu1 %v9299_v41  ;;  %v9236_v41 = vcombine.low %v4710_v32, %v4726_v33  ;;  %v9269_v42 = vcombine.high %v4742_v39, %v4758_v40  ;;  %v4647_v33 = vld [vmem:[#allocation14 + $0x620] sm:$0xff] }
 0x79d   :  { %7794 = vmatpush1.bf16.msra.mxu1 %v9298_v44  ;;  %v4790_v44 = vld [vmem:[#allocation14 + $0xa98] sm:$0xff] }
 0x79e   :  { %7795 = vmatprep.subr.bf16.mxu1 %v9331_v45  ;;  %v9268_v45 = vcombine.low %v4742_v39, %v4758_v40  ;;  %v9301_v46 = vcombine.high %v4774_v43, %v4790_v44 }
 0x7a1   :  { %7796 = vmatpush1.bf16.msra.mxu1 %v9330_v48  ;;  %v4822_v48 = vld [vmem:[#allocation14 + $0xb98] sm:$0xff] }
 0x7a2   :  { %7797 = vmatprep.subr.bf16.mxu1 %v9363_v49  ;;  %v9300_v49 = vcombine.low %v4774_v43, %v4790_v44  ;;  %v9333_v50 = vcombine.high %v4806_v47, %v4822_v48 }
 0x7a5   :  { %7798 = vmatpush1.bf16.msra.mxu1 %v9362_v17  ;;  %v4854_v17 = vld [vmem:[#allocation14 + $0xc98] sm:$0xff] }
 0x7a6   :  { %7799 = vmatprep.subr.bf16.mxu1 %v9395_v18  ;;  %v9332_v18 = vcombine.low %v4806_v47, %v4822_v48  ;;  %v9365_v19 = vcombine.high %v4838_v51, %v4854_v17  ;;  %v4695_v47 = vld [vmem:[#allocation14 + $0x7a0] sm:$0xff] }
 0x7a9   :  { %7800 = vmatpush1.bf16.msra.mxu1 %v9394_v53  ;;  %v4886_v53 = vld [vmem:[#allocation14 + $0xd98] sm:$0xff] }
 0x7aa   :  { %7801 = vmatprep.subr.bf16.mxu1 %v9427_v54  ;;  %v9364_v54 = vcombine.low %v4838_v51, %v4854_v17  ;;  %v9397_v55 = vcombine.high %v4870_v52, %v4886_v53 }
 0x7ad   :  { %7802 = vmatpush1.bf16.msra.mxu1 %v9426_v59  ;;  %v4918_v59 = vld [vmem:[#allocation14 + $0xe98] sm:$0xff] }
 0x7ae   :  { %7803 = vmatprep.subr.bf16.mxu1 %v9459_v60  ;;  %v9396_v60 = vcombine.low %v4870_v52, %v4886_v53  ;;  %v9429_v61 = vcombine.high %v4902_v58, %v4918_v59 }
 0x7b1   :  { %7804 = vmatpush1.bf16.msra.mxu1 %v9458_v63  ;;  %v4950_v63 = vld [vmem:[#allocation14 + $0xf98] sm:$0xff] }
 0x7b2   :  { %7814 = vmatprep.subr.bf16.mxu1 %v8981_v0  ;;  %v9428_v0 = vcombine.low %v4902_v58, %v4918_v59  ;;  %v9461_v1 = vcombine.high %v4934_v62, %v4950_v63  ;;  %v4711_v59 = vld [vmem:[#allocation14 + $0x820] sm:$0xff] }
 0x7b4   :  { %7806 = vmatmul.mubr.bf16.vlgmr.msra.gmra.mrb[16].mxu1 %v10866_v57 }
 0x7b5   :  { %7815 = vmatpush1.bf16.msra.mxu1 %v8980_v3  ;;  %7846 = vmatprep.mubr.bf16.mxu1 %v10864_v56  ;;  %v4471_v3 = vld [vmem:[#allocation14 + $0xa0] sm:$0xff] }
 0x7b6   :  { %7816 = vmatprep.subr.bf16.mxu1 %v9013_v4  ;;  %v9460_v4 = vcombine.low %v4934_v62, %v4950_v63  ;;  %v8983_v5 = vcombine.high %v4455_v2, %v4471_v3  ;;  %v4743_v63 = vld [vmem:[#allocation14 + $0x920] sm:$0xff] }
 0x7b9   :  { %7817 = vmatpush1.bf16.msra.mxu1 %v9012_v7  ;;  %v4503_v7 = vld [vmem:[#allocation14 + $0x1a0] sm:$0xff] }
 0x7ba   :  { %7818 = vmatprep.subr.bf16.mxu1 %v9045_v8  ;;  %v8982_v8 = vcombine.low %v4455_v2, %v4471_v3  ;;  %v9015_v9 = vcombine.high %v4487_v6, %v4503_v7  ;;  %v4775_v3 = vld [vmem:[#allocation14 + $0xa20] sm:$0xff] }
 0x7bd   :  { %7819 = vmatpush1.bf16.msra.mxu1 %v9044_v11  ;;  %v4535_v11 = vld [vmem:[#allocation14 + $0x2a0] sm:$0xff] }
 0x7be   :  { %7820 = vmatprep.subr.bf16.mxu1 %v9077_v12  ;;  %v9014_v12 = vcombine.low %v4487_v6, %v4503_v7  ;;  %v9047_v13 = vcombine.high %v4519_v10, %v4535_v11  ;;  %v4807_v7 = vld [vmem:[#allocation14 + $0xb20] sm:$0xff] }
 0x7c1   :  { %7821 = vmatpush1.bf16.msra.mxu1 %v9076_v15  ;;  %v4567_v15 = vld [vmem:[#allocation14 + $0x3a0] sm:$0xff] }
 0x7c2   :  { %7822 = vmatprep.subr.bf16.mxu1 %v9109_v16  ;;  %v9046_v16 = vcombine.low %v4519_v10, %v4535_v11  ;;  %v9079_v20 = vcombine.high %v4551_v14, %v4567_v15  ;;  %v4839_v11 = vld [vmem:[#allocation14 + $0xc20] sm:$0xff] }
 0x7c5   :  { %7823 = vmatpush1.bf16.msra.mxu1 %v9108_v22  ;;  %v4599_v22 = vld [vmem:[#allocation14 + $0x4a0] sm:$0xff] }
 0x7c6   :  { %7824 = vmatprep.subr.bf16.mxu1 %v9141_v23  ;;  %v9078_v23 = vcombine.low %v4551_v14, %v4567_v15  ;;  %v9111_v24 = vcombine.high %v4583_v21, %v4599_v22  ;;  %v9110_v28 = vcombine.low %v4583_v21, %v4599_v22  ;;  %v4871_v15 = vld [vmem:[#allocation14 + $0xd20] sm:$0xff] }
 0x7c7   :  { %v4903_v22 = vld [vmem:[#allocation14 + $0xe20] sm:$0xff] }
 0x7c9   :  { %7825 = vmatpush1.bf16.msra.mxu1 %v9140_v26  ;;  %v4631_v26 = vld [vmem:[#allocation14 + $0x5a0] sm:$0xff] }
 0x7ca   :  { %7826 = vmatprep.subr.bf16.mxu1 %v9173_v27  ;;  %v10880_v27 = vsub.s32 4, %v10839_v34  ;;  %v9143_v32 = vcombine.high %v4615_v25, %v4631_v26  ;;  %v9142_v40 = vcombine.low %v4615_v25, %v4631_v26  ;;  %v4935_v26 = vld [vmem:[#allocation14 + $0xf20] sm:$0xff] }
 0x7cd   :  { %7827 = vmatpush1.bf16.msra.mxu1 %v9172_v30  ;;  %v4966_v30 = vld [vmem:[#allocation16 + $0x18] sm:$0xff] }
 0x7ce   :  { %7828 = vmatprep.subr.bf16.mxu1 %v9205_v31  ;;  %v10885_v31 = vsub.s32 5, %v10839_v34  ;;  %v5086_v39 = vrot.slane %v4966_v30, %v10880_v27 }
 0x7d1   :  { %7829 = vmatpush1.bf16.msra.mxu1 %v9204_v36  ;;  %v4663_v36 = vld [vmem:[#allocation14 + $0x6a0] sm:$0xff] }
 0x7d2   :  { %7830 = vmatprep.subr.bf16.mxu1 %v9237_v38  ;;  %v4974_v38 = vrot.slane %v10882_v29, %v10842_v35  ;;  %v9175_v43 = vcombine.high %v4647_v33, %v4663_v36  ;;  %v9174_v53 = vcombine.low %v4647_v33, %v4663_v36  ;;  %v4456_v33 = vld [vmem:[#allocation14 + $0x28] sm:$0xff] }
 0x7d3   :  { %v4472_v36 = vld [vmem:[#allocation14 + $0xa8] sm:$0xff] }
 0x7d5   :  { %7831 = vmatpush1.bf16.msra.mxu1 %v9236_v41  ;;  %v4978_v41 = vrot.slane %v10882_v29, %v10845_v37 }
 0x7d6   :  { %7832 = vmatprep.subr.bf16.mxu1 %v9269_v42  ;;  %v5090_v42 = vrot.slane %v4966_v30, %v10885_v31 }
 0x7d9   :  { %7833 = vmatpush1.bf16.msra.mxu1 %v9268_v45 }
 0x7da   :  { %7834 = vmatprep.subr.bf16.mxu1 %v9301_v46  ;;  %v4679_v46 = vld [vmem:[#allocation14 + $0x720] sm:$0xff] }
 0x7db   :  { %v9207_v58 = vcombine.high %v4679_v46, %v4695_v47 }
 0x7dd   :  { %7835 = vmatpush1.bf16.msra.mxu1 %v9300_v49 }
 0x7de   :  { %7836 = vmatprep.subr.bf16.mxu1 %v9333_v50 }
 0x7e1   :  { %7837 = vmatpush1.bf16.msra.mxu1 %v9332_v18 }
 0x7e2   :  { %7838 = vmatprep.subr.bf16.mxu1 %v9365_v19 }
 0x7e5   :  { %7839 = vmatpush1.bf16.msra.mxu1 %v9364_v54 }
 0x7e6   :  { %7840 = vmatprep.subr.bf16.mxu1 %v9397_v55 }
 0x7e9   :  { %7841 = vmatpush1.bf16.msra.mxu1 %v9396_v60  ;;  %v4727_v60 = vld [vmem:[#allocation14 + $0x8a0] sm:$0xff] }
 0x7ea   :  { %7842 = vmatprep.subr.bf16.mxu1 %v9429_v61  ;;  %v9206_v61 = vcombine.low %v4679_v46, %v4695_v47  ;;  %v9239_v62 = vcombine.high %v4711_v59, %v4727_v60 }
 0x7ed   :  { %7843 = vmatpush1.bf16.msra.mxu1 %v9428_v0  ;;  %v4759_v0 = vld [vmem:[#allocation14 + $0x9a0] sm:$0xff] }
 0x7ee   :  { %7844 = vmatprep.subr.bf16.mxu1 %v9461_v1  ;;  %v9238_v1 = vcombine.low %v4711_v59, %v4727_v60  ;;  %v9271_v2 = vcombine.high %v4743_v63, %v4759_v0  ;;  %v10899_v59 = vsub.s32 3, %v10839_v34 }
 0x7f1   :  { %7845 = vmatpush1.bf16.msra.mxu1 %v9460_v4  ;;  %v4791_v4 = vld [vmem:[#allocation14 + $0xaa0] sm:$0xff] }
 0x7f2   :  { %7855 = vmatprep.subr.bf16.mxu1 %v8983_v5  ;;  %v9270_v5 = vcombine.low %v4743_v63, %v4759_v0  ;;  %v9303_v6 = vcombine.high %v4775_v3, %v4791_v4  ;;  %v4986_v0 = vrot.slane %v10882_v29, %v10899_v59 }
 0x7f4   :  { %7847 = vmatmul.mubr.bf16.vlgmr.msra.gmra.mrb[20].mxu1 %v10866_v57 }
 0x7f5   :  { %7856 = vmatpush1.bf16.msra.mxu1 %v8982_v8  ;;  %7887 = vmatprep.mubr.bf16.mxu1 %v10864_v56  ;;  %v4823_v8 = vld [vmem:[#allocation14 + $0xba0] sm:$0xff] }
 0x7f6   :  { %7857 = vmatprep.subr.bf16.mxu1 %v9015_v9  ;;  %v9302_v9 = vcombine.low %v4775_v3, %v4791_v4  ;;  %v9335_v10 = vcombine.high %v4807_v7, %v4823_v8  ;;  %v4680_v4 = vld [vmem:[#allocation14 + $0x728] sm:$0xff] }
 0x7f9   :  { %7858 = vmatpush1.bf16.msra.mxu1 %v9014_v12  ;;  %v4855_v12 = vld [vmem:[#allocation14 + $0xca0] sm:$0xff] }
 0x7fa   :  { %7859 = vmatprep.subr.bf16.mxu1 %v9047_v13  ;;  %v9334_v13 = vcombine.low %v4807_v7, %v4823_v8  ;;  %v9367_v14 = vcombine.high %v4839_v11, %v4855_v12 }
 0x7fd   :  { %7860 = vmatpush1.bf16.msra.mxu1 %v9046_v16  ;;  %v4887_v16 = vld [vmem:[#allocation14 + $0xda0] sm:$0xff] }
 0x7fe   :  { %7861 = vmatprep.subr.bf16.mxu1 %v9079_v20  ;;  %v9366_v20 = vcombine.low %v4839_v11, %v4855_v12  ;;  %v9399_v21 = vcombine.high %v4871_v15, %v4887_v16 }
 0x801   :  { %7862 = vmatpush1.bf16.msra.mxu1 %v9078_v23  ;;  %v4919_v23 = vld [vmem:[#allocation14 + $0xea0] sm:$0xff] }
 0x802   :  { %7863 = vmatprep.subr.bf16.mxu1 %v9111_v24  ;;  %v9398_v24 = vcombine.low %v4871_v15, %v4887_v16  ;;  %v9431_v25 = vcombine.high %v4903_v22, %v4919_v23  ;;  %v9430_v30 = vcombine.low %v4903_v22, %v4919_v23 }
 0x805   :  { %7864 = vmatpush1.bf16.msra.mxu1 %v9110_v28  ;;  %v4951_v28 = vld [vmem:[#allocation14 + $0xfa0] sm:$0xff] }
 0x806   :  { %7865 = vmatprep.subr.bf16.mxu1 %v9143_v32  ;;  %v9463_v32 = vcombine.high %v4935_v26, %v4951_v28 }
 0x807   :  { %v7725_v44 = vpop.f32.mrb[8].mxu1  ;;  %v8299_v45 = vpop.f32.mrb[4].mxu0 }
 0x808   :  { %v7726_v48 = vadd.f32 %v7725_v44, %v4974_v38  ;;  %v8300_v49 = vadd.f32 %v8299_v45, %v5086_v39  ;;  %v7727_v50 = vpop.f32.mrb[9].mxu1  ;;  %v8301_v51 = vpop.f32.mrb[5].mxu0  ;;  %v9462_v38 = vcombine.low %v4935_v26, %v4951_v28  ;;  %v8985_v39 = vcombine.high %v4456_v33, %v4472_v36  ;;  %v4520_v44 = vld [vmem:[#allocation14 + $0x228] sm:$0xff] }
 0x809   :  { %v7728_v17 = vadd.f32 %v7727_v50, %v4978_v41  ;;  %7866 = vmatpush1.bf16.msra.mxu1 %v9142_v40  ;;  %v8302_v18 = vadd.f32 %v8301_v51, %v5090_v42  ;;  %v7729_v19 = vpop.f32.mrb[10].mxu1  ;;  %v8303_v52 = vpop.f32.mrb[6].mxu0  ;;  %v4488_v40 = vld [vmem:[#allocation14 + $0x128] sm:$0xff]  ;;  %v8984_v42 = vcombine.low %v4456_v33, %v4472_v36 }
 0x80a   :  { %8347 = vst [vmem:[#allocation17] sm:$0xff] %v7726_v48  ;;  %8375 = vst [vmem:[#allocation17 + $0xe0] sm:$0xff] %v8300_v49  ;;  %v7730_v54 = vpop.f32.mrb[11].mxu1  ;;  %v8304_v55 = vpop.f32.mrb[7].mxu0  ;;  %7867 = vmatprep.subr.bf16.mxu1 %v9175_v43  ;;  %v4504_v41 = vld [vmem:[#allocation14 + $0x1a8] sm:$0xff] }
 0x80b   :  { %8348 = vst [vmem:[#allocation17 + $0x8] sm:$0xff] %v7728_v17  ;;  %8376 = vst [vmem:[#allocation17 + $0xe8] sm:$0xff] %v8302_v18  ;;  %v9017_v43 = vcombine.high %v4488_v40, %v4504_v41  ;;  %v4536_v45 = vld [vmem:[#allocation14 + $0x2a8] sm:$0xff]  ;;  %v9016_v46 = vcombine.low %v4488_v40, %v4504_v41  ;;  %v10896_v55 = vsub.s32 2, %v10839_v34 }
 0x80c   :  { %v9049_v47 = vcombine.high %v4520_v44, %v4536_v45  ;;  %v4552_v48 = vld [vmem:[#allocation14 + $0x328] sm:$0xff]  ;;  %v9048_v50 = vcombine.low %v4520_v44, %v4536_v45 }
 0x80d   :  { %7868 = vmatpush1.bf16.msra.mxu1 %v9174_v53  ;;  %v4568_v49 = vld [vmem:[#allocation14 + $0x3a8] sm:$0xff]  ;;  %v4982_v63 = vrot.slane %v10882_v29, %v10896_v55 }
 0x80e   :  { %7869 = vmatprep.subr.bf16.mxu1 %v9207_v58  ;;  %v9081_v51 = vcombine.high %v4552_v48, %v4568_v49  ;;  %v4584_v17 = vld [vmem:[#allocation14 + $0x428] sm:$0xff]  ;;  %v9080_v19 = vcombine.low %v4552_v48, %v4568_v49 }
 0x80f   :  { %v4600_v18 = vld [vmem:[#allocation14 + $0x4a8] sm:$0xff] }
 0x810   :  { %v9113_v52 = vcombine.high %v4584_v17, %v4600_v18  ;;  %v4616_v53 = vld [vmem:[#allocation14 + $0x528] sm:$0xff]  ;;  %v9112_v58 = vcombine.low %v4584_v17, %v4600_v18 }
 0x811   :  { %7870 = vmatpush1.bf16.msra.mxu1 %v9206_v61  ;;  %v4632_v54 = vld [vmem:[#allocation14 + $0x5a8] sm:$0xff] }
 0x812   :  { %7871 = vmatprep.subr.bf16.mxu1 %v9239_v62  ;;  %v9145_v60 = vcombine.high %v4616_v53, %v4632_v54  ;;  %v4648_v61 = vld [vmem:[#allocation14 + $0x628] sm:$0xff] }
 0x813   :  { %v4664_v62 = vld [vmem:[#allocation14 + $0x6a8] sm:$0xff] }
 0x815   :  { %7872 = vmatpush1.bf16.msra.mxu1 %v9238_v1  ;;  %v9144_v1 = vcombine.low %v4616_v53, %v4632_v54 }
 0x816   :  { %7873 = vmatprep.subr.bf16.mxu1 %v9271_v2  ;;  %v9177_v2 = vcombine.high %v4648_v61, %v4664_v62 }
 0x819   :  { %7874 = vmatpush1.bf16.msra.mxu1 %v9270_v5  ;;  %v4696_v5 = vld [vmem:[#allocation14 + $0x7a8] sm:$0xff] }
 0x81a   :  { %7875 = vmatprep.subr.bf16.mxu1 %v9303_v6  ;;  %v9209_v12 = vcombine.high %v4680_v4, %v4696_v5  ;;  %v9208_v15 = vcombine.low %v4680_v4, %v4696_v5  ;;  %v4569_v4 = vld [vmem:[#allocation14 + $0x3b0] sm:$0xff] }
 0x81d   :  { %7876 = vmatpush1.bf16.msra.mxu1 %v9302_v9 }
 0x81e   :  { %7877 = vmatprep.subr.bf16.mxu1 %v9335_v10  ;;  %v9176_v10 = vcombine.low %v4648_v61, %v4664_v62 }
 0x821   :  { %7878 = vmatpush1.bf16.msra.mxu1 %v9334_v13  ;;  %v4712_v13 = vld [vmem:[#allocation14 + $0x828] sm:$0xff] }
 0x822   :  { %7879 = vmatprep.subr.bf16.mxu1 %v9367_v14  ;;  %v4728_v14 = vld [vmem:[#allocation14 + $0x8a8] sm:$0xff] }
 0x823   :  { %v9241_v16 = vcombine.high %v4712_v13, %v4728_v14  ;;  %v9240_v22 = vcombine.low %v4712_v13, %v4728_v14 }
 0x825   :  { %7880 = vmatpush1.bf16.msra.mxu1 %v9366_v20  ;;  %v4744_v20 = vld [vmem:[#allocation14 + $0x928] sm:$0xff] }
 0x826   :  { %7881 = vmatprep.subr.bf16.mxu1 %v9399_v21  ;;  %v4760_v21 = vld [vmem:[#allocation14 + $0x9a8] sm:$0xff] }
 0x827   :  { %v9273_v23 = vcombine.high %v4744_v20, %v4760_v21  ;;  %v9272_v26 = vcombine.low %v4744_v20, %v4760_v21  ;;  %v4990_v20 = vrot.slane %v10882_v29, %v10880_v27  ;;  %v4994_v21 = vrot.slane %v10882_v29, %v10885_v31 }
 0x829   :  { %7882 = vmatpush1.bf16.msra.mxu1 %v9398_v24  ;;  %v4776_v24 = vld [vmem:[#allocation14 + $0xa28] sm:$0xff] }
 0x82a   :  { %7883 = vmatprep.subr.bf16.mxu1 %v9431_v25  ;;  %v4792_v25 = vld [vmem:[#allocation14 + $0xaa8] sm:$0xff] }
 0x82b   :  { %v9305_v28 = vcombine.high %v4776_v24, %v4792_v25  ;;  %v9304_v33 = vcombine.low %v4776_v24, %v4792_v25  ;;  %v4681_v25 = vld [vmem:[#allocation14 + $0x730] sm:$0xff] }
 0x82d   :  { %7884 = vmatpush1.bf16.msra.mxu1 %v9430_v30  ;;  %v4808_v30 = vld [vmem:[#allocation14 + $0xb28] sm:$0xff] }
 0x82e   :  { %7885 = vmatprep.subr.bf16.mxu1 %v9463_v32  ;;  %v4824_v32 = vld [vmem:[#allocation14 + $0xba8] sm:$0xff] }
 0x82f   :  { %v9337_v36 = vcombine.high %v4808_v30, %v4824_v32  ;;  %v9336_v40 = vcombine.low %v4808_v30, %v4824_v32 }
 0x831   :  { %7886 = vmatpush1.bf16.msra.mxu1 %v9462_v38  ;;  %v4840_v38 = vld [vmem:[#allocation14 + $0xc28] sm:$0xff] }
 0x832   :  { %7896 = vmatprep.subr.bf16.mxu1 %v8985_v39  ;;  %v4856_v39 = vld [vmem:[#allocation14 + $0xca8] sm:$0xff] }
 0x833   :  { %v9369_v41 = vcombine.high %v4840_v38, %v4856_v39  ;;  %v9368_v44 = vcombine.low %v4840_v38, %v4856_v39 }
 0x834   :  { %7888 = vmatmul.mubr.bf16.vlgmr.msra.gmra.mrb[24].mxu1 %v10866_v57 }
 0x835   :  { %7897 = vmatpush1.bf16.msra.mxu1 %v8984_v42  ;;  %7928 = vmatprep.mubr.bf16.mxu1 %v10864_v56  ;;  %v4872_v42 = vld [vmem:[#allocation14 + $0xd28] sm:$0xff] }
 0x836   :  { %7898 = vmatprep.subr.bf16.mxu1 %v9017_v43  ;;  %v4888_v43 = vld [vmem:[#allocation14 + $0xda8] sm:$0xff] }
 0x837   :  { %v9401_v45 = vcombine.high %v4872_v42, %v4888_v43  ;;  %v9400_v48 = vcombine.low %v4872_v42, %v4888_v43 }
 0x839   :  { %7899 = vmatpush1.bf16.msra.mxu1 %v9016_v46  ;;  %v4904_v46 = vld [vmem:[#allocation14 + $0xe28] sm:$0xff] }
 0x83a   :  { %7900 = vmatprep.subr.bf16.mxu1 %v9049_v47  ;;  %v4920_v47 = vld [vmem:[#allocation14 + $0xea8] sm:$0xff] }
 0x83b   :  { %v9433_v49 = vcombine.high %v4904_v46, %v4920_v47  ;;  %v9432_v17 = vcombine.low %v4904_v46, %v4920_v47 }
 0x83d   :  { %7901 = vmatpush1.bf16.msra.mxu1 %v9048_v50  ;;  %v4936_v50 = vld [vmem:[#allocation14 + $0xf28] sm:$0xff] }
 0x83e   :  { %7902 = vmatprep.subr.bf16.mxu1 %v9081_v51  ;;  %v4952_v51 = vld [vmem:[#allocation14 + $0xfa8] sm:$0xff] }
 0x83f   :  { %v9465_v18 = vcombine.high %v4936_v50, %v4952_v51  ;;  %v9464_v53 = vcombine.low %v4936_v50, %v4952_v51 }
 0x841   :  { %7903 = vmatpush1.bf16.msra.mxu1 %v9080_v19  ;;  %v4457_v19 = vld [vmem:[#allocation14 + $0x30] sm:$0xff] }
 0x842   :  { %7904 = vmatprep.subr.bf16.mxu1 %v9113_v52  ;;  %v4473_v52 = vld [vmem:[#allocation14 + $0xb0] sm:$0xff] }
 0x843   :  { %v8987_v54 = vcombine.high %v4457_v19, %v4473_v52  ;;  %v8986_v61 = vcombine.low %v4457_v19, %v4473_v52 }
 0x845   :  { %7905 = vmatpush1.bf16.msra.mxu1 %v9112_v58  ;;  %v4489_v58 = vld [vmem:[#allocation14 + $0x130] sm:$0xff] }
 0x846   :  { %7906 = vmatprep.subr.bf16.mxu1 %v9145_v60  ;;  %v4505_v60 = vld [vmem:[#allocation14 + $0x1b0] sm:$0xff] }
 0x847   :  { %v7766_v3 = vpop.f32.mrb[12].mxu1  ;;  %v9019_v62 = vcombine.high %v4489_v58, %v4505_v60 }
 0x848   :  { %v7767_v6 = vadd.f32 %v7766_v3, %v4982_v63  ;;  %v7768_v7 = vpop.f32.mrb[13].mxu1  ;;  %v4521_v63 = vld [vmem:[#allocation14 + $0x230] sm:$0xff] }
 0x849   :  { %v7769_v8 = vadd.f32 %v7768_v7, %v4986_v0  ;;  %v7770_v9 = vpop.f32.mrb[14].mxu1  ;;  %7907 = vmatpush1.bf16.msra.mxu1 %v9144_v1  ;;  %v4537_v0 = vld [vmem:[#allocation14 + $0x2b0] sm:$0xff]  ;;  %v9018_v1 = vcombine.low %v4489_v58, %v4505_v60 }
 0x84a   :  { %8349 = vst [vmem:[#allocation17 + $0x10] sm:$0xff] %v7767_v6  ;;  %v7771_v11 = vpop.f32.mrb[15].mxu1  ;;  %7908 = vmatprep.subr.bf16.mxu1 %v9177_v2  ;;  %v9051_v2 = vcombine.high %v4521_v63, %v4537_v0  ;;  %v4553_v3 = vld [vmem:[#allocation14 + $0x330] sm:$0xff]  ;;  %v9050_v5 = vcombine.low %v4521_v63, %v4537_v0 }
 0x84b   :  { %8350 = vst [vmem:[#allocation17 + $0x18] sm:$0xff] %v7769_v8  ;;  %v9083_v6 = vcombine.high %v4553_v3, %v4569_v4  ;;  %v4585_v7 = vld [vmem:[#allocation14 + $0x430] sm:$0xff]  ;;  %v9082_v9 = vcombine.low %v4553_v3, %v4569_v4 }
 0x84c   :  { %v4601_v8 = vld [vmem:[#allocation14 + $0x4b0] sm:$0xff] }
 0x84d   :  { %7909 = vmatpush1.bf16.msra.mxu1 %v9176_v10  ;;  %v9115_v10 = vcombine.high %v4585_v7, %v4601_v8  ;;  %v4617_v11 = vld [vmem:[#allocation14 + $0x530] sm:$0xff]  ;;  %v9114_v13 = vcombine.low %v4585_v7, %v4601_v8 }
 0x84e   :  { %7910 = vmatprep.subr.bf16.mxu1 %v9209_v12  ;;  %v4633_v12 = vld [vmem:[#allocation14 + $0x5b0] sm:$0xff] }
 0x84f   :  { %v9147_v14 = vcombine.high %v4617_v11, %v4633_v12 }
 0x851   :  { %7911 = vmatpush1.bf16.msra.mxu1 %v9208_v15  ;;  %v4649_v15 = vld [vmem:[#allocation14 + $0x630] sm:$0xff] }
 0x852   :  { %7912 = vmatprep.subr.bf16.mxu1 %v9241_v16  ;;  %v4665_v16 = vld [vmem:[#allocation14 + $0x6b0] sm:$0xff] }
 0x855   :  { %7913 = vmatpush1.bf16.msra.mxu1 %v9240_v22  ;;  %v9146_v22 = vcombine.low %v4617_v11, %v4633_v12 }
 0x856   :  { %7914 = vmatprep.subr.bf16.mxu1 %v9273_v23  ;;  %v9179_v23 = vcombine.high %v4649_v15, %v4665_v16 }
 0x859   :  { %7915 = vmatpush1.bf16.msra.mxu1 %v9272_v26  ;;  %v4697_v26 = vld [vmem:[#allocation14 + $0x7b0] sm:$0xff] }
 0x85a   :  { %7916 = vmatprep.subr.bf16.mxu1 %v9305_v28  ;;  %v9211_v39 = vcombine.high %v4681_v25, %v4697_v26  ;;  %v9210_v42 = vcombine.low %v4681_v25, %v4697_v26  ;;  %v4570_v25 = vld [vmem:[#allocation14 + $0x3b8] sm:$0xff] }
 0x85d   :  { %7917 = vmatpush1.bf16.msra.mxu1 %v9304_v33 }
 0x85e   :  { %7918 = vmatprep.subr.bf16.mxu1 %v9337_v36  ;;  %v9178_v36 = vcombine.low %v4649_v15, %v4665_v16 }
 0x861   :  { %7919 = vmatpush1.bf16.msra.mxu1 %v9336_v40  ;;  %v4713_v40 = vld [vmem:[#allocation14 + $0x830] sm:$0xff] }
 0x862   :  { %7920 = vmatprep.subr.bf16.mxu1 %v9369_v41  ;;  %v4729_v41 = vld [vmem:[#allocation14 + $0x8b0] sm:$0xff] }
 0x863   :  { %v9243_v43 = vcombine.high %v4713_v40, %v4729_v41  ;;  %v9242_v46 = vcombine.low %v4713_v40, %v4729_v41  ;;  %v10914_v40 = vsub.s32 6, %v10839_v34 }
 0x865   :  { %7921 = vmatpush1.bf16.msra.mxu1 %v9368_v44  ;;  %v4745_v44 = vld [vmem:[#allocation14 + $0x930] sm:$0xff] }
 0x866   :  { %7922 = vmatprep.subr.bf16.mxu1 %v9401_v45  ;;  %v4761_v45 = vld [vmem:[#allocation14 + $0x9b0] sm:$0xff] }
 0x867   :  { %v9275_v47 = vcombine.high %v4745_v44, %v4761_v45  ;;  %v9274_v50 = vcombine.low %v4745_v44, %v4761_v45  ;;  %v4650_v44 = vld [vmem:[#allocation14 + $0x638] sm:$0xff] }
 0x868   :  { %v4666_v45 = vld [vmem:[#allocation14 + $0x6b8] sm:$0xff] }
 0x869   :  { %7923 = vmatpush1.bf16.msra.mxu1 %v9400_v48  ;;  %v4777_v48 = vld [vmem:[#allocation14 + $0xa30] sm:$0xff] }
 0x86a   :  { %7924 = vmatprep.subr.bf16.mxu1 %v9433_v49  ;;  %v4793_v49 = vld [vmem:[#allocation14 + $0xab0] sm:$0xff] }
 0x86b   :  { %v9307_v51 = vcombine.high %v4777_v48, %v4793_v49  ;;  %v9306_v19 = vcombine.low %v4777_v48, %v4793_v49  ;;  %v9181_v49 = vcombine.high %v4650_v44, %v4666_v45 }
 0x86d   :  { %7925 = vmatpush1.bf16.msra.mxu1 %v9432_v17  ;;  %v4809_v17 = vld [vmem:[#allocation14 + $0xb30] sm:$0xff] }
 0x86e   :  { %7926 = vmatprep.subr.bf16.mxu1 %v9465_v18  ;;  %v4825_v18 = vld [vmem:[#allocation14 + $0xbb0] sm:$0xff] }
 0x86f   :  { %v9339_v52 = vcombine.high %v4809_v17, %v4825_v18  ;;  %v9338_v58 = vcombine.low %v4809_v17, %v4825_v18  ;;  %v4698_v17 = vld [vmem:[#allocation14 + $0x7b8] sm:$0xff] }
 0x871   :  { %7927 = vmatpush1.bf16.msra.mxu1 %v9464_v53  ;;  %v4841_v53 = vld [vmem:[#allocation14 + $0xc30] sm:$0xff] }
 0x872   :  { %7937 = vmatprep.subr.bf16.mxu1 %v8987_v54  ;;  %v4857_v54 = vld [vmem:[#allocation14 + $0xcb0] sm:$0xff] }
 0x873   :  { %v9371_v60 = vcombine.high %v4841_v53, %v4857_v54  ;;  %v9370_v63 = vcombine.low %v4841_v53, %v4857_v54  ;;  %v9180_v53 = vcombine.low %v4650_v44, %v4666_v45 }
 0x874   :  { %7929 = vmatmul.mubr.bf16.vlgmr.msra.gmra.mrb[28].mxu1 %v10866_v57 }
 0x875   :  { %7938 = vmatpush1.bf16.msra.mxu1 %v8986_v61  ;;  %7969 = vmatprep.mubr.bf16.mxu1 %v10864_v56  ;;  %v4873_v61 = vld [vmem:[#allocation14 + $0xd30] sm:$0xff] }
 0x876   :  { %7939 = vmatprep.subr.bf16.mxu1 %v9019_v62  ;;  %v4889_v62 = vld [vmem:[#allocation14 + $0xdb0] sm:$0xff] }
 0x877   :  { %v9403_v0 = vcombine.high %v4873_v61, %v4889_v62  ;;  %v9402_v3 = vcombine.low %v4873_v61, %v4889_v62  ;;  %v4730_v61 = vld [vmem:[#allocation14 + $0x8b8] sm:$0xff] }
 0x879   :  { %7940 = vmatpush1.bf16.msra.mxu1 %v9018_v1  ;;  %v4905_v1 = vld [vmem:[#allocation14 + $0xe30] sm:$0xff] }
 0x87a   :  { %7941 = vmatprep.subr.bf16.mxu1 %v9051_v2  ;;  %v4921_v2 = vld [vmem:[#allocation14 + $0xeb0] sm:$0xff] }
 0x87b   :  { %v9435_v4 = vcombine.high %v4905_v1, %v4921_v2  ;;  %v9434_v7 = vcombine.low %v4905_v1, %v4921_v2 }
 0x87d   :  { %7942 = vmatpush1.bf16.msra.mxu1 %v9050_v5  ;;  %v4937_v5 = vld [vmem:[#allocation14 + $0xf30] sm:$0xff] }
 0x87e   :  { %7943 = vmatprep.subr.bf16.mxu1 %v9083_v6  ;;  %v4953_v6 = vld [vmem:[#allocation14 + $0xfb0] sm:$0xff] }
 0x87f   :  { %v9467_v8 = vcombine.high %v4937_v5, %v4953_v6  ;;  %v9466_v11 = vcombine.low %v4937_v5, %v4953_v6 }
 0x881   :  { %7944 = vmatpush1.bf16.msra.mxu1 %v9082_v9  ;;  %v4458_v9 = vld [vmem:[#allocation14 + $0x38] sm:$0xff] }
 0x882   :  { %7945 = vmatprep.subr.bf16.mxu1 %v9115_v10  ;;  %v4474_v10 = vld [vmem:[#allocation14 + $0xb8] sm:$0xff] }
 0x883   :  { %v8989_v12 = vcombine.high %v4458_v9, %v4474_v10  ;;  %v8988_v15 = vcombine.low %v4458_v9, %v4474_v10 }
 0x885   :  { %7946 = vmatpush1.bf16.msra.mxu1 %v9114_v13  ;;  %v4490_v13 = vld [vmem:[#allocation14 + $0x138] sm:$0xff] }
 0x886   :  { %7947 = vmatprep.subr.bf16.mxu1 %v9147_v14  ;;  %v4506_v14 = vld [vmem:[#allocation14 + $0x1b8] sm:$0xff] }
 0x887   :  { %v7807_v24 = vpop.f32.mrb[16].mxu1  ;;  %v9021_v16 = vcombine.high %v4490_v13, %v4506_v14 }
 0x888   :  { %v7808_v28 = vadd.f32 %v7807_v24, %v4990_v20  ;;  %v7809_v30 = vpop.f32.mrb[17].mxu1  ;;  %v4522_v20 = vld [vmem:[#allocation14 + $0x238] sm:$0xff] }
 0x889   :  { %v7810_v32 = vadd.f32 %v7809_v30, %v4994_v21  ;;  %v7811_v33 = vpop.f32.mrb[18].mxu1  ;;  %7948 = vmatpush1.bf16.msra.mxu1 %v9146_v22  ;;  %v4538_v21 = vld [vmem:[#allocation14 + $0x2b8] sm:$0xff]  ;;  %v9020_v22 = vcombine.low %v4490_v13, %v4506_v14 }
 0x88a   :  { %8351 = vst [vmem:[#allocation17 + $0x20] sm:$0xff] %v7808_v28  ;;  %v7812_v38 = vpop.f32.mrb[19].mxu1  ;;  %7949 = vmatprep.subr.bf16.mxu1 %v9179_v23  ;;  %v9053_v23 = vcombine.high %v4522_v20, %v4538_v21  ;;  %v4554_v24 = vld [vmem:[#allocation14 + $0x338] sm:$0xff]  ;;  %v9052_v26 = vcombine.low %v4522_v20, %v4538_v21 }
 0x88b   :  { %8352 = vst [vmem:[#allocation17 + $0x28] sm:$0xff] %v7810_v32  ;;  %v9085_v28 = vcombine.high %v4554_v24, %v4570_v25  ;;  %v4586_v30 = vld [vmem:[#allocation14 + $0x438] sm:$0xff]  ;;  %v9084_v33 = vcombine.low %v4554_v24, %v4570_v25 }
 0x88c   :  { %v4602_v32 = vld [vmem:[#allocation14 + $0x4b8] sm:$0xff] }
 0x88d   :  { %7950 = vmatpush1.bf16.msra.mxu1 %v9178_v36  ;;  %v9117_v36 = vcombine.high %v4586_v30, %v4602_v32  ;;  %v4618_v38 = vld [vmem:[#allocation14 + $0x538] sm:$0xff]  ;;  %v9116_v41 = vcombine.low %v4586_v30, %v4602_v32 }
 0x88e   :  { %7951 = vmatprep.subr.bf16.mxu1 %v9211_v39  ;;  %v4634_v39 = vld [vmem:[#allocation14 + $0x5b8] sm:$0xff] }
 0x88f   :  { %v9148_v48 = vcombine.low %v4618_v38, %v4634_v39 }
 0x891   :  { %7952 = vmatpush1.bf16.msra.mxu1 %v9210_v42  ;;  %v10917_v42 = vsub.s32 7, %v10839_v34 }
 0x892   :  { %7953 = vmatprep.subr.bf16.mxu1 %v9243_v43  ;;  %v9149_v43 = vcombine.high %v4618_v38, %v4634_v39 }
 0x895   :  { %7954 = vmatpush1.bf16.msra.mxu1 %v9242_v46  ;;  %v4998_v46 = vrot.slane %v10882_v29, %v10914_v40 }
 0x896   :  { %7955 = vmatprep.subr.bf16.mxu1 %v9275_v47  ;;  %v5002_v47 = vrot.slane %v10882_v29, %v10917_v42 }
 0x899   :  { %7956 = vmatpush1.bf16.msra.mxu1 %v9274_v50 }
 0x89a   :  { %7957 = vmatprep.subr.bf16.mxu1 %v9307_v51  ;;  %v4682_v51 = vld [vmem:[#allocation14 + $0x738] sm:$0xff] }
 0x89b   :  { %v9212_v29 = vcombine.low %v4682_v51, %v4698_v17 }
 0x89d   :  { %7958 = vmatpush1.bf16.msra.mxu1 %v9306_v19 }
 0x89e   :  { %7959 = vmatprep.subr.bf16.mxu1 %v9339_v52 }
 0x8a1   :  { %7960 = vmatpush1.bf16.msra.mxu1 %v9338_v58  ;;  %v9213_v58 = vcombine.high %v4682_v51, %v4698_v17  ;;  %v4571_v51 = vld [vmem:[#allocation14 + $0x3c0] sm:$0xff] }
 0x8a2   :  { %7961 = vmatprep.subr.bf16.mxu1 %v9371_v60  ;;  %v4714_v60 = vld [vmem:[#allocation14 + $0x838] sm:$0xff] }
 0x8a3   :  { %v9245_v62 = vcombine.high %v4714_v60, %v4730_v61  ;;  %v9244_v1 = vcombine.low %v4714_v60, %v4730_v61  ;;  %v10925_v61 = vld [vmem:[#allocation16 + $0x8] sm:$0xff] }
 0x8a5   :  { %7962 = vmatpush1.bf16.msra.mxu1 %v9370_v63  ;;  %v4746_v63 = vld [vmem:[#allocation14 + $0x938] sm:$0xff] }
 0x8a6   :  { %7963 = vmatprep.subr.bf16.mxu1 %v9403_v0  ;;  %v4762_v0 = vld [vmem:[#allocation14 + $0x9b8] sm:$0xff] }
 0x8a7   :  { %v9277_v2 = vcombine.high %v4746_v63, %v4762_v0  ;;  %v9276_v5 = vcombine.low %v4746_v63, %v4762_v0  ;;  %v4667_v63 = vld [vmem:[#allocation14 + $0x6c0] sm:$0xff]  ;;  %v5006_v0 = vrot.slane %v10925_v61, %v10842_v35 }
 0x8a9   :  { %7964 = vmatpush1.bf16.msra.mxu1 %v9402_v3  ;;  %v4778_v3 = vld [vmem:[#allocation14 + $0xa38] sm:$0xff] }
 0x8aa   :  { %7965 = vmatprep.subr.bf16.mxu1 %v9435_v4  ;;  %v4794_v4 = vld [vmem:[#allocation14 + $0xab8] sm:$0xff] }
 0x8ab   :  { %v9309_v6 = vcombine.high %v4778_v3, %v4794_v4  ;;  %v9308_v9 = vcombine.low %v4778_v3, %v4794_v4 }
 0x8ad   :  { %7966 = vmatpush1.bf16.msra.mxu1 %v9434_v7  ;;  %v4810_v7 = vld [vmem:[#allocation14 + $0xb38] sm:$0xff] }
 0x8ae   :  { %7967 = vmatprep.subr.bf16.mxu1 %v9467_v8  ;;  %v4826_v8 = vld [vmem:[#allocation14 + $0xbb8] sm:$0xff] }
 0x8af   :  { %v9341_v10 = vcombine.high %v4810_v7, %v4826_v8  ;;  %v9340_v13 = vcombine.low %v4810_v7, %v4826_v8 }
 0x8b1   :  { %7968 = vmatpush1.bf16.msra.mxu1 %v9466_v11  ;;  %v4842_v11 = vld [vmem:[#allocation14 + $0xc38] sm:$0xff] }
 0x8b2   :  { %7978 = vmatprep.subr.bf16.mxu1 %v8989_v12  ;;  %v4858_v12 = vld [vmem:[#allocation14 + $0xcb8] sm:$0xff] }
 0x8b3   :  { %v9373_v14 = vcombine.high %v4842_v11, %v4858_v12  ;;  %v9372_v20 = vcombine.low %v4842_v11, %v4858_v12 }
 0x8b4   :  { %7970 = vmatmul.mubr.bf16.vlgmr.msra.gmra.mrb[32].mxu1 %v10866_v57 }
 0x8b5   :  { %7979 = vmatpush1.bf16.msra.mxu1 %v8988_v15  ;;  %8010 = vmatprep.mubr.bf16.mxu1 %v10864_v56  ;;  %v4874_v15 = vld [vmem:[#allocation14 + $0xd38] sm:$0xff] }
 0x8b6   :  { %7980 = vmatprep.subr.bf16.mxu1 %v9021_v16  ;;  %v4890_v16 = vld [vmem:[#allocation14 + $0xdb8] sm:$0xff] }
 0x8b7   :  { %v9405_v21 = vcombine.high %v4874_v15, %v4890_v16  ;;  %v9404_v24 = vcombine.low %v4874_v15, %v4890_v16  ;;  %v4731_v15 = vld [vmem:[#allocation14 + $0x8c0] sm:$0xff] }
 0x8b9   :  { %7981 = vmatpush1.bf16.msra.mxu1 %v9020_v22  ;;  %v4906_v22 = vld [vmem:[#allocation14 + $0xe38] sm:$0xff] }
 0x8ba   :  { %7982 = vmatprep.subr.bf16.mxu1 %v9053_v23  ;;  %v4922_v23 = vld [vmem:[#allocation14 + $0xeb8] sm:$0xff] }
 0x8bb   :  { %v9437_v25 = vcombine.high %v4906_v22, %v4922_v23  ;;  %v9436_v30 = vcombine.low %v4906_v22, %v4922_v23  ;;  %v4763_v22 = vld [vmem:[#allocation14 + $0x9c0] sm:$0xff] }
 0x8bd   :  { %7983 = vmatpush1.bf16.msra.mxu1 %v9052_v26  ;;  %v4938_v26 = vld [vmem:[#allocation14 + $0xf38] sm:$0xff] }
 0x8be   :  { %7984 = vmatprep.subr.bf16.mxu1 %v9085_v28  ;;  %v4954_v28 = vld [vmem:[#allocation14 + $0xfb8] sm:$0xff] }
 0x8bf   :  { %v9469_v32 = vcombine.high %v4938_v26, %v4954_v28  ;;  %v9468_v38 = vcombine.low %v4938_v26, %v4954_v28  ;;  %v4795_v26 = vld [vmem:[#allocation14 + $0xac0] sm:$0xff] }
 0x8c1   :  { %7985 = vmatpush1.bf16.msra.mxu1 %v9084_v33  ;;  %v4459_v33 = vld [vmem:[#allocation14 + $0x40] sm:$0xff] }
 0x8c2   :  { %7986 = vmatprep.subr.bf16.mxu1 %v9117_v36  ;;  %v4475_v36 = vld [vmem:[#allocation14 + $0xc0] sm:$0xff] }
 0x8c3   :  { %v8991_v39 = vcombine.high %v4459_v33, %v4475_v36  ;;  %v8990_v44 = vcombine.low %v4459_v33, %v4475_v36  ;;  %v4827_v33 = vld [vmem:[#allocation14 + $0xbc0] sm:$0xff] }
 0x8c5   :  { %7987 = vmatpush1.bf16.msra.mxu1 %v9116_v41  ;;  %v4491_v41 = vld [vmem:[#allocation14 + $0x140] sm:$0xff] }
 0x8c6   :  { %7988 = vmatprep.subr.bf16.mxu1 %v9149_v43  ;;  %v4507_v43 = vld [vmem:[#allocation14 + $0x1c0] sm:$0xff] }
 0x8c7   :  { %v7848_v50 = vpop.f32.mrb[20].mxu1  ;;  %v9023_v45 = vcombine.high %v4491_v41, %v4507_v43 }
 0x8c8   :  { %v7849_v18 = vadd.f32 %v7848_v50, %v4998_v46  ;;  %v7850_v34 = vpop.f32.mrb[21].mxu1  ;;  %v4523_v46 = vld [vmem:[#allocation14 + $0x240] sm:$0xff] }
 0x8c9   :  { %v7851_v19 = vadd.f32 %v7850_v34, %v5002_v47  ;;  %v7852_v52 = vpop.f32.mrb[22].mxu1  ;;  %7989 = vmatpush1.bf16.msra.mxu1 %v9148_v48  ;;  %v4539_v47 = vld [vmem:[#allocation14 + $0x2c0] sm:$0xff]  ;;  %v9022_v48 = vcombine.low %v4491_v41, %v4507_v43 }
 0x8ca   :  { %8353 = vst [vmem:[#allocation17 + $0x30] sm:$0xff] %v7849_v18  ;;  %v7853_v54 = vpop.f32.mrb[23].mxu1  ;;  %7990 = vmatprep.subr.bf16.mxu1 %v9181_v49  ;;  %v9055_v49 = vcombine.high %v4523_v46, %v4539_v47  ;;  %v4555_v50 = vld [vmem:[#allocation14 + $0x340] sm:$0xff]  ;;  %v9054_v17 = vcombine.low %v4523_v46, %v4539_v47 }
 0x8cb   :  { %8354 = vst [vmem:[#allocation17 + $0x38] sm:$0xff] %v7851_v19  ;;  %v9087_v18 = vcombine.high %v4555_v50, %v4571_v51  ;;  %v4587_v34 = vld [vmem:[#allocation14 + $0x440] sm:$0xff]  ;;  %v9086_v52 = vcombine.low %v4555_v50, %v4571_v51 }
 0x8cc   :  { %v4603_v19 = vld [vmem:[#allocation14 + $0x4c0] sm:$0xff] }
 0x8cd   :  { %7991 = vmatpush1.bf16.msra.mxu1 %v9180_v53  ;;  %v9119_v53 = vcombine.high %v4587_v34, %v4603_v19  ;;  %v4619_v54 = vld [vmem:[#allocation14 + $0x540] sm:$0xff]  ;;  %v9118_v60 = vcombine.low %v4587_v34, %v4603_v19 }
 0x8ce   :  { %7992 = vmatprep.subr.bf16.mxu1 %v9213_v58  ;;  %v4635_v58 = vld [vmem:[#allocation14 + $0x5c0] sm:$0xff] }
 0x8cf   :  { %v4859_v41 = vld [vmem:[#allocation14 + $0xcc0] sm:$0xff] }
 0x8d0   :  { %v4891_v46 = vld [vmem:[#allocation14 + $0xdc0] sm:$0xff] }
 0x8d1   :  { %7993 = vmatpush1.bf16.msra.mxu1 %v9212_v29  ;;  %v9151_v29 = vcombine.high %v4619_v54, %v4635_v58  ;;  %v4923_v50 = vld [vmem:[#allocation14 + $0xec0] sm:$0xff] }
 0x8d2   :  { %7994 = vmatprep.subr.bf16.mxu1 %v9245_v62  ;;  %v4651_v62 = vld [vmem:[#allocation14 + $0x640] sm:$0xff] }
 0x8d3   :  { %v9183_v3 = vcombine.high %v4651_v62, %v4667_v63  ;;  %v9182_v11 = vcombine.low %v4651_v62, %v4667_v63  ;;  %v4955_v34 = vld [vmem:[#allocation14 + $0xfc0] sm:$0xff]  ;;  %v4508_v62 = vld [vmem:[#allocation14 + $0x1c8] sm:$0xff] }
 0x8d5   :  { %7995 = vmatpush1.bf16.msra.mxu1 %v9244_v1  ;;  %v5010_v1 = vrot.slane %v10925_v61, %v10845_v37 }
 0x8d6   :  { %7996 = vmatprep.subr.bf16.mxu1 %v9277_v2  ;;  %v9150_v2 = vcombine.low %v4619_v54, %v4635_v58  ;;  %v4476_v54 = vld [vmem:[#allocation14 + $0xc8] sm:$0xff] }
 0x8d9   :  { %7997 = vmatpush1.bf16.msra.mxu1 %v9276_v5  ;;  %v4683_v5 = vld [vmem:[#allocation14 + $0x740] sm:$0xff] }
 0x8da   :  { %7998 = vmatprep.subr.bf16.mxu1 %v9309_v6  ;;  %v4699_v6 = vld [vmem:[#allocation14 + $0x7c0] sm:$0xff] }
 0x8db   :  { %v9214_v16 = vcombine.low %v4683_v5, %v4699_v6 }
 0x8dd   :  { %7999 = vmatpush1.bf16.msra.mxu1 %v9308_v9 }
 0x8de   :  { %8000 = vmatprep.subr.bf16.mxu1 %v9341_v10 }
 0x8e1   :  { %8001 = vmatpush1.bf16.msra.mxu1 %v9340_v13  ;;  %v9215_v13 = vcombine.high %v4683_v5, %v4699_v6  ;;  %v4556_v5 = vld [vmem:[#allocation14 + $0x348] sm:$0xff] }
 0x8e2   :  { %8002 = vmatprep.subr.bf16.mxu1 %v9373_v14  ;;  %v4715_v14 = vld [vmem:[#allocation14 + $0x840] sm:$0xff]  ;;  %v4572_v6 = vld [vmem:[#allocation14 + $0x3c8] sm:$0xff] }
 0x8e3   :  { %v9246_v23 = vcombine.low %v4715_v14, %v4731_v15 }
 0x8e5   :  { %8003 = vmatpush1.bf16.msra.mxu1 %v9372_v20  ;;  %v9247_v20 = vcombine.high %v4715_v14, %v4731_v15  ;;  %v4636_v14 = vld [vmem:[#allocation14 + $0x5c8] sm:$0xff] }
 0x8e6   :  { %8004 = vmatprep.subr.bf16.mxu1 %v9405_v21  ;;  %v4747_v21 = vld [vmem:[#allocation14 + $0x940] sm:$0xff] }
 0x8e7   :  { %v9278_v28 = vcombine.low %v4747_v21, %v4763_v22 }
 0x8e9   :  { %8005 = vmatpush1.bf16.msra.mxu1 %v9404_v24  ;;  %v9279_v24 = vcombine.high %v4747_v21, %v4763_v22  ;;  %v4668_v21 = vld [vmem:[#allocation14 + $0x6c8] sm:$0xff]  ;;  %v5014_v22 = vrot.slane %v10925_v61, %v10896_v55 }
 0x8ea   :  { %8006 = vmatprep.subr.bf16.mxu1 %v9437_v25  ;;  %v4779_v25 = vld [vmem:[#allocation14 + $0xa40] sm:$0xff] }
 0x8eb   :  { %v9310_v36 = vcombine.low %v4779_v25, %v4795_v26 }
 0x8ed   :  { %8007 = vmatpush1.bf16.msra.mxu1 %v9436_v30  ;;  %v9311_v30 = vcombine.high %v4779_v25, %v4795_v26 }
 0x8ee   :  { %8008 = vmatprep.subr.bf16.mxu1 %v9469_v32  ;;  %v4811_v32 = vld [vmem:[#allocation14 + $0xb40] sm:$0xff] }
 0x8ef   :  { %v9342_v43 = vcombine.low %v4811_v32, %v4827_v33 }
 0x8f1   :  { %8009 = vmatpush1.bf16.msra.mxu1 %v9468_v38  ;;  %v9343_v38 = vcombine.high %v4811_v32, %v4827_v33 }
 0x8f2   :  { %8019 = vmatprep.subr.bf16.mxu1 %v8991_v39  ;;  %v4843_v39 = vld [vmem:[#allocation14 + $0xc40] sm:$0xff] }
 0x8f3   :  { %v9374_v47 = vcombine.low %v4843_v39, %v4859_v41 }
 0x8f4   :  { %8011 = vmatmul.mubr.bf16.vlgmr.msra.gmra.mrb[36].mxu1 %v10866_v57 }
 0x8f5   :  { %8020 = vmatpush1.bf16.msra.mxu1 %v8990_v44  ;;  %8051 = vmatprep.mubr.bf16.mxu1 %v10864_v56  ;;  %v9375_v44 = vcombine.high %v4843_v39, %v4859_v41 }
 0x8f6   :  { %8021 = vmatprep.subr.bf16.mxu1 %v9023_v45  ;;  %v4875_v45 = vld [vmem:[#allocation14 + $0xd40] sm:$0xff] }
 0x8f7   :  { %v9406_v51 = vcombine.low %v4875_v45, %v4891_v46 }
 0x8f9   :  { %8022 = vmatpush1.bf16.msra.mxu1 %v9022_v48  ;;  %v9407_v48 = vcombine.high %v4875_v45, %v4891_v46  ;;  %v4732_v45 = vld [vmem:[#allocation14 + $0x8c8] sm:$0xff] }
 0x8fa   :  { %8023 = vmatprep.subr.bf16.mxu1 %v9055_v49  ;;  %v4907_v49 = vld [vmem:[#allocation14 + $0xe40] sm:$0xff] }
 0x8fb   :  { %v9438_v19 = vcombine.low %v4907_v49, %v4923_v50 }
 0x8fd   :  { %8024 = vmatpush1.bf16.msra.mxu1 %v9054_v17  ;;  %v9439_v17 = vcombine.high %v4907_v49, %v4923_v50  ;;  %v4764_v49 = vld [vmem:[#allocation14 + $0x9c8] sm:$0xff] }
 0x8fe   :  { %8025 = vmatprep.subr.bf16.mxu1 %v9087_v18  ;;  %v4939_v18 = vld [vmem:[#allocation14 + $0xf40] sm:$0xff] }
 0x8ff   :  { %v9470_v58 = vcombine.low %v4939_v18, %v4955_v34 }
 0x901   :  { %8026 = vmatpush1.bf16.msra.mxu1 %v9086_v52  ;;  %v9471_v52 = vcombine.high %v4939_v18, %v4955_v34  ;;  %v4796_v18 = vld [vmem:[#allocation14 + $0xac8] sm:$0xff] }
 0x902   :  { %8027 = vmatprep.subr.bf16.mxu1 %v9119_v53  ;;  %v4460_v53 = vld [vmem:[#allocation14 + $0x48] sm:$0xff] }
 0x903   :  { %v8992_v63 = vcombine.low %v4460_v53, %v4476_v54 }
 0x905   :  { %8028 = vmatpush1.bf16.msra.mxu1 %v9118_v60  ;;  %v8993_v60 = vcombine.high %v4460_v53, %v4476_v54  ;;  %v4828_v53 = vld [vmem:[#allocation14 + $0xbc8] sm:$0xff] }
 0x906   :  { %8029 = vmatprep.subr.bf16.mxu1 %v9151_v29  ;;  %v4492_v29 = vld [vmem:[#allocation14 + $0x148] sm:$0xff] }
 0x907   :  { %v7889_v4 = vpop.f32.mrb[24].mxu1 }
 0x908   :  { %v7890_v7 = vadd.f32 %v7889_v4, %v5006_v0  ;;  %v7891_v8 = vpop.f32.mrb[25].mxu1  ;;  %v9025_v0 = vcombine.high %v4492_v29, %v4508_v62 }
 0x909   :  { %v7892_v9 = vadd.f32 %v7891_v8, %v5010_v1  ;;  %v7893_v10 = vpop.f32.mrb[26].mxu1  ;;  %8030 = vmatpush1.bf16.msra.mxu1 %v9150_v2  ;;  %v4524_v1 = vld [vmem:[#allocation14 + $0x248] sm:$0xff]  ;;  %v9089_v8 = vcombine.high %v4556_v5, %v4572_v6 }
 0x90a   :  { %8355 = vst [vmem:[#allocation17 + $0x40] sm:$0xff] %v7890_v7  ;;  %v7894_v12 = vpop.f32.mrb[27].mxu1  ;;  %8031 = vmatprep.subr.bf16.mxu1 %v9183_v3  ;;  %v4540_v2 = vld [vmem:[#allocation14 + $0x2c8] sm:$0xff]  ;;  %v9024_v3 = vcombine.low %v4492_v29, %v4508_v62 }
 0x90b   :  { %8356 = vst [vmem:[#allocation17 + $0x48] sm:$0xff] %v7892_v9  ;;  %v9057_v4 = vcombine.high %v4524_v1, %v4540_v2  ;;  %v9056_v7 = vcombine.low %v4524_v1, %v4540_v2  ;;  %v4588_v9 = vld [vmem:[#allocation14 + $0x448] sm:$0xff] }
 0x90c   :  { %v4604_v10 = vld [vmem:[#allocation14 + $0x4c8] sm:$0xff] }
 0x90d   :  { %8032 = vmatpush1.bf16.msra.mxu1 %v9182_v11  ;;  %v9088_v11 = vcombine.low %v4556_v5, %v4572_v6  ;;  %v9121_v12 = vcombine.high %v4588_v9, %v4604_v10  ;;  %v9120_v15 = vcombine.low %v4588_v9, %v4604_v10  ;;  %v4860_v29 = vld [vmem:[#allocation14 + $0xcc8] sm:$0xff] }
 0x90e   :  { %8033 = vmatprep.subr.bf16.mxu1 %v9215_v13  ;;  %v4620_v13 = vld [vmem:[#allocation14 + $0x548] sm:$0xff] }
 0x90f   :  { %v4892_v1 = vld [vmem:[#allocation14 + $0xdc8] sm:$0xff] }
 0x910   :  { %v4924_v5 = vld [vmem:[#allocation14 + $0xec8] sm:$0xff] }
 0x911   :  { %8034 = vmatpush1.bf16.msra.mxu1 %v9214_v16  ;;  %v9153_v16 = vcombine.high %v4620_v13, %v4636_v14  ;;  %v4956_v9 = vld [vmem:[#allocation14 + $0xfc8] sm:$0xff] }
 0x912   :  { %8035 = vmatprep.subr.bf16.mxu1 %v9247_v20  ;;  %v4652_v20 = vld [vmem:[#allocation14 + $0x648] sm:$0xff] }
 0x913   :  { %v9185_v25 = vcombine.high %v4652_v20, %v4668_v21  ;;  %v9184_v39 = vcombine.low %v4652_v20, %v4668_v21  ;;  %v4509_v20 = vld [vmem:[#allocation14 + $0x1d0] sm:$0xff] }
 0x915   :  { %8036 = vmatpush1.bf16.msra.mxu1 %v9246_v23  ;;  %v5018_v23 = vrot.slane %v10925_v61, %v10899_v59 }
 0x916   :  { %8037 = vmatprep.subr.bf16.mxu1 %v9279_v24  ;;  %v9152_v24 = vcombine.low %v4620_v13, %v4636_v14  ;;  %v4477_v13 = vld [vmem:[#allocation14 + $0xd0] sm:$0xff] }
 0x919   :  { %8038 = vmatpush1.bf16.msra.mxu1 %v9278_v28  ;;  %v4684_v28 = vld [vmem:[#allocation14 + $0x748] sm:$0xff] }
 0x91a   :  { %8039 = vmatprep.subr.bf16.mxu1 %v9311_v30  ;;  %v4700_v30 = vld [vmem:[#allocation14 + $0x7c8] sm:$0xff] }
 0x91b   :  { %v9216_v46 = vcombine.low %v4684_v28, %v4700_v30 }
 0x91d   :  { %8040 = vmatpush1.bf16.msra.mxu1 %v9310_v36 }
 0x91e   :  { %8041 = vmatprep.subr.bf16.mxu1 %v9343_v38 }
 0x921   :  { %8042 = vmatpush1.bf16.msra.mxu1 %v9342_v43  ;;  %v9217_v43 = vcombine.high %v4684_v28, %v4700_v30  ;;  %v4557_v28 = vld [vmem:[#allocation14 + $0x350] sm:$0xff] }
 0x922   :  { %8043 = vmatprep.subr.bf16.mxu1 %v9375_v44  ;;  %v4716_v44 = vld [vmem:[#allocation14 + $0x848] sm:$0xff]  ;;  %v4573_v30 = vld [vmem:[#allocation14 + $0x3d0] sm:$0xff] }
 0x923   :  { %v9248_v50 = vcombine.low %v4716_v44, %v4732_v45 }
 0x925   :  { %8044 = vmatpush1.bf16.msra.mxu1 %v9374_v47  ;;  %v9249_v47 = vcombine.high %v4716_v44, %v4732_v45  ;;  %v4637_v44 = vld [vmem:[#allocation14 + $0x5d0] sm:$0xff] }
 0x926   :  { %8045 = vmatprep.subr.bf16.mxu1 %v9407_v48  ;;  %v4748_v48 = vld [vmem:[#allocation14 + $0x948] sm:$0xff] }
 0x927   :  { %v9280_v34 = vcombine.low %v4748_v48, %v4764_v49 }
 0x929   :  { %8046 = vmatpush1.bf16.msra.mxu1 %v9406_v51  ;;  %v9281_v51 = vcombine.high %v4748_v48, %v4764_v49  ;;  %v4669_v48 = vld [vmem:[#allocation14 + $0x6d0] sm:$0xff]  ;;  %v5022_v49 = vrot.slane %v10925_v61, %v10880_v27 }
 0x92a   :  { %8047 = vmatprep.subr.bf16.mxu1 %v9439_v17  ;;  %v4780_v17 = vld [vmem:[#allocation14 + $0xa48] sm:$0xff] }
 0x92b   :  { %v9312_v54 = vcombine.low %v4780_v17, %v4796_v18 }
 0x92d   :  { %8048 = vmatpush1.bf16.msra.mxu1 %v9438_v19  ;;  %v9313_v19 = vcombine.high %v4780_v17, %v4796_v18 }
 0x92e   :  { %8049 = vmatprep.subr.bf16.mxu1 %v9471_v52  ;;  %v4812_v52 = vld [vmem:[#allocation14 + $0xb48] sm:$0xff] }
 0x92f   :  { %v9344_v62 = vcombine.low %v4812_v52, %v4828_v53 }
 0x931   :  { %8050 = vmatpush1.bf16.msra.mxu1 %v9470_v58  ;;  %v9345_v58 = vcombine.high %v4812_v52, %v4828_v53 }
 0x932   :  { %8060 = vmatprep.subr.bf16.mxu1 %v8993_v60  ;;  %v4844_v60 = vld [vmem:[#allocation14 + $0xc48] sm:$0xff] }
 0x933   :  { %v9376_v2 = vcombine.low %v4844_v60, %v4860_v29 }
 0x934   :  { %8052 = vmatmul.mubr.bf16.vlgmr.msra.gmra.mrb[40].mxu1 %v10866_v57 }
 0x935   :  { %8061 = vmatpush1.bf16.msra.mxu1 %v8992_v63  ;;  %8092 = vmatprep.mubr.bf16.mxu1 %v10864_v56  ;;  %v9377_v63 = vcombine.high %v4844_v60, %v4860_v29 }
 0x936   :  { %8062 = vmatprep.subr.bf16.mxu1 %v9025_v0  ;;  %v4876_v0 = vld [vmem:[#allocation14 + $0xd48] sm:$0xff] }
 0x937   :  { %v9408_v6 = vcombine.low %v4876_v0, %v4892_v1 }
 0x939   :  { %8063 = vmatpush1.bf16.msra.mxu1 %v9024_v3  ;;  %v9409_v3 = vcombine.high %v4876_v0, %v4892_v1  ;;  %v4733_v0 = vld [vmem:[#allocation14 + $0x8d0] sm:$0xff] }
 0x93a   :  { %8064 = vmatprep.subr.bf16.mxu1 %v9057_v4  ;;  %v4908_v4 = vld [vmem:[#allocation14 + $0xe48] sm:$0xff] }
 0x93b   :  { %v9440_v10 = vcombine.low %v4908_v4, %v4924_v5 }
 0x93d   :  { %8065 = vmatpush1.bf16.msra.mxu1 %v9056_v7  ;;  %v9441_v7 = vcombine.high %v4908_v4, %v4924_v5  ;;  %v4765_v4 = vld [vmem:[#allocation14 + $0x9d0] sm:$0xff] }
 0x93e   :  { %8066 = vmatprep.subr.bf16.mxu1 %v9089_v8  ;;  %v4940_v8 = vld [vmem:[#allocation14 + $0xf48] sm:$0xff] }
 0x93f   :  { %v9472_v14 = vcombine.low %v4940_v8, %v4956_v9 }
 0x941   :  { %8067 = vmatpush1.bf16.msra.mxu1 %v9088_v11  ;;  %v9473_v11 = vcombine.high %v4940_v8, %v4956_v9  ;;  %v4797_v8 = vld [vmem:[#allocation14 + $0xad0] sm:$0xff] }
 0x942   :  { %8068 = vmatprep.subr.bf16.mxu1 %v9121_v12  ;;  %v4461_v12 = vld [vmem:[#allocation14 + $0x50] sm:$0xff] }
 0x943   :  { %v8994_v21 = vcombine.low %v4461_v12, %v4477_v13 }
 0x945   :  { %8069 = vmatpush1.bf16.msra.mxu1 %v9120_v15  ;;  %v8995_v15 = vcombine.high %v4461_v12, %v4477_v13  ;;  %v4829_v12 = vld [vmem:[#allocation14 + $0xbd0] sm:$0xff] }
 0x946   :  { %8070 = vmatprep.subr.bf16.mxu1 %v9153_v16  ;;  %v4493_v16 = vld [vmem:[#allocation14 + $0x150] sm:$0xff] }
 0x947   :  { %v7930_v26 = vpop.f32.mrb[28].mxu1 }
 0x948   :  { %v7931_v32 = vadd.f32 %v7930_v26, %v5014_v22  ;;  %v7932_v33 = vpop.f32.mrb[29].mxu1  ;;  %v9027_v22 = vcombine.high %v4493_v16, %v4509_v20 }
 0x949   :  { %v7933_v36 = vadd.f32 %v7932_v33, %v5018_v23  ;;  %v7934_v38 = vpop.f32.mrb[30].mxu1  ;;  %8071 = vmatpush1.bf16.msra.mxu1 %v9152_v24  ;;  %v4525_v23 = vld [vmem:[#allocation14 + $0x250] sm:$0xff]  ;;  %v9091_v33 = vcombine.high %v4557_v28, %v4573_v30 }
 0x94a   :  { %8357 = vst [vmem:[#allocation17 + $0x50] sm:$0xff] %v7931_v32  ;;  %v7935_v41 = vpop.f32.mrb[31].mxu1  ;;  %8072 = vmatprep.subr.bf16.mxu1 %v9185_v25  ;;  %v4541_v24 = vld [vmem:[#allocation14 + $0x2d0] sm:$0xff]  ;;  %v9026_v25 = vcombine.low %v4493_v16, %v4509_v20 }
 0x94b   :  { %8358 = vst [vmem:[#allocation17 + $0x58] sm:$0xff] %v7933_v36  ;;  %v9059_v26 = vcombine.high %v4525_v23, %v4541_v24  ;;  %v9058_v32 = vcombine.low %v4525_v23, %v4541_v24  ;;  %v4589_v36 = vld [vmem:[#allocation14 + $0x450] sm:$0xff] }
 0x94c   :  { %v4605_v38 = vld [vmem:[#allocation14 + $0x4d0] sm:$0xff] }
 0x94d   :  { %8073 = vmatpush1.bf16.msra.mxu1 %v9184_v39  ;;  %v9090_v39 = vcombine.low %v4557_v28, %v4573_v30  ;;  %v9123_v41 = vcombine.high %v4589_v36, %v4605_v38  ;;  %v9122_v45 = vcombine.low %v4589_v36, %v4605_v38  ;;  %v4861_v16 = vld [vmem:[#allocation14 + $0xcd0] sm:$0xff] }
 0x94e   :  { %8074 = vmatprep.subr.bf16.mxu1 %v9217_v43  ;;  %v4621_v43 = vld [vmem:[#allocation14 + $0x550] sm:$0xff] }
 0x94f   :  { %v4893_v23 = vld [vmem:[#allocation14 + $0xdd0] sm:$0xff] }
 0x950   :  { %v4925_v28 = vld [vmem:[#allocation14 + $0xed0] sm:$0xff] }
 0x951   :  { %8075 = vmatpush1.bf16.msra.mxu1 %v9216_v46  ;;  %v9155_v46 = vcombine.high %v4621_v43, %v4637_v44  ;;  %v4957_v36 = vld [vmem:[#allocation14 + $0xfd0] sm:$0xff] }
 0x952   :  { %8076 = vmatprep.subr.bf16.mxu1 %v9249_v47  ;;  %v4653_v47 = vld [vmem:[#allocation14 + $0x650] sm:$0xff] }
 0x953   :  { %v9187_v17 = vcombine.high %v4653_v47, %v4669_v48  ;;  %v9186_v60 = vcombine.low %v4653_v47, %v4669_v48  ;;  %v4510_v47 = vld [vmem:[#allocation14 + $0x1d8] sm:$0xff] }
 0x955   :  { %8077 = vmatpush1.bf16.msra.mxu1 %v9248_v50  ;;  %v5026_v50 = vrot.slane %v10925_v61, %v10885_v31 }
 0x956   :  { %8078 = vmatprep.subr.bf16.mxu1 %v9281_v51  ;;  %v9154_v51 = vcombine.low %v4621_v43, %v4637_v44  ;;  %v4478_v43 = vld [vmem:[#allocation14 + $0xd8] sm:$0xff] }
 0x959   :  { %8079 = vmatpush1.bf16.msra.mxu1 %v9280_v34  ;;  %v4685_v34 = vld [vmem:[#allocation14 + $0x750] sm:$0xff] }
 0x95a   :  { %8080 = vmatprep.subr.bf16.mxu1 %v9313_v19  ;;  %v4701_v19 = vld [vmem:[#allocation14 + $0x7d0] sm:$0xff] }
 0x95b   :  { %v9218_v1 = vcombine.low %v4685_v34, %v4701_v19 }
 0x95d   :  { %8081 = vmatpush1.bf16.msra.mxu1 %v9312_v54 }
 0x95e   :  { %8082 = vmatprep.subr.bf16.mxu1 %v9345_v58 }
 0x961   :  { %8083 = vmatpush1.bf16.msra.mxu1 %v9344_v62  ;;  %v9219_v62 = vcombine.high %v4685_v34, %v4701_v19  ;;  %v4558_v34 = vld [vmem:[#allocation14 + $0x358] sm:$0xff] }
 0x962   :  { %8084 = vmatprep.subr.bf16.mxu1 %v9377_v63  ;;  %v4717_v63 = vld [vmem:[#allocation14 + $0x850] sm:$0xff]  ;;  %v4574_v19 = vld [vmem:[#allocation14 + $0x3d8] sm:$0xff] }
 0x963   :  { %v9250_v5 = vcombine.low %v4717_v63, %v4733_v0 }
 0x965   :  { %8085 = vmatpush1.bf16.msra.mxu1 %v9376_v2  ;;  %v9251_v2 = vcombine.high %v4717_v63, %v4733_v0  ;;  %v4638_v63 = vld [vmem:[#allocation14 + $0x5d8] sm:$0xff] }
 0x966   :  { %8086 = vmatprep.subr.bf16.mxu1 %v9409_v3  ;;  %v4749_v3 = vld [vmem:[#allocation14 + $0x950] sm:$0xff] }
 0x967   :  { %v9282_v9 = vcombine.low %v4749_v3, %v4765_v4 }
 0x969   :  { %8087 = vmatpush1.bf16.msra.mxu1 %v9408_v6  ;;  %v9283_v6 = vcombine.high %v4749_v3, %v4765_v4  ;;  %v4670_v3 = vld [vmem:[#allocation14 + $0x6d8] sm:$0xff]  ;;  %v5030_v4 = vrot.slane %v10925_v61, %v10914_v40 }
 0x96a   :  { %8088 = vmatprep.subr.bf16.mxu1 %v9441_v7  ;;  %v4781_v7 = vld [vmem:[#allocation14 + $0xa50] sm:$0xff] }
 0x96b   :  { %v9314_v13 = vcombine.low %v4781_v7, %v4797_v8 }
 0x96d   :  { %8089 = vmatpush1.bf16.msra.mxu1 %v9440_v10  ;;  %v9315_v10 = vcombine.high %v4781_v7, %v4797_v8 }
 0x96e   :  { %8090 = vmatprep.subr.bf16.mxu1 %v9473_v11  ;;  %v4813_v11 = vld [vmem:[#allocation14 + $0xb50] sm:$0xff] }
 0x96f   :  { %v9346_v20 = vcombine.low %v4813_v11, %v4829_v12 }
 0x971   :  { %8091 = vmatpush1.bf16.msra.mxu1 %v9472_v14  ;;  %v9347_v14 = vcombine.high %v4813_v11, %v4829_v12 }
 0x972   :  { %8101 = vmatprep.subr.bf16.mxu1 %v8995_v15  ;;  %v4845_v15 = vld [vmem:[#allocation14 + $0xc50] sm:$0xff] }
 0x973   :  { %v9378_v24 = vcombine.low %v4845_v15, %v4861_v16 }
 0x974   :  { %8093 = vmatmul.mubr.bf16.vlgmr.msra.gmra.mrb[44].mxu1 %v10866_v57 }
 0x975   :  { %8102 = vmatpush1.bf16.msra.mxu1 %v8994_v21  ;;  %8133 = vmatprep.mubr.bf16.mxu1 %v10864_v56  ;;  %v9379_v21 = vcombine.high %v4845_v15, %v4861_v16 }
 0x976   :  { %8103 = vmatprep.subr.bf16.mxu1 %v9027_v22  ;;  %v4877_v22 = vld [vmem:[#allocation14 + $0xd50] sm:$0xff] }
 0x977   :  { %v9410_v30 = vcombine.low %v4877_v22, %v4893_v23 }
 0x979   :  { %8104 = vmatpush1.bf16.msra.mxu1 %v9026_v25  ;;  %v9411_v25 = vcombine.high %v4877_v22, %v4893_v23  ;;  %v4734_v22 = vld [vmem:[#allocation14 + $0x8d8] sm:$0xff] }
 0x97a   :  { %8105 = vmatprep.subr.bf16.mxu1 %v9059_v26  ;;  %v4909_v26 = vld [vmem:[#allocation14 + $0xe50] sm:$0xff] }
 0x97b   :  { %v9442_v38 = vcombine.low %v4909_v26, %v4925_v28 }
 0x97d   :  { %8106 = vmatpush1.bf16.msra.mxu1 %v9058_v32  ;;  %v9443_v32 = vcombine.high %v4909_v26, %v4925_v28 }
 0x97e   :  { %8107 = vmatprep.subr.bf16.mxu1 %v9091_v33  ;;  %v4941_v33 = vld [vmem:[#allocation14 + $0xf50] sm:$0xff] }
 0x97f   :  { %v9474_v44 = vcombine.low %v4941_v33, %v4957_v36 }
 0x981   :  { %8108 = vmatpush1.bf16.msra.mxu1 %v9090_v39  ;;  %v9475_v39 = vcombine.high %v4941_v33, %v4957_v36 }
 0x982   :  { %8109 = vmatprep.subr.bf16.mxu1 %v9123_v41  ;;  %v4462_v41 = vld [vmem:[#allocation14 + $0x58] sm:$0xff] }
 0x983   :  { %v8996_v48 = vcombine.low %v4462_v41, %v4478_v43 }
 0x985   :  { %8110 = vmatpush1.bf16.msra.mxu1 %v9122_v45  ;;  %v8997_v45 = vcombine.high %v4462_v41, %v4478_v43 }
 0x986   :  { %8111 = vmatprep.subr.bf16.mxu1 %v9155_v46  ;;  %v4494_v46 = vld [vmem:[#allocation14 + $0x158] sm:$0xff] }
 0x987   :  { %v7971_v18 = vpop.f32.mrb[32].mxu1 }
 0x988   :  { %v7972_v52 = vadd.f32 %v7971_v18, %v5022_v49  ;;  %v7973_v53 = vpop.f32.mrb[33].mxu1  ;;  %v9029_v49 = vcombine.high %v4494_v46, %v4510_v47 }
 0x989   :  { %v7974_v54 = vadd.f32 %v7973_v53, %v5026_v50  ;;  %v7975_v58 = vpop.f32.mrb[34].mxu1  ;;  %8112 = vmatpush1.bf16.msra.mxu1 %v9154_v51  ;;  %v4526_v50 = vld [vmem:[#allocation14 + $0x258] sm:$0xff]  ;;  %v9093_v53 = vcombine.high %v4558_v34, %v4574_v19 }
 0x98a   :  { %8359 = vst [vmem:[#allocation17 + $0x60] sm:$0xff] %v7972_v52  ;;  %v7976_v29 = vpop.f32.mrb[35].mxu1  ;;  %8113 = vmatprep.subr.bf16.mxu1 %v9187_v17  ;;  %v4542_v51 = vld [vmem:[#allocation14 + $0x2d8] sm:$0xff]  ;;  %v9028_v17 = vcombine.low %v4494_v46, %v4510_v47 }
 0x98b   :  { %8360 = vst [vmem:[#allocation17 + $0x68] sm:$0xff] %v7974_v54  ;;  %v9061_v18 = vcombine.high %v4526_v50, %v4542_v51  ;;  %v9060_v52 = vcombine.low %v4526_v50, %v4542_v51  ;;  %v4590_v54 = vld [vmem:[#allocation14 + $0x458] sm:$0xff] }
 0x98c   :  { %v4606_v58 = vld [vmem:[#allocation14 + $0x4d8] sm:$0xff] }
 0x98d   :  { %8114 = vmatpush1.bf16.msra.mxu1 %v9186_v60  ;;  %v9092_v60 = vcombine.low %v4558_v34, %v4574_v19  ;;  %v9125_v29 = vcombine.high %v4590_v54, %v4606_v58  ;;  %v9124_v0 = vcombine.low %v4590_v54, %v4606_v58 }
 0x98e   :  { %8115 = vmatprep.subr.bf16.mxu1 %v9219_v62  ;;  %v4622_v62 = vld [vmem:[#allocation14 + $0x558] sm:$0xff] }
 0x991   :  { %8116 = vmatpush1.bf16.msra.mxu1 %v9218_v1  ;;  %v9157_v1 = vcombine.high %v4622_v62, %v4638_v63 }
 0x992   :  { %8117 = vmatprep.subr.bf16.mxu1 %v9251_v2  ;;  %v4654_v2 = vld [vmem:[#allocation14 + $0x658] sm:$0xff] }
 0x993   :  { %v9189_v7 = vcombine.high %v4654_v2, %v4670_v3  ;;  %v9188_v15 = vcombine.low %v4654_v2, %v4670_v3 }
 0x995   :  { %8118 = vmatpush1.bf16.msra.mxu1 %v9250_v5  ;;  %v5034_v5 = vrot.slane %v10925_v61, %v10917_v42 }
 0x996   :  { %8119 = vmatprep.subr.bf16.mxu1 %v9283_v6  ;;  %v9156_v6 = vcombine.low %v4622_v62, %v4638_v63 }
 0x999   :  { %8120 = vmatpush1.bf16.msra.mxu1 %v9282_v9  ;;  %v4686_v9 = vld [vmem:[#allocation14 + $0x758] sm:$0xff] }
 0x99a   :  { %8121 = vmatprep.subr.bf16.mxu1 %v9315_v10  ;;  %v4702_v10 = vld [vmem:[#allocation14 + $0x7d8] sm:$0xff] }
 0x99b   :  { %v9220_v61 = vcombine.low %v4686_v9, %v4702_v10 }
 0x99d   :  { %8122 = vmatpush1.bf16.msra.mxu1 %v9314_v13 }
 0x99e   :  { %8123 = vmatprep.subr.bf16.mxu1 %v9347_v14 }
 0x9a1   :  { %8124 = vmatpush1.bf16.msra.mxu1 %v9346_v20  ;;  %v9221_v20 = vcombine.high %v4686_v9, %v4702_v10  ;;  %v4575_v9 = vld [vmem:[#allocation14 + $0x3e0] sm:$0xff] }
 0x9a2   :  { %8125 = vmatprep.subr.bf16.mxu1 %v9379_v21  ;;  %v4718_v21 = vld [vmem:[#allocation14 + $0x858] sm:$0xff] }
 0x9a3   :  { %v9253_v23 = vcombine.high %v4718_v21, %v4734_v22  ;;  %v9252_v26 = vcombine.low %v4718_v21, %v4734_v22  ;;  %v10951_v22 = vld [vmem:[#allocation16 + $0x10] sm:$0xff] }
 0x9a5   :  { %8126 = vmatpush1.bf16.msra.mxu1 %v9378_v24  ;;  %v4750_v24 = vld [vmem:[#allocation14 + $0x958] sm:$0xff] }
 0x9a6   :  { %8127 = vmatprep.subr.bf16.mxu1 %v9411_v25  ;;  %v4766_v25 = vld [vmem:[#allocation14 + $0x9d8] sm:$0xff] }
 0x9a7   :  { %v9285_v28 = vcombine.high %v4750_v24, %v4766_v25  ;;  %v9284_v33 = vcombine.low %v4750_v24, %v4766_v25  ;;  %v4671_v24 = vld [vmem:[#allocation14 + $0x6e0] sm:$0xff]  ;;  %v5038_v25 = vrot.slane %v10951_v22, %v10842_v35 }
 0x9a9   :  { %8128 = vmatpush1.bf16.msra.mxu1 %v9410_v30  ;;  %v4782_v30 = vld [vmem:[#allocation14 + $0xa58] sm:$0xff] }
 0x9aa   :  { %8129 = vmatprep.subr.bf16.mxu1 %v9443_v32  ;;  %v4798_v32 = vld [vmem:[#allocation14 + $0xad8] sm:$0xff] }
 0x9ab   :  { %v9317_v36 = vcombine.high %v4782_v30, %v4798_v32  ;;  %v9316_v41 = vcombine.low %v4782_v30, %v4798_v32 }
 0x9ad   :  { %8130 = vmatpush1.bf16.msra.mxu1 %v9442_v38  ;;  %v4814_v38 = vld [vmem:[#allocation14 + $0xb58] sm:$0xff] }
 0x9ae   :  { %8131 = vmatprep.subr.bf16.mxu1 %v9475_v39  ;;  %v4830_v39 = vld [vmem:[#allocation14 + $0xbd8] sm:$0xff] }
 0x9af   :  { %v9349_v43 = vcombine.high %v4814_v38, %v4830_v39  ;;  %v9348_v46 = vcombine.low %v4814_v38, %v4830_v39 }
 0x9b1   :  { %8132 = vmatpush1.bf16.msra.mxu1 %v9474_v44  ;;  %v4846_v44 = vld [vmem:[#allocation14 + $0xc58] sm:$0xff] }
 0x9b2   :  { %8142 = vmatprep.subr.bf16.mxu1 %v8997_v45  ;;  %v4862_v45 = vld [vmem:[#allocation14 + $0xcd8] sm:$0xff] }
 0x9b3   :  { %v9381_v47 = vcombine.high %v4846_v44, %v4862_v45  ;;  %v9380_v50 = vcombine.low %v4846_v44, %v4862_v45 }
 0x9b4   :  { %8134 = vmatmul.mubr.bf16.vlgmr.msra.gmra.mrb[48].mxu1 %v10866_v57 }
 0x9b5   :  { %8143 = vmatpush1.bf16.msra.mxu1 %v8996_v48  ;;  %8174 = vmatprep.mubr.bf16.mxu1 %v10864_v56  ;;  %v4878_v48 = vld [vmem:[#allocation14 + $0xd58] sm:$0xff] }
 0x9b6   :  { %8144 = vmatprep.subr.bf16.mxu1 %v9029_v49  ;;  %v4894_v49 = vld [vmem:[#allocation14 + $0xdd8] sm:$0xff] }
 0x9b7   :  { %v9413_v51 = vcombine.high %v4878_v48, %v4894_v49  ;;  %v9412_v34 = vcombine.low %v4878_v48, %v4894_v49  ;;  %v4735_v48 = vld [vmem:[#allocation14 + $0x8e0] sm:$0xff] }
 0x9b9   :  { %8145 = vmatpush1.bf16.msra.mxu1 %v9028_v17  ;;  %v4910_v17 = vld [vmem:[#allocation14 + $0xe58] sm:$0xff] }
 0x9ba   :  { %8146 = vmatprep.subr.bf16.mxu1 %v9061_v18  ;;  %v4926_v18 = vld [vmem:[#allocation14 + $0xed8] sm:$0xff] }
 0x9bb   :  { %v9445_v19 = vcombine.high %v4910_v17, %v4926_v18  ;;  %v9444_v54 = vcombine.low %v4910_v17, %v4926_v18  ;;  %v4767_v17 = vld [vmem:[#allocation14 + $0x9e0] sm:$0xff] }
 0x9bd   :  { %8147 = vmatpush1.bf16.msra.mxu1 %v9060_v52  ;;  %v4942_v52 = vld [vmem:[#allocation14 + $0xf58] sm:$0xff] }
 0x9be   :  { %8148 = vmatprep.subr.bf16.mxu1 %v9093_v53  ;;  %v4958_v53 = vld [vmem:[#allocation14 + $0xfd8] sm:$0xff] }
 0x9bf   :  { %v9477_v58 = vcombine.high %v4942_v52, %v4958_v53  ;;  %v9476_v62 = vcombine.low %v4942_v52, %v4958_v53  ;;  %v4799_v52 = vld [vmem:[#allocation14 + $0xae0] sm:$0xff] }
 0x9c1   :  { %8149 = vmatpush1.bf16.msra.mxu1 %v9092_v60  ;;  %v4463_v60 = vld [vmem:[#allocation14 + $0x60] sm:$0xff] }
 0x9c2   :  { %8150 = vmatprep.subr.bf16.mxu1 %v9125_v29  ;;  %v4479_v29 = vld [vmem:[#allocation14 + $0xe0] sm:$0xff] }
 0x9c3   :  { %v8999_v63 = vcombine.high %v4463_v60, %v4479_v29  ;;  %v8998_v2 = vcombine.low %v4463_v60, %v4479_v29  ;;  %v4831_v60 = vld [vmem:[#allocation14 + $0xbe0] sm:$0xff] }
 0x9c5   :  { %8151 = vmatpush1.bf16.msra.mxu1 %v9124_v0  ;;  %v4495_v0 = vld [vmem:[#allocation14 + $0x160] sm:$0xff] }
 0x9c6   :  { %8152 = vmatprep.subr.bf16.mxu1 %v9157_v1  ;;  %v4511_v1 = vld [vmem:[#allocation14 + $0x1e0] sm:$0xff] }
 0x9c7   :  { %v8012_v8 = vpop.f32.mrb[36].mxu1  ;;  %v9031_v3 = vcombine.high %v4495_v0, %v4511_v1 }
 0x9c8   :  { %v8013_v11 = vadd.f32 %v8012_v8, %v5030_v4  ;;  %v8014_v12 = vpop.f32.mrb[37].mxu1  ;;  %v4527_v4 = vld [vmem:[#allocation14 + $0x260] sm:$0xff] }
 0x9c9   :  { %v8015_v13 = vadd.f32 %v8014_v12, %v5034_v5  ;;  %v8016_v14 = vpop.f32.mrb[38].mxu1  ;;  %8153 = vmatpush1.bf16.msra.mxu1 %v9156_v6  ;;  %v4543_v5 = vld [vmem:[#allocation14 + $0x2e0] sm:$0xff]  ;;  %v9030_v6 = vcombine.low %v4495_v0, %v4511_v1 }
 0x9ca   :  { %8361 = vst [vmem:[#allocation17 + $0x70] sm:$0xff] %v8013_v11  ;;  %v8017_v16 = vpop.f32.mrb[39].mxu1  ;;  %8154 = vmatprep.subr.bf16.mxu1 %v9189_v7  ;;  %v9063_v7 = vcombine.high %v4527_v4, %v4543_v5  ;;  %v4559_v8 = vld [vmem:[#allocation14 + $0x360] sm:$0xff]  ;;  %v9062_v10 = vcombine.low %v4527_v4, %v4543_v5 }
 0x9cb   :  { %8362 = vst [vmem:[#allocation17 + $0x78] sm:$0xff] %v8015_v13  ;;  %v9095_v11 = vcombine.high %v4559_v8, %v4575_v9  ;;  %v4591_v12 = vld [vmem:[#allocation14 + $0x460] sm:$0xff]  ;;  %v9094_v14 = vcombine.low %v4559_v8, %v4575_v9 }
 0x9cc   :  { %v4607_v13 = vld [vmem:[#allocation14 + $0x4e0] sm:$0xff] }
 0x9cd   :  { %8155 = vmatpush1.bf16.msra.mxu1 %v9188_v15  ;;  %v9127_v15 = vcombine.high %v4591_v12, %v4607_v13  ;;  %v4623_v16 = vld [vmem:[#allocation14 + $0x560] sm:$0xff]  ;;  %v9126_v21 = vcombine.low %v4591_v12, %v4607_v13 }
 0x9ce   :  { %8156 = vmatprep.subr.bf16.mxu1 %v9221_v20  ;;  %v4639_v20 = vld [vmem:[#allocation14 + $0x5e0] sm:$0xff] }
 0x9cf   :  { %v4863_v0 = vld [vmem:[#allocation14 + $0xce0] sm:$0xff] }
 0x9d0   :  { %v4895_v4 = vld [vmem:[#allocation14 + $0xde0] sm:$0xff] }
 0x9d1   :  { %8157 = vmatpush1.bf16.msra.mxu1 %v9220_v61  ;;  %v9159_v61 = vcombine.high %v4623_v16, %v4639_v20  ;;  %v4927_v8 = vld [vmem:[#allocation14 + $0xee0] sm:$0xff] }
 0x9d2   :  { %8158 = vmatprep.subr.bf16.mxu1 %v9253_v23  ;;  %v4655_v23 = vld [vmem:[#allocation14 + $0x660] sm:$0xff] }
 0x9d3   :  { %v9191_v30 = vcombine.high %v4655_v23, %v4671_v24  ;;  %v9190_v44 = vcombine.low %v4655_v23, %v4671_v24  ;;  %v4959_v12 = vld [vmem:[#allocation14 + $0xfe0] sm:$0xff]  ;;  %v4512_v23 = vld [vmem:[#allocation14 + $0x1e8] sm:$0xff] }
 0x9d5   :  { %8159 = vmatpush1.bf16.msra.mxu1 %v9252_v26  ;;  %v5042_v26 = vrot.slane %v10951_v22, %v10845_v37 }
 0x9d6   :  { %8160 = vmatprep.subr.bf16.mxu1 %v9285_v28  ;;  %v9158_v28 = vcombine.low %v4623_v16, %v4639_v20  ;;  %v4480_v16 = vld [vmem:[#allocation14 + $0xe8] sm:$0xff] }
 0x9d9   :  { %8161 = vmatpush1.bf16.msra.mxu1 %v9284_v33  ;;  %v4687_v33 = vld [vmem:[#allocation14 + $0x760] sm:$0xff] }
 0x9da   :  { %8162 = vmatprep.subr.bf16.mxu1 %v9317_v36  ;;  %v4703_v36 = vld [vmem:[#allocation14 + $0x7e0] sm:$0xff] }
 0x9db   :  { %v9222_v49 = vcombine.low %v4687_v33, %v4703_v36 }
 0x9dd   :  { %8163 = vmatpush1.bf16.msra.mxu1 %v9316_v41 }
 0x9de   :  { %8164 = vmatprep.subr.bf16.mxu1 %v9349_v43 }
 0x9e1   :  { %8165 = vmatpush1.bf16.msra.mxu1 %v9348_v46  ;;  %v9223_v46 = vcombine.high %v4687_v33, %v4703_v36  ;;  %v4560_v33 = vld [vmem:[#allocation14 + $0x368] sm:$0xff] }
 0x9e2   :  { %8166 = vmatprep.subr.bf16.mxu1 %v9381_v47  ;;  %v4719_v47 = vld [vmem:[#allocation14 + $0x860] sm:$0xff]  ;;  %v4576_v36 = vld [vmem:[#allocation14 + $0x3e8] sm:$0xff] }
 0x9e3   :  { %v9254_v18 = vcombine.low %v4719_v47, %v4735_v48 }
 0x9e5   :  { %8167 = vmatpush1.bf16.msra.mxu1 %v9380_v50  ;;  %v9255_v50 = vcombine.high %v4719_v47, %v4735_v48  ;;  %v4640_v47 = vld [vmem:[#allocation14 + $0x5e8] sm:$0xff] }
 0x9e6   :  { %8168 = vmatprep.subr.bf16.mxu1 %v9413_v51  ;;  %v4751_v51 = vld [vmem:[#allocation14 + $0x960] sm:$0xff] }
 0x9e7   :  { %v9286_v53 = vcombine.low %v4751_v51, %v4767_v17 }
 0x9e9   :  { %8169 = vmatpush1.bf16.msra.mxu1 %v9412_v34  ;;  %v9287_v34 = vcombine.high %v4751_v51, %v4767_v17  ;;  %v4672_v51 = vld [vmem:[#allocation14 + $0x6e8] sm:$0xff]  ;;  %v5046_v17 = vrot.slane %v10951_v22, %v10896_v55 }
 0x9ea   :  { %8170 = vmatprep.subr.bf16.mxu1 %v9445_v19  ;;  %v4783_v19 = vld [vmem:[#allocation14 + $0xa60] sm:$0xff] }
 0x9eb   :  { %v9318_v29 = vcombine.low %v4783_v19, %v4799_v52 }
 0x9ed   :  { %8171 = vmatpush1.bf16.msra.mxu1 %v9444_v54  ;;  %v9319_v54 = vcombine.high %v4783_v19, %v4799_v52 }
 0x9ee   :  { %8172 = vmatprep.subr.bf16.mxu1 %v9477_v58  ;;  %v4815_v58 = vld [vmem:[#allocation14 + $0xb60] sm:$0xff] }
 0x9ef   :  { %v9350_v1 = vcombine.low %v4815_v58, %v4831_v60 }
 0x9f1   :  { %8173 = vmatpush1.bf16.msra.mxu1 %v9476_v62  ;;  %v9351_v62 = vcombine.high %v4815_v58, %v4831_v60 }
 0x9f2   :  { %8183 = vmatprep.subr.bf16.mxu1 %v8999_v63  ;;  %v4847_v63 = vld [vmem:[#allocation14 + $0xc60] sm:$0xff] }
 0x9f3   :  { %v9382_v5 = vcombine.low %v4847_v63, %v4863_v0 }
 0x9f4   :  { %8175 = vmatmul.mubr.bf16.vlgmr.msra.gmra.mrb[52].mxu1 %v10866_v57 }
 0x9f5   :  { %8184 = vmatpush1.bf16.msra.mxu1 %v8998_v2  ;;  %8215 = vmatprep.mubr.bf16.mxu1 %v10864_v56  ;;  %v9383_v2 = vcombine.high %v4847_v63, %v4863_v0 }
 0x9f6   :  { %8185 = vmatprep.subr.bf16.mxu1 %v9031_v3  ;;  %v4879_v3 = vld [vmem:[#allocation14 + $0xd60] sm:$0xff] }
 0x9f7   :  { %v9414_v9 = vcombine.low %v4879_v3, %v4895_v4 }
 0x9f9   :  { %8186 = vmatpush1.bf16.msra.mxu1 %v9030_v6  ;;  %v9415_v6 = vcombine.high %v4879_v3, %v4895_v4  ;;  %v4736_v3 = vld [vmem:[#allocation14 + $0x8e8] sm:$0xff] }
 0x9fa   :  { %8187 = vmatprep.subr.bf16.mxu1 %v9063_v7  ;;  %v4911_v7 = vld [vmem:[#allocation14 + $0xe60] sm:$0xff] }
 0x9fb   :  { %v9446_v13 = vcombine.low %v4911_v7, %v4927_v8 }
 0x9fd   :  { %8188 = vmatpush1.bf16.msra.mxu1 %v9062_v10  ;;  %v9447_v10 = vcombine.high %v4911_v7, %v4927_v8  ;;  %v4768_v7 = vld [vmem:[#allocation14 + $0x9e8] sm:$0xff] }
 0x9fe   :  { %8189 = vmatprep.subr.bf16.mxu1 %v9095_v11  ;;  %v4943_v11 = vld [vmem:[#allocation14 + $0xf60] sm:$0xff] }
 0x9ff   :  { %v9478_v20 = vcombine.low %v4943_v11, %v4959_v12 }
 0xa01   :  { %8190 = vmatpush1.bf16.msra.mxu1 %v9094_v14  ;;  %v9479_v14 = vcombine.high %v4943_v11, %v4959_v12  ;;  %v4800_v11 = vld [vmem:[#allocation14 + $0xae8] sm:$0xff] }
 0xa02   :  { %8191 = vmatprep.subr.bf16.mxu1 %v9127_v15  ;;  %v4464_v15 = vld [vmem:[#allocation14 + $0x68] sm:$0xff] }
 0xa03   :  { %v9000_v24 = vcombine.low %v4464_v15, %v4480_v16 }
 0xa05   :  { %8192 = vmatpush1.bf16.msra.mxu1 %v9126_v21  ;;  %v9001_v21 = vcombine.high %v4464_v15, %v4480_v16  ;;  %v4832_v15 = vld [vmem:[#allocation14 + $0xbe8] sm:$0xff] }
 0xa06   :  { %8193 = vmatprep.subr.bf16.mxu1 %v9159_v61  ;;  %v4496_v61 = vld [vmem:[#allocation14 + $0x168] sm:$0xff] }
 0xa07   :  { %v8053_v32 = vpop.f32.mrb[40].mxu1 }
 0xa08   :  { %v8054_v38 = vadd.f32 %v8053_v32, %v5038_v25  ;;  %v8055_v39 = vpop.f32.mrb[41].mxu1  ;;  %v9033_v25 = vcombine.high %v4496_v61, %v4512_v23 }
 0xa09   :  { %v8056_v41 = vadd.f32 %v8055_v39, %v5042_v26  ;;  %v8057_v43 = vpop.f32.mrb[42].mxu1  ;;  %8194 = vmatpush1.bf16.msra.mxu1 %v9158_v28  ;;  %v4528_v26 = vld [vmem:[#allocation14 + $0x268] sm:$0xff]  ;;  %v9097_v39 = vcombine.high %v4560_v33, %v4576_v36 }
 0xa0a   :  { %8363 = vst [vmem:[#allocation17 + $0x80] sm:$0xff] %v8054_v38  ;;  %v8058_v45 = vpop.f32.mrb[43].mxu1  ;;  %8195 = vmatprep.subr.bf16.mxu1 %v9191_v30  ;;  %v4544_v28 = vld [vmem:[#allocation14 + $0x2e8] sm:$0xff]  ;;  %v9032_v30 = vcombine.low %v4496_v61, %v4512_v23 }
 0xa0b   :  { %8364 = vst [vmem:[#allocation17 + $0x88] sm:$0xff] %v8056_v41  ;;  %v9065_v32 = vcombine.high %v4528_v26, %v4544_v28  ;;  %v9064_v38 = vcombine.low %v4528_v26, %v4544_v28  ;;  %v4592_v41 = vld [vmem:[#allocation14 + $0x468] sm:$0xff] }
 0xa0c   :  { %v4608_v43 = vld [vmem:[#allocation14 + $0x4e8] sm:$0xff] }
 0xa0d   :  { %8196 = vmatpush1.bf16.msra.mxu1 %v9190_v44  ;;  %v9096_v44 = vcombine.low %v4560_v33, %v4576_v36  ;;  %v9129_v45 = vcombine.high %v4592_v41, %v4608_v43  ;;  %v9128_v48 = vcombine.low %v4592_v41, %v4608_v43  ;;  %v4864_v61 = vld [vmem:[#allocation14 + $0xce8] sm:$0xff] }
 0xa0e   :  { %8197 = vmatprep.subr.bf16.mxu1 %v9223_v46  ;;  %v4624_v46 = vld [vmem:[#allocation14 + $0x568] sm:$0xff] }
 0xa0f   :  { %v4896_v26 = vld [vmem:[#allocation14 + $0xde8] sm:$0xff] }
 0xa10   :  { %v4928_v33 = vld [vmem:[#allocation14 + $0xee8] sm:$0xff] }
 0xa11   :  { %8198 = vmatpush1.bf16.msra.mxu1 %v9222_v49  ;;  %v9161_v49 = vcombine.high %v4624_v46, %v4640_v47  ;;  %v4960_v41 = vld [vmem:[#allocation14 + $0xfe8] sm:$0xff] }
 0xa12   :  { %8199 = vmatprep.subr.bf16.mxu1 %v9255_v50  ;;  %v4656_v50 = vld [vmem:[#allocation14 + $0x668] sm:$0xff] }
 0xa13   :  { %v9193_v19 = vcombine.high %v4656_v50, %v4672_v51  ;;  %v9192_v63 = vcombine.low %v4656_v50, %v4672_v51  ;;  %v4514_v50 = vld [vmem:[#allocation14 + $0x1f8] sm:$0xff] }
 0xa15   :  { %8200 = vmatpush1.bf16.msra.mxu1 %v9254_v18  ;;  %v5050_v18 = vrot.slane %v10951_v22, %v10899_v59 }
 0xa16   :  { %8201 = vmatprep.subr.bf16.mxu1 %v9287_v34  ;;  %v9160_v34 = vcombine.low %v4624_v46, %v4640_v47  ;;  %v4482_v46 = vld [vmem:[#allocation14 + $0xf8] sm:$0xff] }
 0xa19   :  { %8202 = vmatpush1.bf16.msra.mxu1 %v9286_v53  ;;  %v4688_v53 = vld [vmem:[#allocation14 + $0x768] sm:$0xff] }
 0xa1a   :  { %8203 = vmatprep.subr.bf16.mxu1 %v9319_v54  ;;  %v4704_v54 = vld [vmem:[#allocation14 + $0x7e8] sm:$0xff] }
 0xa1b   :  { %v9224_v4 = vcombine.low %v4688_v53, %v4704_v54 }
 0xa1d   :  { %8204 = vmatpush1.bf16.msra.mxu1 %v9318_v29 }
 0xa1e   :  { %8205 = vmatprep.subr.bf16.mxu1 %v9351_v62 }
 0xa21   :  { %8206 = vmatpush1.bf16.msra.mxu1 %v9350_v1  ;;  %v9225_v1 = vcombine.high %v4688_v53, %v4704_v54  ;;  %v4562_v53 = vld [vmem:[#allocation14 + $0x378] sm:$0xff] }
 0xa22   :  { %8207 = vmatprep.subr.bf16.mxu1 %v9383_v2  ;;  %v4720_v2 = vld [vmem:[#allocation14 + $0x868] sm:$0xff]  ;;  %v4578_v54 = vld [vmem:[#allocation14 + $0x3f8] sm:$0xff] }
 0xa23   :  { %v9256_v8 = vcombine.low %v4720_v2, %v4736_v3 }
 0xa25   :  { %8208 = vmatpush1.bf16.msra.mxu1 %v9382_v5  ;;  %v9257_v5 = vcombine.high %v4720_v2, %v4736_v3  ;;  %v4642_v2 = vld [vmem:[#allocation14 + $0x5f8] sm:$0xff] }
 0xa26   :  { %8209 = vmatprep.subr.bf16.mxu1 %v9415_v6  ;;  %v4752_v6 = vld [vmem:[#allocation14 + $0x968] sm:$0xff] }
 0xa27   :  { %v9288_v12 = vcombine.low %v4752_v6, %v4768_v7 }
 0xa29   :  { %8210 = vmatpush1.bf16.msra.mxu1 %v9414_v9  ;;  %v9289_v9 = vcombine.high %v4752_v6, %v4768_v7  ;;  %v5054_v6 = vrot.slane %v10951_v22, %v10880_v27  ;;  %v5058_v7 = vrot.slane %v10951_v22, %v10885_v31 }
 0xa2a   :  { %8211 = vmatprep.subr.bf16.mxu1 %v9447_v10  ;;  %v4784_v10 = vld [vmem:[#allocation14 + $0xa68] sm:$0xff] }
 0xa2b   :  { %v9320_v16 = vcombine.low %v4784_v10, %v4800_v11 }
 0xa2d   :  { %8212 = vmatpush1.bf16.msra.mxu1 %v9446_v13  ;;  %v9321_v13 = vcombine.high %v4784_v10, %v4800_v11  ;;  %v4690_v11 = vld [vmem:[#allocation14 + $0x778] sm:$0xff] }
 0xa2e   :  { %8213 = vmatprep.subr.bf16.mxu1 %v9479_v14  ;;  %v4816_v14 = vld [vmem:[#allocation14 + $0xb68] sm:$0xff] }
 0xa2f   :  { %v9352_v23 = vcombine.low %v4816_v14, %v4832_v15 }
 0xa31   :  { %8214 = vmatpush1.bf16.msra.mxu1 %v9478_v20  ;;  %v9353_v20 = vcombine.high %v4816_v14, %v4832_v15 }
 0xa32   :  { %8224 = vmatprep.subr.bf16.mxu1 %v9001_v21  ;;  %v4848_v21 = vld [vmem:[#allocation14 + $0xc68] sm:$0xff] }
 0xa33   :  { %v9384_v28 = vcombine.low %v4848_v21, %v4864_v61 }
 0xa34   :  { %8216 = vmatmul.mubr.bf16.vlgmr.msra.gmra.mrb[56].mxu1 %v10866_v57 }
 0xa35   :  { %8225 = vmatpush1.bf16.msra.mxu1 %v9000_v24  ;;  %8256 = vmatprep.mubr.bf16.mxu1 %v10864_v56  ;;  %v9385_v24 = vcombine.high %v4848_v21, %v4864_v61  ;;  %v4722_v61 = vld [vmem:[#allocation14 + $0x878] sm:$0xff] }
 0xa36   :  { %8226 = vmatprep.subr.bf16.mxu1 %v9033_v25  ;;  %v4880_v25 = vld [vmem:[#allocation14 + $0xd68] sm:$0xff] }
 0xa37   :  { %v9416_v36 = vcombine.low %v4880_v25, %v4896_v26 }
 0xa39   :  { %8227 = vmatpush1.bf16.msra.mxu1 %v9032_v30  ;;  %v9417_v30 = vcombine.high %v4880_v25, %v4896_v26  ;;  %v4754_v25 = vld [vmem:[#allocation14 + $0x978] sm:$0xff] }
 0xa3a   :  { %8228 = vmatprep.subr.bf16.mxu1 %v9065_v32  ;;  %v4912_v32 = vld [vmem:[#allocation14 + $0xe68] sm:$0xff]  ;;  %v4770_v26 = vld [vmem:[#allocation14 + $0x9f8] sm:$0xff] }
 0xa3b   :  { %v9448_v43 = vcombine.low %v4912_v32, %v4928_v33 }
 0xa3d   :  { %8229 = vmatpush1.bf16.msra.mxu1 %v9064_v38  ;;  %v9449_v38 = vcombine.high %v4912_v32, %v4928_v33  ;;  %v4786_v32 = vld [vmem:[#allocation14 + $0xa78] sm:$0xff] }
 0xa3e   :  { %8230 = vmatprep.subr.bf16.mxu1 %v9097_v39  ;;  %v4944_v39 = vld [vmem:[#allocation14 + $0xf68] sm:$0xff]  ;;  %v4802_v33 = vld [vmem:[#allocation14 + $0xaf8] sm:$0xff] }
 0xa3f   :  { %v9480_v47 = vcombine.low %v4944_v39, %v4960_v41 }
 0xa41   :  { %8231 = vmatpush1.bf16.msra.mxu1 %v9096_v44  ;;  %v9481_v44 = vcombine.high %v4944_v39, %v4960_v41  ;;  %v4818_v39 = vld [vmem:[#allocation14 + $0xb78] sm:$0xff] }
 0xa42   :  { %8232 = vmatprep.subr.bf16.mxu1 %v9129_v45  ;;  %v4466_v45 = vld [vmem:[#allocation14 + $0x78] sm:$0xff] }
 0xa43   :  { %v9004_v51 = vcombine.low %v4466_v45, %v4482_v46  ;;  %v4834_v41 = vld [vmem:[#allocation14 + $0xbf8] sm:$0xff] }
 0xa45   :  { %8233 = vmatpush1.bf16.msra.mxu1 %v9128_v48  ;;  %v9005_v48 = vcombine.high %v4466_v45, %v4482_v46  ;;  %v4850_v45 = vld [vmem:[#allocation14 + $0xc78] sm:$0xff] }
 0xa46   :  { %8234 = vmatprep.subr.bf16.mxu1 %v9161_v49  ;;  %v4498_v49 = vld [vmem:[#allocation14 + $0x178] sm:$0xff] }
 0xa47   :  { %v8094_v52 = vpop.f32.mrb[44].mxu1  ;;  %v4866_v46 = vld [vmem:[#allocation14 + $0xcf8] sm:$0xff] }
 0xa48   :  { %v8095_v58 = vadd.f32 %v8094_v52, %v5046_v17  ;;  %v8096_v60 = vpop.f32.mrb[45].mxu1  ;;  %v9037_v17 = vcombine.high %v4498_v49, %v4514_v50 }
 0xa49   :  { %v8097_v29 = vadd.f32 %v8096_v60, %v5050_v18  ;;  %v8098_v62 = vpop.f32.mrb[46].mxu1  ;;  %8235 = vmatpush1.bf16.msra.mxu1 %v9160_v34  ;;  %v4530_v18 = vld [vmem:[#allocation14 + $0x278] sm:$0xff]  ;;  %v9101_v60 = vcombine.high %v4562_v53, %v4578_v54 }
 0xa4a   :  { %8365 = vst [vmem:[#allocation17 + $0x90] sm:$0xff] %v8095_v58  ;;  %v8099_v0 = vpop.f32.mrb[47].mxu1  ;;  %8236 = vmatprep.subr.bf16.mxu1 %v9193_v19  ;;  %v4546_v34 = vld [vmem:[#allocation14 + $0x2f8] sm:$0xff]  ;;  %v9036_v19 = vcombine.low %v4498_v49, %v4514_v50 }
 0xa4b   :  { %8366 = vst [vmem:[#allocation17 + $0x98] sm:$0xff] %v8097_v29  ;;  %v9069_v52 = vcombine.high %v4530_v18, %v4546_v34  ;;  %v9068_v58 = vcombine.low %v4530_v18, %v4546_v34  ;;  %v4594_v29 = vld [vmem:[#allocation14 + $0x478] sm:$0xff] }
 0xa4c   :  { %v4610_v62 = vld [vmem:[#allocation14 + $0x4f8] sm:$0xff] }
 0xa4d   :  { %8237 = vmatpush1.bf16.msra.mxu1 %v9192_v63  ;;  %v9100_v63 = vcombine.low %v4562_v53, %v4578_v54  ;;  %v9133_v0 = vcombine.high %v4594_v29, %v4610_v62  ;;  %v9132_v3 = vcombine.low %v4594_v29, %v4610_v62  ;;  %v4882_v49 = vld [vmem:[#allocation14 + $0xd78] sm:$0xff]  ;;  %v5062_v62 = vrot.slane %v10951_v22, %v10914_v40 }
 0xa4e   :  { %8238 = vmatprep.subr.bf16.mxu1 %v9225_v1  ;;  %v4626_v1 = vld [vmem:[#allocation14 + $0x578] sm:$0xff] }
 0xa4f   :  { %v4898_v50 = vld [vmem:[#allocation14 + $0xdf8] sm:$0xff] }
 0xa50   :  { %v4914_v18 = vld [vmem:[#allocation14 + $0xe78] sm:$0xff] }
 0xa51   :  { %8239 = vmatpush1.bf16.msra.mxu1 %v9224_v4  ;;  %v4658_v4 = vld [vmem:[#allocation14 + $0x678] sm:$0xff] }
 0xa52   :  { %8240 = vmatprep.subr.bf16.mxu1 %v9257_v5  ;;  %v4674_v5 = vld [vmem:[#allocation14 + $0x6f8] sm:$0xff] }
 0xa53   :  { %v4930_v34 = vld [vmem:[#allocation14 + $0xef8] sm:$0xff] }
 0xa54   :  { %v4946_v53 = vld [vmem:[#allocation14 + $0xf78] sm:$0xff] }
 0xa55   :  { %8241 = vmatpush1.bf16.msra.mxu1 %v9256_v8  ;;  %v9164_v8 = vcombine.low %v4626_v1, %v4642_v2  ;;  %v4962_v54 = vld [vmem:[#allocation14 + $0xff8] sm:$0xff] }
 0xa56   :  { %8242 = vmatprep.subr.bf16.mxu1 %v9289_v9  ;;  %v9197_v9 = vcombine.high %v4658_v4, %v4674_v5  ;;  %v9484_v29 = vcombine.low %v4946_v53, %v4962_v54 }
 0xa59   :  { %8243 = vmatpush1.bf16.msra.mxu1 %v9288_v12  ;;  %v4706_v12 = vld [vmem:[#allocation14 + $0x7f8] sm:$0xff] }
 0xa5a   :  { %8244 = vmatprep.subr.bf16.mxu1 %v9321_v13  ;;  %v9229_v27 = vcombine.high %v4690_v11, %v4706_v12  ;;  %v9228_v31 = vcombine.low %v4690_v11, %v4706_v12 }
 0xa5d   :  { %8245 = vmatpush1.bf16.msra.mxu1 %v9320_v16 }
 0xa5e   :  { %8246 = vmatprep.subr.bf16.mxu1 %v9353_v20  ;;  %v9196_v20 = vcombine.low %v4658_v4, %v4674_v5  ;;  %v10425_v5 = vld [vmem:[#allocation16 + $0x18] sm:$0xff] }
 0xa5f   :  { %v5078_v12 = vrot.slane %v10425_v5, %v10896_v55 }
 0xa61   :  { %8247 = vmatpush1.bf16.msra.mxu1 %v9352_v23  ;;  %v4738_v23 = vld [vmem:[#allocation14 + $0x8f8] sm:$0xff] }
 0xa62   :  { %8248 = vmatprep.subr.bf16.mxu1 %v9385_v24  ;;  %v9261_v24 = vcombine.high %v4722_v61, %v4738_v23 }
 0xa65   :  { %8249 = vmatpush1.bf16.msra.mxu1 %v9384_v28  ;;  %v9260_v28 = vcombine.low %v4722_v61, %v4738_v23 }
 0xa66   :  { %8250 = vmatprep.subr.bf16.mxu1 %v9417_v30  ;;  %v9293_v30 = vcombine.high %v4754_v25, %v4770_v26 }
 0xa69   :  { %8251 = vmatpush1.bf16.msra.mxu1 %v9416_v36  ;;  %v9292_v36 = vcombine.low %v4754_v25, %v4770_v26 }
 0xa6a   :  { %8252 = vmatprep.subr.bf16.mxu1 %v9449_v38  ;;  %v9325_v38 = vcombine.high %v4786_v32, %v4802_v33 }
 0xa6d   :  { %8253 = vmatpush1.bf16.msra.mxu1 %v9448_v43  ;;  %v9324_v43 = vcombine.low %v4786_v32, %v4802_v33 }
 0xa6e   :  { %8254 = vmatprep.subr.bf16.mxu1 %v9481_v44  ;;  %v9357_v44 = vcombine.high %v4818_v39, %v4834_v41 }
 0xa71   :  { %8255 = vmatpush1.bf16.msra.mxu1 %v9480_v47  ;;  %v9356_v47 = vcombine.low %v4818_v39, %v4834_v41 }
 0xa72   :  { %8306 = vmatprep.subr.bf16.mxu1 %v9005_v48  ;;  %v9389_v48 = vcombine.high %v4850_v45, %v4866_v46 }
 0xa74   :  { %8257 = vmatmul.mubr.bf16.vlgmr.msra.gmra.mrb[60].mxu1 %v10866_v57 }
 0xa75   :  { %8307 = vmatpush1.bf16.msra.mxu1 %v9004_v51  ;;  %8338 = vmatprep.mubr.bf16.mxu1 %v10864_v56  ;;  %v9165_v56 = vcombine.high %v4626_v1, %v4642_v2  ;;  %v9388_v51 = vcombine.low %v4850_v45, %v4866_v46 }
 0xa76   :  { %8308 = vmatprep.subr.bf16.mxu1 %v9037_v17  ;;  %v9421_v17 = vcombine.high %v4882_v49, %v4898_v50 }
 0xa79   :  { %8309 = vmatpush1.bf16.msra.mxu1 %v9036_v19  ;;  %v9420_v19 = vcombine.low %v4882_v49, %v4898_v50 }
 0xa7a   :  { %8310 = vmatprep.subr.bf16.mxu1 %v9069_v52  ;;  %v9453_v52 = vcombine.high %v4914_v18, %v4930_v34 }
 0xa7d   :  { %8311 = vmatpush1.bf16.msra.mxu1 %v9068_v58  ;;  %v9452_v58 = vcombine.low %v4914_v18, %v4930_v34 }
 0xa7e   :  { %8312 = vmatprep.subr.bf16.mxu1 %v9101_v60  ;;  %v9485_v60 = vcombine.high %v4946_v53, %v4962_v54 }
 0xa81   :  { %8313 = vmatpush1.bf16.msra.mxu1 %v9100_v63  ;;  %v5066_v63 = vrot.slane %v10951_v22, %v10917_v42 }
 0xa82   :  { %8314 = vmatprep.subr.bf16.mxu1 %v9133_v0 }
 0xa85   :  { %8315 = vmatpush1.bf16.msra.mxu1 %v9132_v3 }
 0xa86   :  { %8316 = vmatprep.subr.bf16.mxu1 %v9165_v56 }
 0xa87   :  { %v8135_v10 = vpop.f32.mrb[48].mxu1 }
 0xa88   :  { %v8136_v13 = vadd.f32 %v8135_v10, %v5054_v6  ;;  %v8137_v14 = vpop.f32.mrb[49].mxu1  ;;  %v5070_v6 = vrot.slane %v10425_v5, %v10842_v35 }
 0xa89   :  { %v8138_v15 = vadd.f32 %v8137_v14, %v5058_v7  ;;  %v8139_v16 = vpop.f32.mrb[50].mxu1  ;;  %8317 = vmatpush1.bf16.msra.mxu1 %v9164_v8  ;;  %v5074_v7 = vrot.slane %v10425_v5, %v10845_v37  ;;  %v5094_v37 = vrot.slane %v10425_v5, %v10914_v40 }
 0xa8a   :  { %8367 = vst [vmem:[#allocation17 + $0xa0] sm:$0xff] %v8136_v13  ;;  %v8140_v21 = vpop.f32.mrb[51].mxu1  ;;  %8318 = vmatprep.subr.bf16.mxu1 %v9197_v9  ;;  %v5082_v13 = vrot.slane %v10425_v5, %v10899_v59 }
 0xa8b   :  { %8368 = vst [vmem:[#allocation17 + $0xa8] sm:$0xff] %v8138_v15 }
 0xa8d   :  { %8319 = vmatpush1.bf16.msra.mxu1 %v9196_v20 }
 0xa8e   :  { %8320 = vmatprep.subr.bf16.mxu1 %v9229_v27  ;;  %v5098_v27 = vrot.slane %v10425_v5, %v10917_v42 }
 0xa91   :  { %8321 = vmatpush1.bf16.msra.mxu1 %v9228_v31 }
 0xa92   :  { %8322 = vmatprep.subr.bf16.mxu1 %v9261_v24 }
 0xa95   :  { %8323 = vmatpush1.bf16.msra.mxu1 %v9260_v28 }
 0xa96   :  { %8324 = vmatprep.subr.bf16.mxu1 %v9293_v30 }
 0xa99   :  { %8325 = vmatpush1.bf16.msra.mxu1 %v9292_v36 }
 0xa9a   :  { %8326 = vmatprep.subr.bf16.mxu1 %v9325_v38 }
 0xa9d   :  { %8327 = vmatpush1.bf16.msra.mxu1 %v9324_v43 }
 0xa9e   :  { %8328 = vmatprep.subr.bf16.mxu1 %v9357_v44 }
 0xaa1   :  { %8329 = vmatpush1.bf16.msra.mxu1 %v9356_v47 }
 0xaa2   :  { %8330 = vmatprep.subr.bf16.mxu1 %v9389_v48 }
 0xaa5   :  { %8331 = vmatpush1.bf16.msra.mxu1 %v9388_v51 }
 0xaa6   :  { %8332 = vmatprep.subr.bf16.mxu1 %v9421_v17 }
 0xaa9   :  { %8333 = vmatpush1.bf16.msra.mxu1 %v9420_v19 }
 0xaaa   :  { %8334 = vmatprep.subr.bf16.mxu1 %v9453_v52 }
 0xaad   :  { %8335 = vmatpush1.bf16.msra.mxu1 %v9452_v58 }
 0xaae   :  { %8336 = vmatprep.subr.bf16.mxu1 %v9485_v60 }
 0xab1   :  { %8337 = vmatpush1.bf16.msra.mxu1 %v9484_v29 }
 0xab4   :  { %8339 = vmatmul.mubr.bf16.vlgmr.msra.gmra.mrb[64].mxu1 %v10866_v57 }
 0xac7   :  { %v8176_v0 = vpop.f32.mrb[52].mxu1 }
 0xac8   :  { %v8177_v1 = vadd.f32 %v8176_v0, %v5062_v62  ;;  %v8178_v2 = vpop.f32.mrb[53].mxu1 }
 0xac9   :  { %v8179_v3 = vadd.f32 %v8178_v2, %v5066_v63  ;;  %v8180_v56 = vpop.f32.mrb[54].mxu1 }
 0xaca   :  { %8369 = vst [vmem:[#allocation17 + $0xb0] sm:$0xff] %v8177_v1  ;;  %v8181_v4 = vpop.f32.mrb[55].mxu1 }
 0xacb   :  { %8370 = vst [vmem:[#allocation17 + $0xb8] sm:$0xff] %v8179_v3 }
 0xb07   :  { %v8217_v57 = vpop.f32.mrb[56].mxu1 }
 0xb08   :  { %v8218_v8 = vadd.f32 %v8217_v57, %v5070_v6  ;;  %v8219_v9 = vpop.f32.mrb[57].mxu1 }
 0xb09   :  { %v8220_v10 = vadd.f32 %v8219_v9, %v5074_v7  ;;  %v8221_v11 = vpop.f32.mrb[58].mxu1 }
 0xb0a   :  { %8371 = vst [vmem:[#allocation17 + $0xc0] sm:$0xff] %v8218_v8  ;;  %v8222_v22 = vpop.f32.mrb[59].mxu1 }
 0xb0b   :  { %8372 = vst [vmem:[#allocation17 + $0xc8] sm:$0xff] %v8220_v10 }
 0xb47   :  { %v8258_v14 = vpop.f32.mrb[60].mxu1 }
 0xb48   :  { %v8259_v15 = vadd.f32 %v8258_v14, %v5078_v12  ;;  %v8260_v16 = vpop.f32.mrb[61].mxu1 }
 0xb49   :  { %v8261_v20 = vadd.f32 %v8260_v16, %v5082_v13  ;;  %v8262_v21 = vpop.f32.mrb[62].mxu1 }
 0xb4a   :  { %8373 = vst [vmem:[#allocation17 + $0xd0] sm:$0xff] %v8259_v15  ;;  %v8263_v35 = vpop.f32.mrb[63].mxu1 }
 0xb4b   :  { %8374 = vst [vmem:[#allocation17 + $0xd8] sm:$0xff] %v8261_v20 }
 0xb87   :  { %v8340_v61 = vpop.f32.mrb[64].mxu1 }
 0xb88   :  { %v8341_v23 = vadd.f32 %v8340_v61, %v5094_v37  ;;  %v8342_v31 = vpop.f32.mrb[65].mxu1 }
 0xb89   :  { %v8343_v55 = vadd.f32 %v8342_v31, %v5098_v27  ;;  %v8344_v24 = vpop.f32.mrb[66].mxu1 }
 0xb8a   :  { %8377 = vst [vmem:[#allocation17 + $0xf0] sm:$0xff] %v8341_v23  ;;  %v8345_v59 = vpop.f32.mrb[67].mxu1 }
 0xb8b   :  { %8378 = vst [vmem:[#allocation17 + $0xf8] sm:$0xff] %v8343_v55 }
 0xb8c   :  { %10635 = shalt.err (!%p10632_p6)
}
 0xb8d   :  { %s10636_s2 = scalar_lea.hbm %s11001_s9, 4096 }
 0xb8e   :  { %p10637_p7 = scmp.ne.s32.totalorder %s11001_s9, %s10636_s2  ;;  %p10640_p8 = scmp.lt.u32.totalorder %s10636_s2, %s11001_s9 }
 0xb90   :  { %p10642_p9 = pnand %p10640_p8, %p10637_p7 }
 0xb92   :  { %10645 = shalt.err (!%p10642_p9)
}
 0xb93   :  { %8388 = dma.vmem_to_hbm [thread:$0]  %s8386_s23, 4096, %s11001_s9, [#allocation4]  }
 0xb94   :  { %10656 = dma.done.wait [#allocation4], 4096  }
 0xb95   :  { %10657 = vsyncadd [#allocation4], 4294963200 }
 0xb96   :  { %8392 = vsyncpa [#allocation3], 1 }
 0xb97   :  { %8393 = vsyncpa [#allocation6], 1 }
 0xb98   :  { %8394 = vsyncpa [#allocation9], 1 }
 0xb99   :  { %8395 = vsyncpa [#allocation12], 1 }
 0xb9a   :  { %8396 = vsyncpa [#allocation15], 1 }
 0xb9b   :  { %8397 = vsyncpa [#allocation4], 1 }

</bundles_post_ra>
